<compile_context>
chip_gen: v6e
topology: v6e:2x2x1
jax: 0.10.0
libtpu: 0.0.40
codegen_flags: <defaults>
</compile_context>

<pallas_src>
import functools

import jax
import jax.numpy as jnp
from jax import lax
from jax.experimental import pallas as pl
from jax.experimental.pallas import tpu as pltpu

_LN_EPS = 1e-5


@functools.lru_cache(maxsize=None)
def _vmem_limit_bytes():
    """Generation-aware scoped-VMEM limit: ~96 MiB on 128 MiB chips (v5e/v6e),
    ~48 MiB on 64 MiB chips (v7x)."""
    try:
        cap = int(pltpu.get_tpu_info().vmem_capacity_bytes)
    except Exception:
        cap = 64 * 1024 * 1024
    if cap <= 0:
        cap = 64 * 1024 * 1024
    return min((cap * 3) // 4, 96 * 1024 * 1024)


def _compiler_params(n_grid_axes=1):
    # All grid axes are independent -> "parallel" (megacore / v7x 2-TC sharding).
    return pltpu.CompilerParams(
        dimension_semantics=("parallel",) * n_grid_axes,
        vmem_limit_bytes=_vmem_limit_bytes())


def _pick_row_tile(m, per_row_bytes, fixed_bytes, vmem_limit, min_steps=4):
    """Largest row tile that divides m, fits the double-buffered VMEM budget and
    leaves >= min_steps grid steps (pipeline steady state + v7x load balance)."""
    budget = max(vmem_limit - fixed_bytes, 2 * 1024 * 1024)
    cands = [t for t in (1024, 512, 256, 128, 64, 32, 16, 8)
             if t <= m and m % t == 0]
    if not cands:
        return m
    for t in cands:                                   # best: fits + enough steps
        if t * per_row_bytes <= budget and m // t >= min_steps:
            return t
    for t in cands:                                   # next: at least fits VMEM
        if t * per_row_bytes <= budget:
            return t
    return cands[-1]


# ---------------------------------------------------------------------------
# Kernel 1: fused K/V/Q projections (one pallas_call, one [D, 3D] weight)
# ---------------------------------------------------------------------------

def _qkv_self_kernel(x_ref, w_ref, b_ref, k_out, v_out, q_out):
    # Self-attention: key == value == query -> x read from HBM once.  Three
    # per-slice matmuls (lane-aligned ref slices of the [D,3D] weight) so no
    # [tm, 3D] f32 intermediate is ever live (avoids vreg spills).
    d = k_out.shape[-1]
    x = x_ref[...].astype(jnp.bfloat16)
    for c, out in enumerate((k_out, v_out, q_out)):
        y = jnp.dot(x, w_ref[:, c * d:(c + 1) * d],
                    preferred_element_type=jnp.float32)
        out[...] = (y + b_ref[:, c * d:(c + 1) * d]).astype(out.dtype)


def _kvq_general_kernel(k_in, v_in, q_in, w_ref, b_ref, k_out, v_out, q_out):
    # Cross-attention: distinct key/value/query inputs, still one launch.
    # Weight/bias sliced through the ref (free static slices, no full load).
    d = k_out.shape[-1]
    for c, (x_ref, out) in enumerate(((k_in, k_out), (v_in, v_out), (q_in, q_out))):
        y = jnp.dot(x_ref[...].astype(jnp.bfloat16), w_ref[:, c * d:(c + 1) * d],
                    preferred_element_type=jnp.float32)
        out[...] = (y + b_ref[:, c * d:(c + 1) * d]).astype(out.dtype)


def qkv_projection(key2d, value2d, query2d, w_kvq, b_kvq, *, self_attention):
    """key2d/value2d/query2d: [M, D] f32.  w_kvq: [D, 3D] bf16 = [wk | wv | wq*scale].
    Returns (k, v, q), each [M, D] bf16 (the softmax scale is pre-folded into wq)."""
    m, d = query2d.shape
    vmem_limit = _vmem_limit_bytes()
    n_x_reads = 1 if self_attention else 3
    # Double-buffered per-row bytes (inputs f32 + 3 bf16 outputs) and resident
    # fixed bytes (weight + bias, double-buffered) -> VMEM-aware row tile.
    per_row = 2 * (n_x_reads * d * 4 + 3 * d * 2)
    fixed = 2 * (d * 3 * d * 2 + 3 * d * 4)
    tm = _pick_row_tile(m, per_row, fixed, vmem_limit)
    grid = (m // tm,)
    # TODO(synk): for very large D (>~1-2K on v7x) tile the 3D/N or K dimension
    # with an accumulator instead of shrinking tm further.

    x_spec = pl.BlockSpec((tm, d), lambda i: (i, 0))
    w_spec = pl.BlockSpec((d, 3 * d), lambda i: (0, 0))
    b_spec = pl.BlockSpec((1, 3 * d), lambda i: (0, 0))
    out_specs = tuple(pl.BlockSpec((tm, d), lambda i: (i, 0)) for _ in range(3))
    out_shape = tuple(jax.ShapeDtypeStruct((m, d), jnp.bfloat16) for _ in range(3))

    cost = pl.CostEstimate(
        flops=2 * m * d * 3 * d,
        transcendentals=0,
        bytes_accessed=(n_x_reads * m * d * 4 + 3 * d * d * 2 + 3 * d * 4
                        + 3 * m * d * 2))

    if self_attention:
        return pl.pallas_call(
            _qkv_self_kernel,
            out_shape=out_shape, grid=grid,
            in_specs=[x_spec, w_spec, b_spec],
            out_specs=out_specs,
            compiler_params=_compiler_params(1),
            cost_estimate=cost,
        )(query2d, w_kvq, b_kvq.reshape(1, -1))
    return pl.pallas_call(
        _kvq_general_kernel,
        out_shape=out_shape, grid=grid,
        in_specs=[x_spec, x_spec, x_spec, w_spec, b_spec],
        out_specs=out_specs,
        compiler_params=_compiler_params(1),
        cost_estimate=cost,
    )(key2d, value2d, query2d, w_kvq, b_kvq.reshape(1, -1))


# ---------------------------------------------------------------------------
# Kernel 2: attention + output projection + residual + LayerNorm (fully fused,
#           one grid step per batch — context never leaves VMEM)
# ---------------------------------------------------------------------------

def _attn_epilogue_kernel(q_ref, k_ref, v_ref, res_ref, wo_ref, bo_ref, g_ref,
                          b_ref, o_ref, attn_ref, ctx_scr, *, eps):
    num_heads, seq, dh = q_ref.shape

    # --- scaled dot-product attention, one head at a time (keeps the live f32
    #     intermediates at [L, L] instead of [H, L, L] -> no register spills;
    #     the scale is already folded into the Q projection weights) ---
    for h in range(num_heads):
        s = jnp.einsum("qd,kd->qk", q_ref[h], k_ref[h],
                       preferred_element_type=jnp.float32)
        s = s - jnp.max(s, axis=-1, keepdims=True)
        e = jnp.exp(s)
        p = e * pl.reciprocal(jnp.sum(e, axis=-1, keepdims=True), approx=True)
        # Attention probabilities kept f32 (module output); could be bf16 to
        # halve the largest HBM write if callers allow it.
        attn_ref[h] = p.astype(attn_ref.dtype)
        ctx_scr[h * seq:(h + 1) * seq, :] = jnp.dot(
            p.astype(v_ref.dtype), v_ref[h], preferred_element_type=jnp.float32)

    # --- output projection + residual + LayerNorm ---
    # The reference's context.view(batch, -1, D) (no head transpose) maps
    #     ctx2d[l, j*dh:(j+1)*dh] == ctx_flat[l*H + j, :]
    # so lane-chunk j of ctx2d is a stride-H sublane slice of the scratch.
    # Accumulating chunk_j @ wo[j*dh:(j+1)*dh] avoids any in-kernel reshape or
    # lane concatenation.
    y = res_ref[...] + bo_ref[...]                       # residual + final bias
    for j in range(num_heads):
        chunk = ctx_scr[pl.ds(j, seq, stride=num_heads), :].astype(jnp.bfloat16)
        y = y + jnp.dot(chunk, wo_ref[j * dh:(j + 1) * dh, :],
                        preferred_element_type=jnp.float32)
    mean = jnp.mean(y, axis=-1, keepdims=True)           # LayerNorm (biased var)
    yc = y - mean
    var = jnp.mean(yc * yc, axis=-1, keepdims=True)
    o_ref[...] = (yc * lax.rsqrt(var + eps) * g_ref[...] + b_ref[...]).astype(o_ref.dtype)


def attention_epilogue(qh, kh, vh, resid2d, wo, bo, ln_g, ln_b, *, batch):
    """qh/kh/vh: [B*H, L, dh] bf16; resid2d: [B*L, D] f32.
    Returns (output [B*L, D] f32, attention [B*H, L, L] f32)."""
    bh, seq, dh = qh.shape
    h = bh // batch
    m, d = resid2d.shape

    head_spec = pl.BlockSpec((h, seq, dh), lambda b: (b, 0, 0))
    row_spec = pl.BlockSpec((seq, d), lambda b: (b, 0))
    vec_spec = pl.BlockSpec((1, d), lambda b: (0, 0))

    cost = pl.CostEstimate(
        flops=2 * 2 * bh * seq * seq * dh + 2 * m * d * d,
        transcendentals=bh * seq * seq + bh * seq + m,
        bytes_accessed=(3 * bh * seq * dh * 2 + m * d * 4 + d * d * 2 + 3 * d * 4
                        + m * d * 4 + bh * seq * seq * 4))

    return pl.pallas_call(
        functools.partial(_attn_epilogue_kernel, eps=_LN_EPS),
        out_shape=(jax.ShapeDtypeStruct((m, d), jnp.float32),
                   jax.ShapeDtypeStruct((bh, seq, seq), jnp.float32)),
        grid=(batch,),
        in_specs=[head_spec, head_spec, head_spec, row_spec,
                  pl.BlockSpec((d, d), lambda b: (0, 0)),
                  vec_spec, vec_spec, vec_spec],
        out_specs=(row_spec, pl.BlockSpec((h, seq, seq), lambda b: (b, 0, 0))),
        scratch_shapes=[pltpu.VMEM((h * seq, dh), jnp.float32)],
        compiler_params=_compiler_params(1),
        cost_estimate=cost,
    )(qh, kh, vh, resid2d, wo, bo.reshape(1, -1),
      ln_g.reshape(1, -1), ln_b.reshape(1, -1))


# ---------------------------------------------------------------------------
# MultiHeadAttention.forward
# ---------------------------------------------------------------------------

@functools.partial(jax.jit, static_argnames=("num_heads", "self_attention"))
def _mha_forward(params, key, value, query, *, num_heads, self_attention):
    b, seq, d = query.shape
    h = num_heads
    dh = d // h
    m = b * seq

    # TODO(synk): the reference passes 5 positional args into the 4-arg
    # ScaledDotProductAttention.forward (a TypeError as written) and never applies a
    # mask; we implement the intended mask-less flow with the exact scale computed in
    # MultiHeadAttention.forward, (dim_per_head // num_heads) ** -0.5, which is
    # pre-folded into the Q projection weights/bias in init_params (exactly
    # equivalent since (x@Wq + bq)*s == x@(Wq*s) + bq*s).

    q2d = query.reshape(m, d)
    k2d = q2d if self_attention else key.reshape(-1, d)
    v2d = q2d if self_attention else value.reshape(-1, d)

    k_p, v_p, q_p = qkv_projection(k2d, v2d, q2d, params["w_kvq"], params["b_kvq"],
                                   self_attention=self_attention)

    # Reference's raw view(batch*heads, -1, dim_per_head): plain row-major reshape
    # (no head transpose) — free, the flat buffer is unchanged.
    kh = k_p.reshape(b * h, seq, dh)
    vh = v_p.reshape(b * h, seq, dh)
    qh = q_p.reshape(b * h, seq, dh)

    # TODO(synk): the QKV projection is kept as its own kernel (k/v/q round-trip
    # HBM in bf16) because the reference's buggy head view scrambles rows across
    # heads, which makes an in-kernel per-head split of freshly-projected [L, D]
    # slabs awkward; attention + out-proj + residual + LayerNorm are fully fused.
    out2d, attn = attention_epilogue(qh, kh, vh, q2d, params["wo"], params["bo"],
                                     params["ln_g"], params["ln_b"], batch=b)
    return out2d.reshape(b, seq, d), attn


def multi_head_attention(params, key, value, query, *, num_heads):
    """Matches MultiHeadAttention.forward(key, value, query) -> (output, attention)."""
    # Object-identity check: equal-but-distinct arrays take the (correct but
    # slower, 3-read) cross-attention path.
    self_attention = (key is value) and (value is query)
    return _mha_forward(params, key, value, query,
                        num_heads=num_heads, self_attention=self_attention)


def init_params(rng, model_dim, num_heads):
    """Synthetic nn.Linear-style init; matmul weights stored bf16 for the MXU.
    The module's softmax scale is pre-folded into the Q projection weight/bias."""
    assert model_dim % num_heads == 0
    dim_per_head = model_dim // num_heads
    assert dim_per_head // num_heads > 0, \
        "reference scale (dim_per_head // num_heads) ** -0.5 needs dim_per_head >= num_heads"
    scale = float((dim_per_head // num_heads) ** (-0.5))

    ks = jax.random.split(rng, 8)
    bound = 1.0 / (model_dim ** 0.5)

    def uni(k, shape):
        return jax.random.uniform(k, shape, jnp.float32, -bound, bound)

    wk = uni(ks[0], (model_dim, model_dim))
    wv = uni(ks[1], (model_dim, model_dim))
    wq = uni(ks[2], (model_dim, model_dim)) * scale      # scale folded into Q proj
    bk = uni(ks[3], (model_dim,))
    bv = uni(ks[4], (model_dim,))
    bq = uni(ks[5], (model_dim,)) * scale
    return {
        "w_kvq": jnp.concatenate([wk, wv, wq], axis=1).astype(jnp.bfloat16),
        "b_kvq": jnp.concatenate([bk, bv, bq], axis=0),
        "wo": uni(ks[6], (model_dim, model_dim)).astype(jnp.bfloat16),
        "bo": uni(ks[7], (model_dim,)),
        "ln_g": jnp.ones((model_dim,), jnp.float32),
        "ln_b": jnp.zeros((model_dim,), jnp.float32),
    }


def _reference_forward(params, key, value, query, num_heads):
    # Pure-JAX f32 reference of the same effective data flow (self-check only).
    # Uses the same (pre-scaled) weights, so no extra softmax scale is applied.
    b, seq, d = query.shape
    h = num_heads
    dh = d // h
    w = params["w_kvq"].astype(jnp.float32)
    bias = params["b_kvq"]
    k = key.reshape(-1, d) @ w[:, :d] + bias[:d]
    v = value.reshape(-1, d) @ w[:, d:2 * d] + bias[d:2 * d]
    q = query.reshape(-1, d) @ w[:, 2 * d:] + bias[2 * d:]
    kh = k.reshape(b * h, seq, dh)
    vh = v.reshape(b * h, seq, dh)
    qh = q.reshape(b * h, seq, dh)
    s = jnp.einsum("bqd,bkd->bqk", qh, kh)
    p = jax.nn.softmax(s, axis=-1)
    ctx = jnp.einsum("bqk,bkd->bqd", p, vh).reshape(b, seq, d)
    out = ctx @ params["wo"].astype(jnp.float32) + params["bo"]
    z = query + out
    mean = jnp.mean(z, axis=-1, keepdims=True)
    var = jnp.mean((z - mean) ** 2, axis=-1, keepdims=True)
    out = (z - mean) / jnp.sqrt(var + _LN_EPS) * params["ln_g"] + params["ln_b"]
    return out, p


if __name__ == "__main__":
    MODEL_DIM = 256     # multiple of 128 lanes; fused QKV weight is [256, 768]
    NUM_HEADS = 4       # dim_per_head = 64
    BATCH = 4           # 4 grid steps in the fused attention kernel (2/TC on v7x)
    SEQ_LEN = 128       # lane-dense attention-probability output

    root = jax.random.PRNGKey(0)
    pkey, xkey, ckey = jax.random.split(root, 3)
    params = init_params(pkey, MODEL_DIM, NUM_HEADS)
    x = jax.random.normal(xkey, (BATCH, SEQ_LEN, MODEL_DIM), jnp.float32)

    # Self-attention (key = value = query): exercises the fused single-read QKV path.
    out, attn = multi_head_attention(params, x, x, x, num_heads=NUM_HEADS)
    out = jax.block_until_ready(out)
    assert out.shape == (BATCH, SEQ_LEN, MODEL_DIM)
    assert attn.shape == (BATCH * NUM_HEADS, SEQ_LEN, SEQ_LEN)
    assert bool(jnp.all(jnp.isfinite(out)))

    ref_out, ref_attn = _reference_forward(params, x, x, x, NUM_HEADS)
    assert float(jnp.max(jnp.abs(out - ref_out))) < 0.25     # bf16-MXU tolerance
    assert float(jnp.max(jnp.abs(attn - ref_attn))) < 0.05

    # Cross-attention (distinct key/value vs query): exercises the general path.
    kv = jax.random.normal(ckey, (BATCH, SEQ_LEN, MODEL_DIM), jnp.float32)
    out2, _ = multi_head_attention(params, kv, kv, x, num_heads=NUM_HEADS)
    out2 = jax.block_until_ready(out2)
    assert bool(jnp.all(jnp.isfinite(out2)))
    ref_out2, _ = _reference_forward(params, kv, kv, x, NUM_HEADS)
    assert float(jnp.max(jnp.abs(out2 - ref_out2))) < 0.25

    print("KERNEL_OK")
</pallas_src>

<mosaic_0001>
module attributes {stable_mosaic.version = 11 : i64} {
  func.func @_attn_epilogue_kernel(%arg0: i32, %arg1: memref<4x128x64xbf16, #tpu.memory_space<vmem>>, %arg2: memref<4x128x64xbf16, #tpu.memory_space<vmem>>, %arg3: memref<4x128x64xbf16, #tpu.memory_space<vmem>>, %arg4: memref<128x256xf32, #tpu.memory_space<vmem>>, %arg5: memref<256x256xbf16, #tpu.memory_space<vmem>>, %arg6: memref<1x256xf32, #tpu.memory_space<vmem>>, %arg7: memref<1x256xf32, #tpu.memory_space<vmem>>, %arg8: memref<1x256xf32, #tpu.memory_space<vmem>>, %arg9: memref<128x256xf32, #tpu.memory_space<vmem>>, %arg10: memref<4x128x128xf32, #tpu.memory_space<vmem>>, %arg11: memref<512x64xf32, #tpu.memory_space<vmem>>) attributes {dimension_semantics = [#tpu.dimension_semantics<parallel>], iteration_bounds = array<i64: 4>, scalar_prefetch = 0 : i64, scratch_operands = 1 : i64, tpu.core_type = #tpu.core_type<tc>, window_params = [{transform_indices = @transform_0, window_bounds = array<i64: 4, 128, 64>}, {transform_indices = @transform_1, window_bounds = array<i64: 4, 128, 64>}, {transform_indices = @transform_2, window_bounds = array<i64: 4, 128, 64>}, {transform_indices = @transform_3, window_bounds = array<i64: 128, 256>}, {pipeline_mode = #tpu.pipeline_mode<synchronous>, transform_indices = @transform_4, window_bounds = array<i64: 256, 256>}, {pipeline_mode = #tpu.pipeline_mode<synchronous>, transform_indices = @transform_5, window_bounds = array<i64: 1, 256>}, {pipeline_mode = #tpu.pipeline_mode<synchronous>, transform_indices = @transform_6, window_bounds = array<i64: 1, 256>}, {pipeline_mode = #tpu.pipeline_mode<synchronous>, transform_indices = @transform_7, window_bounds = array<i64: 1, 256>}, {transform_indices = @transform_8, window_bounds = array<i64: 128, 256>}, {transform_indices = @transform_9, window_bounds = array<i64: 4, 128, 128>}]} {
    %c0 = arith.constant 0 : index
    %c0_0 = arith.constant 0 : index
    %c0_1 = arith.constant 0 : index
    %0 = vector.load %arg1[%c0, %c0_0, %c0_1] : memref<4x128x64xbf16, #tpu.memory_space<vmem>>, vector<1x128x64xbf16>
    %1 = vector.shape_cast %0 : vector<1x128x64xbf16> to vector<128x64xbf16>
    %c0_2 = arith.constant 0 : index
    %c0_3 = arith.constant 0 : index
    %c0_4 = arith.constant 0 : index
    %2 = vector.load %arg2[%c0_2, %c0_3, %c0_4] : memref<4x128x64xbf16, #tpu.memory_space<vmem>>, vector<1x128x64xbf16>
    %3 = vector.shape_cast %2 : vector<1x128x64xbf16> to vector<128x64xbf16>
    "tpu.trace_start"() <{level = 10 : i32, message = "qd,kd->qk"}> : () -> ()
    %cst = arith.constant dense<0.000000e+00> : vector<128x128xf32>
    %4 = tpu.matmul %1, %3, %cst {dimension_numbers = #tpu.dot_dimension_numbers<[1], [1], [0], [0], [0, 0, 1, 0], [], []>} : vector<128x64xbf16>, vector<128x64xbf16>, vector<128x128xf32> -> vector<128x128xf32>
    "tpu.trace_stop"() : () -> ()
    %cst_5 = arith.constant dense<0xFF800000> : vector<128xf32>
    %5 = vector.multi_reduction <maximumf>, %4, %cst_5 [1] : vector<128x128xf32> to vector<128xf32>
    %6 = vector.shape_cast %5 : vector<128xf32> to vector<128x1xf32>
    %7 = vector.broadcast %6 : vector<128x1xf32> to vector<128x128xf32>
    %8 = arith.subf %4, %7 : vector<128x128xf32>
    %9 = math.exp %8 : vector<128x128xf32>
    %cst_6 = arith.constant dense<0.000000e+00> : vector<128xf32>
    %10 = vector.multi_reduction <add>, %9, %cst_6 [1] : vector<128x128xf32> to vector<128xf32>
    %11 = vector.shape_cast %10 : vector<128xf32> to vector<128x1xf32>
    %12 = tpu.reciprocal %11 {approx = true} : vector<128x1xf32> -> vector<128x1xf32>
    %13 = vector.broadcast %12 : vector<128x1xf32> to vector<128x128xf32>
    %14 = arith.mulf %9, %13 : vector<128x128xf32>
    %c0_7 = arith.constant 0 : index
    %c0_8 = arith.constant 0 : index
    %c0_9 = arith.constant 0 : index
    %15 = vector.load %arg10[%c0_7, %c0_8, %c0_9] : memref<4x128x128xf32, #tpu.memory_space<vmem>>, vector<1x128x128xf32>
    %16 = vector.shape_cast %15 : vector<1x128x128xf32> to vector<128x128xf32>
    %17 = vector.shape_cast %14 : vector<128x128xf32> to vector<1x128x128xf32>
    tpu.vector_store %arg10[%c0_7, %c0_8, %c0_9], %17 {strides = array<i32>} : memref<4x128x128xf32, #tpu.memory_space<vmem>>, vector<1x128x128xf32>,
    %18 = arith.truncf %14 : vector<128x128xf32> to vector<128x128xbf16>
    %c0_10 = arith.constant 0 : index
    %c0_11 = arith.constant 0 : index
    %c0_12 = arith.constant 0 : index
    %19 = vector.load %arg3[%c0_10, %c0_11, %c0_12] : memref<4x128x64xbf16, #tpu.memory_space<vmem>>, vector<1x128x64xbf16>
    %20 = vector.shape_cast %19 : vector<1x128x64xbf16> to vector<128x64xbf16>
    %cst_13 = arith.constant dense<0.000000e+00> : vector<128x64xf32>
    %21 = tpu.matmul %18, %20, %cst_13 {dimension_numbers = #tpu.dot_dimension_numbers<[1], [0], [0], [1], [0, 0, 1, 1], [], []>} : vector<128x128xbf16>, vector<128x64xbf16>, vector<128x64xf32> -> vector<128x64xf32>
    %c0_14 = arith.constant 0 : index
    %c0_15 = arith.constant 0 : index
    %22 = vector.load %arg11[%c0_14, %c0_15] : memref<512x64xf32, #tpu.memory_space<vmem>>, vector<128x64xf32>
    tpu.vector_store %arg11[%c0_14, %c0_15], %21 {strides = array<i32>} : memref<512x64xf32, #tpu.memory_space<vmem>>, vector<128x64xf32>,
    %c1 = arith.constant 1 : index
    %c0_16 = arith.constant 0 : index
    %c0_17 = arith.constant 0 : index
    %23 = vector.load %arg1[%c1, %c0_16, %c0_17] : memref<4x128x64xbf16, #tpu.memory_space<vmem>>, vector<1x128x64xbf16>
    %24 = vector.shape_cast %23 : vector<1x128x64xbf16> to vector<128x64xbf16>
    %c1_18 = arith.constant 1 : index
    %c0_19 = arith.constant 0 : index
    %c0_20 = arith.constant 0 : index
    %25 = vector.load %arg2[%c1_18, %c0_19, %c0_20] : memref<4x128x64xbf16, #tpu.memory_space<vmem>>, vector<1x128x64xbf16>
    %26 = vector.shape_cast %25 : vector<1x128x64xbf16> to vector<128x64xbf16>
    "tpu.trace_start"() <{level = 10 : i32, message = "qd,kd->qk"}> : () -> ()
    %cst_21 = arith.constant dense<0.000000e+00> : vector<128x128xf32>
    %27 = tpu.matmul %24, %26, %cst_21 {dimension_numbers = #tpu.dot_dimension_numbers<[1], [1], [0], [0], [0, 0, 1, 0], [], []>} : vector<128x64xbf16>, vector<128x64xbf16>, vector<128x128xf32> -> vector<128x128xf32>
    "tpu.trace_stop"() : () -> ()
    %cst_22 = arith.constant dense<0xFF800000> : vector<128xf32>
    %28 = vector.multi_reduction <maximumf>, %27, %cst_22 [1] : vector<128x128xf32> to vector<128xf32>
    %29 = vector.shape_cast %28 : vector<128xf32> to vector<128x1xf32>
    %30 = vector.broadcast %29 : vector<128x1xf32> to vector<128x128xf32>
    %31 = arith.subf %27, %30 : vector<128x128xf32>
    %32 = math.exp %31 : vector<128x128xf32>
    %cst_23 = arith.constant dense<0.000000e+00> : vector<128xf32>
    %33 = vector.multi_reduction <add>, %32, %cst_23 [1] : vector<128x128xf32> to vector<128xf32>
    %34 = vector.shape_cast %33 : vector<128xf32> to vector<128x1xf32>
    %35 = tpu.reciprocal %34 {approx = true} : vector<128x1xf32> -> vector<128x1xf32>
    %36 = vector.broadcast %35 : vector<128x1xf32> to vector<128x128xf32>
    %37 = arith.mulf %32, %36 : vector<128x128xf32>
    %c1_24 = arith.constant 1 : index
    %c0_25 = arith.constant 0 : index
    %c0_26 = arith.constant 0 : index
    %38 = vector.load %arg10[%c1_24, %c0_25, %c0_26] : memref<4x128x128xf32, #tpu.memory_space<vmem>>, vector<1x128x128xf32>
    %39 = vector.shape_cast %38 : vector<1x128x128xf32> to vector<128x128xf32>
    %40 = vector.shape_cast %37 : vector<128x128xf32> to vector<1x128x128xf32>
    tpu.vector_store %arg10[%c1_24, %c0_25, %c0_26], %40 {strides = array<i32>} : memref<4x128x128xf32, #tpu.memory_space<vmem>>, vector<1x128x128xf32>,
    %41 = arith.truncf %37 : vector<128x128xf32> to vector<128x128xbf16>
    %c1_27 = arith.constant 1 : index
    %c0_28 = arith.constant 0 : index
    %c0_29 = arith.constant 0 : index
    %42 = vector.load %arg3[%c1_27, %c0_28, %c0_29] : memref<4x128x64xbf16, #tpu.memory_space<vmem>>, vector<1x128x64xbf16>
    %43 = vector.shape_cast %42 : vector<1x128x64xbf16> to vector<128x64xbf16>
    %cst_30 = arith.constant dense<0.000000e+00> : vector<128x64xf32>
    %44 = tpu.matmul %41, %43, %cst_30 {dimension_numbers = #tpu.dot_dimension_numbers<[1], [0], [0], [1], [0, 0, 1, 1], [], []>} : vector<128x128xbf16>, vector<128x64xbf16>, vector<128x64xf32> -> vector<128x64xf32>
    %c128 = arith.constant 128 : index
    %c0_31 = arith.constant 0 : index
    %45 = vector.load %arg11[%c128, %c0_31] : memref<512x64xf32, #tpu.memory_space<vmem>>, vector<128x64xf32>
    tpu.vector_store %arg11[%c128, %c0_31], %44 {strides = array<i32>} : memref<512x64xf32, #tpu.memory_space<vmem>>, vector<128x64xf32>,
    %c2 = arith.constant 2 : index
    %c0_32 = arith.constant 0 : index
    %c0_33 = arith.constant 0 : index
    %46 = vector.load %arg1[%c2, %c0_32, %c0_33] : memref<4x128x64xbf16, #tpu.memory_space<vmem>>, vector<1x128x64xbf16>
    %47 = vector.shape_cast %46 : vector<1x128x64xbf16> to vector<128x64xbf16>
    %c2_34 = arith.constant 2 : index
    %c0_35 = arith.constant 0 : index
    %c0_36 = arith.constant 0 : index
    %48 = vector.load %arg2[%c2_34, %c0_35, %c0_36] : memref<4x128x64xbf16, #tpu.memory_space<vmem>>, vector<1x128x64xbf16>
    %49 = vector.shape_cast %48 : vector<1x128x64xbf16> to vector<128x64xbf16>
    "tpu.trace_start"() <{level = 10 : i32, message = "qd,kd->qk"}> : () -> ()
    %cst_37 = arith.constant dense<0.000000e+00> : vector<128x128xf32>
    %50 = tpu.matmul %47, %49, %cst_37 {dimension_numbers = #tpu.dot_dimension_numbers<[1], [1], [0], [0], [0, 0, 1, 0], [], []>} : vector<128x64xbf16>, vector<128x64xbf16>, vector<128x128xf32> -> vector<128x128xf32>
    "tpu.trace_stop"() : () -> ()
    %cst_38 = arith.constant dense<0xFF800000> : vector<128xf32>
    %51 = vector.multi_reduction <maximumf>, %50, %cst_38 [1] : vector<128x128xf32> to vector<128xf32>
    %52 = vector.shape_cast %51 : vector<128xf32> to vector<128x1xf32>
    %53 = vector.broadcast %52 : vector<128x1xf32> to vector<128x128xf32>
    %54 = arith.subf %50, %53 : vector<128x128xf32>
    %55 = math.exp %54 : vector<128x128xf32>
    %cst_39 = arith.constant dense<0.000000e+00> : vector<128xf32>
    %56 = vector.multi_reduction <add>, %55, %cst_39 [1] : vector<128x128xf32> to vector<128xf32>
    %57 = vector.shape_cast %56 : vector<128xf32> to vector<128x1xf32>
    %58 = tpu.reciprocal %57 {approx = true} : vector<128x1xf32> -> vector<128x1xf32>
    %59 = vector.broadcast %58 : vector<128x1xf32> to vector<128x128xf32>
    %60 = arith.mulf %55, %59 : vector<128x128xf32>
    %c2_40 = arith.constant 2 : index
    %c0_41 = arith.constant 0 : index
    %c0_42 = arith.constant 0 : index
    %61 = vector.load %arg10[%c2_40, %c0_41, %c0_42] : memref<4x128x128xf32, #tpu.memory_space<vmem>>, vector<1x128x128xf32>
    %62 = vector.shape_cast %61 : vector<1x128x128xf32> to vector<128x128xf32>
    %63 = vector.shape_cast %60 : vector<128x128xf32> to vector<1x128x128xf32>
    tpu.vector_store %arg10[%c2_40, %c0_41, %c0_42], %63 {strides = array<i32>} : memref<4x128x128xf32, #tpu.memory_space<vmem>>, vector<1x128x128xf32>,
    %64 = arith.truncf %60 : vector<128x128xf32> to vector<128x128xbf16>
    %c2_43 = arith.constant 2 : index
    %c0_44 = arith.constant 0 : index
    %c0_45 = arith.constant 0 : index
    %65 = vector.load %arg3[%c2_43, %c0_44, %c0_45] : memref<4x128x64xbf16, #tpu.memory_space<vmem>>, vector<1x128x64xbf16>
    %66 = vector.shape_cast %65 : vector<1x128x64xbf16> to vector<128x64xbf16>
    %cst_46 = arith.constant dense<0.000000e+00> : vector<128x64xf32>
    %67 = tpu.matmul %64, %66, %cst_46 {dimension_numbers = #tpu.dot_dimension_numbers<[1], [0], [0], [1], [0, 0, 1, 1], [], []>} : vector<128x128xbf16>, vector<128x64xbf16>, vector<128x64xf32> -> vector<128x64xf32>
    %c256 = arith.constant 256 : index
    %c0_47 = arith.constant 0 : index
    %68 = vector.load %arg11[%c256, %c0_47] : memref<512x64xf32, #tpu.memory_space<vmem>>, vector<128x64xf32>
    tpu.vector_store %arg11[%c256, %c0_47], %67 {strides = array<i32>} : memref<512x64xf32, #tpu.memory_space<vmem>>, vector<128x64xf32>,
    %c3 = arith.constant 3 : index
    %c0_48 = arith.constant 0 : index
    %c0_49 = arith.constant 0 : index
    %69 = vector.load %arg1[%c3, %c0_48, %c0_49] : memref<4x128x64xbf16, #tpu.memory_space<vmem>>, vector<1x128x64xbf16>
    %70 = vector.shape_cast %69 : vector<1x128x64xbf16> to vector<128x64xbf16>
    %c3_50 = arith.constant 3 : index
    %c0_51 = arith.constant 0 : index
    %c0_52 = arith.constant 0 : index
    %71 = vector.load %arg2[%c3_50, %c0_51, %c0_52] : memref<4x128x64xbf16, #tpu.memory_space<vmem>>, vector<1x128x64xbf16>
    %72 = vector.shape_cast %71 : vector<1x128x64xbf16> to vector<128x64xbf16>
    "tpu.trace_start"() <{level = 10 : i32, message = "qd,kd->qk"}> : () -> ()
    %cst_53 = arith.constant dense<0.000000e+00> : vector<128x128xf32>
    %73 = tpu.matmul %70, %72, %cst_53 {dimension_numbers = #tpu.dot_dimension_numbers<[1], [1], [0], [0], [0, 0, 1, 0], [], []>} : vector<128x64xbf16>, vector<128x64xbf16>, vector<128x128xf32> -> vector<128x128xf32>
    "tpu.trace_stop"() : () -> ()
    %cst_54 = arith.constant dense<0xFF800000> : vector<128xf32>
    %74 = vector.multi_reduction <maximumf>, %73, %cst_54 [1] : vector<128x128xf32> to vector<128xf32>
    %75 = vector.shape_cast %74 : vector<128xf32> to vector<128x1xf32>
    %76 = vector.broadcast %75 : vector<128x1xf32> to vector<128x128xf32>
    %77 = arith.subf %73, %76 : vector<128x128xf32>
    %78 = math.exp %77 : vector<128x128xf32>
    %cst_55 = arith.constant dense<0.000000e+00> : vector<128xf32>
    %79 = vector.multi_reduction <add>, %78, %cst_55 [1] : vector<128x128xf32> to vector<128xf32>
    %80 = vector.shape_cast %79 : vector<128xf32> to vector<128x1xf32>
    %81 = tpu.reciprocal %80 {approx = true} : vector<128x1xf32> -> vector<128x1xf32>
    %82 = vector.broadcast %81 : vector<128x1xf32> to vector<128x128xf32>
    %83 = arith.mulf %78, %82 : vector<128x128xf32>
    %c3_56 = arith.constant 3 : index
    %c0_57 = arith.constant 0 : index
    %c0_58 = arith.constant 0 : index
    %84 = vector.load %arg10[%c3_56, %c0_57, %c0_58] : memref<4x128x128xf32, #tpu.memory_space<vmem>>, vector<1x128x128xf32>
    %85 = vector.shape_cast %84 : vector<1x128x128xf32> to vector<128x128xf32>
    %86 = vector.shape_cast %83 : vector<128x128xf32> to vector<1x128x128xf32>
    tpu.vector_store %arg10[%c3_56, %c0_57, %c0_58], %86 {strides = array<i32>} : memref<4x128x128xf32, #tpu.memory_space<vmem>>, vector<1x128x128xf32>,
    %87 = arith.truncf %83 : vector<128x128xf32> to vector<128x128xbf16>
    %c3_59 = arith.constant 3 : index
    %c0_60 = arith.constant 0 : index
    %c0_61 = arith.constant 0 : index
    %88 = vector.load %arg3[%c3_59, %c0_60, %c0_61] : memref<4x128x64xbf16, #tpu.memory_space<vmem>>, vector<1x128x64xbf16>
    %89 = vector.shape_cast %88 : vector<1x128x64xbf16> to vector<128x64xbf16>
    %cst_62 = arith.constant dense<0.000000e+00> : vector<128x64xf32>
    %90 = tpu.matmul %87, %89, %cst_62 {dimension_numbers = #tpu.dot_dimension_numbers<[1], [0], [0], [1], [0, 0, 1, 1], [], []>} : vector<128x128xbf16>, vector<128x64xbf16>, vector<128x64xf32> -> vector<128x64xf32>
    %c384 = arith.constant 384 : index
    %c0_63 = arith.constant 0 : index
    %91 = vector.load %arg11[%c384, %c0_63] : memref<512x64xf32, #tpu.memory_space<vmem>>, vector<128x64xf32>
    tpu.vector_store %arg11[%c384, %c0_63], %90 {strides = array<i32>} : memref<512x64xf32, #tpu.memory_space<vmem>>, vector<128x64xf32>,
    %c0_64 = arith.constant 0 : index
    %c0_65 = arith.constant 0 : index
    %92 = vector.load %arg4[%c0_64, %c0_65] : memref<128x256xf32, #tpu.memory_space<vmem>>, vector<128x256xf32>
    %c0_66 = arith.constant 0 : index
    %c0_67 = arith.constant 0 : index
    %93 = vector.load %arg6[%c0_66, %c0_67] : memref<1x256xf32, #tpu.memory_space<vmem>>, vector<1x256xf32>
    %94 = vector.broadcast %93 : vector<1x256xf32> to vector<128x256xf32>
    %95 = arith.addf %92, %94 : vector<128x256xf32>
    %c0_68 = arith.constant 0 : index
    %c0_69 = arith.constant 0 : index
    %96 = tpu.strided_load %arg11[%c0_68, %c0_69] {strides = array<i32: 4, 1>} : memref<512x64xf32, #tpu.memory_space<vmem>>, vector<128x64xf32>
    %97 = arith.truncf %96 : vector<128x64xf32> to vector<128x64xbf16>
    %c0_70 = arith.constant 0 : index
    %c0_71 = arith.constant 0 : index
    %98 = vector.load %arg5[%c0_70, %c0_71] : memref<256x256xbf16, #tpu.memory_space<vmem>>, vector<64x256xbf16>
    %cst_72 = arith.constant dense<0.000000e+00> : vector<128x256xf32>
    %99 = tpu.matmul %97, %98, %cst_72 {dimension_numbers = #tpu.dot_dimension_numbers<[1], [0], [0], [1], [0, 0, 1, 1], [], []>} : vector<128x64xbf16>, vector<64x256xbf16>, vector<128x256xf32> -> vector<128x256xf32>
    %100 = arith.addf %95, %99 : vector<128x256xf32>
    %c1_73 = arith.constant 1 : index
    %c0_74 = arith.constant 0 : index
    %101 = tpu.strided_load %arg11[%c1_73, %c0_74] {strides = array<i32: 4, 1>} : memref<512x64xf32, #tpu.memory_space<vmem>>, vector<128x64xf32>
    %102 = arith.truncf %101 : vector<128x64xf32> to vector<128x64xbf16>
    %c64 = arith.constant 64 : index
    %c0_75 = arith.constant 0 : index
    %103 = vector.load %arg5[%c64, %c0_75] : memref<256x256xbf16, #tpu.memory_space<vmem>>, vector<64x256xbf16>
    %cst_76 = arith.constant dense<0.000000e+00> : vector<128x256xf32>
    %104 = tpu.matmul %102, %103, %cst_76 {dimension_numbers = #tpu.dot_dimension_numbers<[1], [0], [0], [1], [0, 0, 1, 1], [], []>} : vector<128x64xbf16>, vector<64x256xbf16>, vector<128x256xf32> -> vector<128x256xf32>
    %105 = arith.addf %100, %104 : vector<128x256xf32>
    %c2_77 = arith.constant 2 : index
    %c0_78 = arith.constant 0 : index
    %106 = tpu.strided_load %arg11[%c2_77, %c0_78] {strides = array<i32: 4, 1>} : memref<512x64xf32, #tpu.memory_space<vmem>>, vector<128x64xf32>
    %107 = arith.truncf %106 : vector<128x64xf32> to vector<128x64xbf16>
    %c128_79 = arith.constant 128 : index
    %c0_80 = arith.constant 0 : index
    %108 = vector.load %arg5[%c128_79, %c0_80] : memref<256x256xbf16, #tpu.memory_space<vmem>>, vector<64x256xbf16>
    %cst_81 = arith.constant dense<0.000000e+00> : vector<128x256xf32>
    %109 = tpu.matmul %107, %108, %cst_81 {dimension_numbers = #tpu.dot_dimension_numbers<[1], [0], [0], [1], [0, 0, 1, 1], [], []>} : vector<128x64xbf16>, vector<64x256xbf16>, vector<128x256xf32> -> vector<128x256xf32>
    %110 = arith.addf %105, %109 : vector<128x256xf32>
    %c3_82 = arith.constant 3 : index
    %c0_83 = arith.constant 0 : index
    %111 = tpu.strided_load %arg11[%c3_82, %c0_83] {strides = array<i32: 4, 1>} : memref<512x64xf32, #tpu.memory_space<vmem>>, vector<128x64xf32>
    %112 = arith.truncf %111 : vector<128x64xf32> to vector<128x64xbf16>
    %c192 = arith.constant 192 : index
    %c0_84 = arith.constant 0 : index
    %113 = vector.load %arg5[%c192, %c0_84] : memref<256x256xbf16, #tpu.memory_space<vmem>>, vector<64x256xbf16>
    %cst_85 = arith.constant dense<0.000000e+00> : vector<128x256xf32>
    %114 = tpu.matmul %112, %113, %cst_85 {dimension_numbers = #tpu.dot_dimension_numbers<[1], [0], [0], [1], [0, 0, 1, 1], [], []>} : vector<128x64xbf16>, vector<64x256xbf16>, vector<128x256xf32> -> vector<128x256xf32>
    %115 = arith.addf %110, %114 : vector<128x256xf32>
    %cst_86 = arith.constant dense<0.000000e+00> : vector<128xf32>
    %116 = vector.multi_reduction <add>, %115, %cst_86 [1] : vector<128x256xf32> to vector<128xf32>
    %117 = vector.shape_cast %116 : vector<128xf32> to vector<128x1xf32>
    %cst_87 = arith.constant 2.560000e+02 : f32
    %118 = vector.broadcast %cst_87 : f32 to vector<128x1xf32>
    %119 = arith.divf %117, %118 : vector<128x1xf32>
    %120 = vector.broadcast %119 : vector<128x1xf32> to vector<128x256xf32>
    %121 = arith.subf %115, %120 : vector<128x256xf32>
    %122 = arith.mulf %121, %121 : vector<128x256xf32>
    %cst_88 = arith.constant dense<0.000000e+00> : vector<128xf32>
    %123 = vector.multi_reduction <add>, %122, %cst_88 [1] : vector<128x256xf32> to vector<128xf32>
    %124 = vector.shape_cast %123 : vector<128xf32> to vector<128x1xf32>
    %cst_89 = arith.constant 2.560000e+02 : f32
    %125 = vector.broadcast %cst_89 : f32 to vector<128x1xf32>
    %126 = arith.divf %124, %125 : vector<128x1xf32>
    %cst_90 = arith.constant 9.99999974E-6 : f32
    %127 = vector.broadcast %cst_90 : f32 to vector<128x1xf32>
    %128 = arith.addf %126, %127 : vector<128x1xf32>
    %129 = math.rsqrt %128 : vector<128x1xf32>
    %130 = vector.broadcast %129 : vector<128x1xf32> to vector<128x256xf32>
    %131 = arith.mulf %121, %130 : vector<128x256xf32>
    %c0_91 = arith.constant 0 : index
    %c0_92 = arith.constant 0 : index
    %132 = vector.load %arg7[%c0_91, %c0_92] : memref<1x256xf32, #tpu.memory_space<vmem>>, vector<1x256xf32>
    %133 = vector.broadcast %132 : vector<1x256xf32> to vector<128x256xf32>
    %134 = arith.mulf %131, %133 : vector<128x256xf32>
    %c0_93 = arith.constant 0 : index
    %c0_94 = arith.constant 0 : index
    %135 = vector.load %arg8[%c0_93, %c0_94] : memref<1x256xf32, #tpu.memory_space<vmem>>, vector<1x256xf32>
    %136 = vector.broadcast %135 : vector<1x256xf32> to vector<128x256xf32>
    %137 = arith.addf %134, %136 : vector<128x256xf32>
    %c0_95 = arith.constant 0 : index
    %c0_96 = arith.constant 0 : index
    %138 = vector.load %arg9[%c0_95, %c0_96] : memref<128x256xf32, #tpu.memory_space<vmem>>, vector<128x256xf32>
    tpu.vector_store %arg9[%c0_95, %c0_96], %137 {strides = array<i32>} : memref<128x256xf32, #tpu.memory_space<vmem>>, vector<128x256xf32>,
    return
  }
  func.func @transform_0(%arg0: i32) -> (i32, i32, i32) {
    %c0_i32 = arith.constant 0 : i32
    %c0_i32_0 = arith.constant 0 : i32
    %c0_i32_1 = arith.constant 0 : i32
    return %arg0, %c0_i32, %c0_i32_0 : i32, i32, i32
  }
  func.func @transform_1(%arg0: i32) -> (i32, i32, i32) {
    %c0_i32 = arith.constant 0 : i32
    %c0_i32_0 = arith.constant 0 : i32
    %c0_i32_1 = arith.constant 0 : i32
    return %arg0, %c0_i32, %c0_i32_0 : i32, i32, i32
  }
  func.func @transform_2(%arg0: i32) -> (i32, i32, i32) {
    %c0_i32 = arith.constant 0 : i32
    %c0_i32_0 = arith.constant 0 : i32
    %c0_i32_1 = arith.constant 0 : i32
    return %arg0, %c0_i32, %c0_i32_0 : i32, i32, i32
  }
  func.func @transform_3(%arg0: i32) -> (i32, i32) {
    %c0_i32 = arith.constant 0 : i32
    %c0_i32_0 = arith.constant 0 : i32
    return %arg0, %c0_i32 : i32, i32
  }
  func.func @transform_4(%arg0: i32) -> (i32, i32) {
    %c0_i32 = arith.constant 0 : i32
    %c0_i32_0 = arith.constant 0 : i32
    %c0_i32_1 = arith.constant 0 : i32
    return %c0_i32, %c0_i32_0 : i32, i32
  }
  func.func @transform_5(%arg0: i32) -> (i32, i32) {
    %c0_i32 = arith.constant 0 : i32
    %c0_i32_0 = arith.constant 0 : i32
    %c0_i32_1 = arith.constant 0 : i32
    return %c0_i32, %c0_i32_0 : i32, i32
  }
  func.func @transform_6(%arg0: i32) -> (i32, i32) {
    %c0_i32 = arith.constant 0 : i32
    %c0_i32_0 = arith.constant 0 : i32
    %c0_i32_1 = arith.constant 0 : i32
    return %c0_i32, %c0_i32_0 : i32, i32
  }
  func.func @transform_7(%arg0: i32) -> (i32, i32) {
    %c0_i32 = arith.constant 0 : i32
    %c0_i32_0 = arith.constant 0 : i32
    %c0_i32_1 = arith.constant 0 : i32
    return %c0_i32, %c0_i32_0 : i32, i32
  }
  func.func @transform_8(%arg0: i32) -> (i32, i32) {
    %c0_i32 = arith.constant 0 : i32
    %c0_i32_0 = arith.constant 0 : i32
    return %arg0, %c0_i32 : i32, i32
  }
  func.func @transform_9(%arg0: i32) -> (i32, i32, i32) {
    %c0_i32 = arith.constant 0 : i32
    %c0_i32_0 = arith.constant 0 : i32
    %c0_i32_1 = arith.constant 0 : i32
    return %arg0, %c0_i32, %c0_i32_0 : i32, i32, i32
  }
}

module attributes {stable_mosaic.version = 11 : i64} {
  func.func @_qkv_self_kernel(%arg0: i32, %arg1: memref<128x256xf32, #tpu.memory_space<vmem>>, %arg2: memref<256x768xbf16, #tpu.memory_space<vmem>>, %arg3: memref<1x768xf32, #tpu.memory_space<vmem>>, %arg4: memref<128x256xbf16, #tpu.memory_space<vmem>>, %arg5: memref<128x256xbf16, #tpu.memory_space<vmem>>, %arg6: memref<128x256xbf16, #tpu.memory_space<vmem>>) attributes {dimension_semantics = [#tpu.dimension_semantics<parallel>], iteration_bounds = array<i64: 4>, scalar_prefetch = 0 : i64, scratch_operands = 0 : i64, tpu.core_type = #tpu.core_type<tc>, window_params = [{transform_indices = @transform_0, window_bounds = array<i64: 128, 256>}, {pipeline_mode = #tpu.pipeline_mode<synchronous>, transform_indices = @transform_1, window_bounds = array<i64: 256, 768>}, {pipeline_mode = #tpu.pipeline_mode<synchronous>, transform_indices = @transform_2, window_bounds = array<i64: 1, 768>}, {transform_indices = @transform_3, window_bounds = array<i64: 128, 256>}, {transform_indices = @transform_4, window_bounds = array<i64: 128, 256>}, {transform_indices = @transform_5, window_bounds = array<i64: 128, 256>}]} {
    %c0 = arith.constant 0 : index
    %c0_0 = arith.constant 0 : index
    %0 = vector.load %arg1[%c0, %c0_0] : memref<128x256xf32, #tpu.memory_space<vmem>>, vector<128x256xf32>
    %1 = arith.truncf %0 : vector<128x256xf32> to vector<128x256xbf16>
    %c0_1 = arith.constant 0 : index
    %c0_2 = arith.constant 0 : index
    %2 = vector.load %arg2[%c0_1, %c0_2] : memref<256x768xbf16, #tpu.memory_space<vmem>>, vector<256x256xbf16>
    %cst = arith.constant dense<0.000000e+00> : vector<128x256xf32>
    %3 = tpu.matmul %1, %2, %cst {dimension_numbers = #tpu.dot_dimension_numbers<[1], [0], [0], [1], [0, 0, 1, 1], [], []>} : vector<128x256xbf16>, vector<256x256xbf16>, vector<128x256xf32> -> vector<128x256xf32>
    %c0_3 = arith.constant 0 : index
    %c0_4 = arith.constant 0 : index
    %4 = vector.load %arg3[%c0_3, %c0_4] : memref<1x768xf32, #tpu.memory_space<vmem>>, vector<1x256xf32>
    %5 = vector.broadcast %4 : vector<1x256xf32> to vector<128x256xf32>
    %6 = arith.addf %3, %5 : vector<128x256xf32>
    %7 = arith.truncf %6 : vector<128x256xf32> to vector<128x256xbf16>
    %c0_5 = arith.constant 0 : index
    %c0_6 = arith.constant 0 : index
    %8 = vector.load %arg4[%c0_5, %c0_6] : memref<128x256xbf16, #tpu.memory_space<vmem>>, vector<128x256xbf16>
    tpu.vector_store %arg4[%c0_5, %c0_6], %7 {strides = array<i32>} : memref<128x256xbf16, #tpu.memory_space<vmem>>, vector<128x256xbf16>,
    %c0_7 = arith.constant 0 : index
    %c256 = arith.constant 256 : index
    %9 = vector.load %arg2[%c0_7, %c256] : memref<256x768xbf16, #tpu.memory_space<vmem>>, vector<256x256xbf16>
    %cst_8 = arith.constant dense<0.000000e+00> : vector<128x256xf32>
    %10 = tpu.matmul %1, %9, %cst_8 {dimension_numbers = #tpu.dot_dimension_numbers<[1], [0], [0], [1], [0, 0, 1, 1], [], []>} : vector<128x256xbf16>, vector<256x256xbf16>, vector<128x256xf32> -> vector<128x256xf32>
    %c0_9 = arith.constant 0 : index
    %c256_10 = arith.constant 256 : index
    %11 = vector.load %arg3[%c0_9, %c256_10] : memref<1x768xf32, #tpu.memory_space<vmem>>, vector<1x256xf32>
    %12 = vector.broadcast %11 : vector<1x256xf32> to vector<128x256xf32>
    %13 = arith.addf %10, %12 : vector<128x256xf32>
    %14 = arith.truncf %13 : vector<128x256xf32> to vector<128x256xbf16>
    %c0_11 = arith.constant 0 : index
    %c0_12 = arith.constant 0 : index
    %15 = vector.load %arg5[%c0_11, %c0_12] : memref<128x256xbf16, #tpu.memory_space<vmem>>, vector<128x256xbf16>
    tpu.vector_store %arg5[%c0_11, %c0_12], %14 {strides = array<i32>} : memref<128x256xbf16, #tpu.memory_space<vmem>>, vector<128x256xbf16>,
    %c0_13 = arith.constant 0 : index
    %c512 = arith.constant 512 : index
    %16 = vector.load %arg2[%c0_13, %c512] : memref<256x768xbf16, #tpu.memory_space<vmem>>, vector<256x256xbf16>
    %cst_14 = arith.constant dense<0.000000e+00> : vector<128x256xf32>
    %17 = tpu.matmul %1, %16, %cst_14 {dimension_numbers = #tpu.dot_dimension_numbers<[1], [0], [0], [1], [0, 0, 1, 1], [], []>} : vector<128x256xbf16>, vector<256x256xbf16>, vector<128x256xf32> -> vector<128x256xf32>
    %c0_15 = arith.constant 0 : index
    %c512_16 = arith.constant 512 : index
    %18 = vector.load %arg3[%c0_15, %c512_16] : memref<1x768xf32, #tpu.memory_space<vmem>>, vector<1x256xf32>
    %19 = vector.broadcast %18 : vector<1x256xf32> to vector<128x256xf32>
    %20 = arith.addf %17, %19 : vector<128x256xf32>
    %21 = arith.truncf %20 : vector<128x256xf32> to vector<128x256xbf16>
    %c0_17 = arith.constant 0 : index
    %c0_18 = arith.constant 0 : index
    %22 = vector.load %arg6[%c0_17, %c0_18] : memref<128x256xbf16, #tpu.memory_space<vmem>>, vector<128x256xbf16>
    tpu.vector_store %arg6[%c0_17, %c0_18], %21 {strides = array<i32>} : memref<128x256xbf16, #tpu.memory_space<vmem>>, vector<128x256xbf16>,
    return
  }
  func.func @transform_0(%arg0: i32) -> (i32, i32) {
    %c0_i32 = arith.constant 0 : i32
    %c0_i32_0 = arith.constant 0 : i32
    return %arg0, %c0_i32 : i32, i32
  }
  func.func @transform_1(%arg0: i32) -> (i32, i32) {
    %c0_i32 = arith.constant 0 : i32
    %c0_i32_0 = arith.constant 0 : i32
    %c0_i32_1 = arith.constant 0 : i32
    return %c0_i32, %c0_i32_0 : i32, i32
  }
  func.func @transform_2(%arg0: i32) -> (i32, i32) {
    %c0_i32 = arith.constant 0 : i32
    %c0_i32_0 = arith.constant 0 : i32
    %c0_i32_1 = arith.constant 0 : i32
    return %c0_i32, %c0_i32_0 : i32, i32
  }
  func.func @transform_3(%arg0: i32) -> (i32, i32) {
    %c0_i32 = arith.constant 0 : i32
    %c0_i32_0 = arith.constant 0 : i32
    return %arg0, %c0_i32 : i32, i32
  }
  func.func @transform_4(%arg0: i32) -> (i32, i32) {
    %c0_i32 = arith.constant 0 : i32
    %c0_i32_0 = arith.constant 0 : i32
    return %arg0, %c0_i32 : i32, i32
  }
  func.func @transform_5(%arg0: i32) -> (i32, i32) {
    %c0_i32 = arith.constant 0 : i32
    %c0_i32_0 = arith.constant 0 : i32
    return %arg0, %c0_i32 : i32, i32
  }
}

</mosaic_0001>

<bundles_post_ra>
// kernel: _mha_forward.2
= control target key start
LH: loop header
LB: loop body
LE: loop exit
PB: predicated region body
PF: predicated region fallthrough
CT: control target
= control target key end

     0   :  { %11 = vsyncpa [#allocation3], 0  ;;  %s2777_s0 = inlined_call_operand.hbm [shape: f32[512,256], index: 0, kind: input, shape index: {}]   ;;  %s2778_s1 = inlined_call_operand.hbm [shape: bf16[256,768], index: 1, kind: input, shape index: {}]   ;;  %s2779_s2 = inlined_call_operand.vmem [shape: f32[1,768], index: 2, kind: input, shape index: {}]   ;;  %s2780_s3 = inlined_call_operand.vmem [shape: bf16[512,256], index: 3, kind: output, shape index: {0}]   ;;  %s2781_s4 = inlined_call_operand.vmem [shape: bf16[512,256], index: 4, kind: output, shape index: {1}]   ;;  %s2782_s5 = inlined_call_operand.vmem [shape: bf16[512,256], index: 5, kind: output, shape index: {2}]  }
   0x1   :  { %13 = vsyncpa [#allocation3 + $0x1], 0 }
   0x2   :  { %14 = vsyncpa [#allocation5], 0  ;;  %s2362_s18 = smov 0   ;;  %s2364_s19 = smov 0  }
   0x3   :  { %s2366_s20 = smov 0   ;;  %s2368_s21 = smov 0  }
   0x4 LB: > { %s1782_s22 = sadd.s32 4294967295, %s2324_s21   ;;  %p40_p0 = scmp.ne.s32.totalorder %s2316_s19, %s2312_s18  ;;  %s2324_s21 = sphi %s2368_s21, %s2798_s21   ;;  %s2320_s20 = sphi %s2366_s20, %s2797_s20   ;;  %s2316_s19 = sphi %s2364_s19, %s2796_s19   ;;  %s2312_s18 = sphi %s2362_s18, %s2795_s18  }
   0x5   : > { %p2384_p1 = scmp.eq.s32.totalorder %s1782_s22, 0  ;;  %p1784_p2 = scmp.ge.s32.totalorder %s2324_s21, 1 }
   0x6   : > { %p171_p3 = scmp.lt.s32.totalorder %s2324_s21, 5  ;;  %s2326_s26 = smov [#allocation4]  }
   0x7   : > { %s2787_s23 = scalar_select %p2384_p1, 1, 0 }
   0x8   : > { %p2392_p4 = por %p2384_p1, %p40_p0  ;;  %p2396_p5 = pnand %p1784_p2, %p171_p3 }
   0x9   : > { %s183_s27 = sshll.u32 %s2326_s26, 4  ;;  %s2409_s29 = sadd.s32 1, %s2324_s21   ;;  %s184_s27 = int_to_ptr.vmem [resolvable:$true] %s183_s27 }
   0xa   : > { %s2788_s24 = scalar_select %p2392_p4, 1, 0 }
   0xb   : > { %s2789_s25 = scalar_select %p2396_p5, 1, 0 }
   0xc   : > { %p2040_p6 = pneg %p2396_p5  ;;  %s27_s30 = sadd.s32 1, %s2320_s20 }
   0xd   : > { %s24_s6 = ssub.s32 %s2324_s21, %s2409_s29  ;;  %s2243_s7 = scalar_lea.vmem %s184_s27, 12288 }
   0xe   : > { %p2404_p7 = pnand %p2040_p6, %p2384_p1  ;;  %p2244_p9 = scmp.ne.s32.totalorder %s184_s27, %s2243_s7 }
   0xf   : > { %p2251_p12 = scmp.lt.s32.totalorder %s184_s27, %s184_s27  ;;  %p2252_p13 = scmp.lt.s32.totalorder %s2243_s7, %s2243_s7 }
  0x10   : > { %p2234_p8 = pneg %p2404_p7 }
  0x11   : > { %p2253_p0 = por %p2252_p13, %p2251_p12 }
  0x12   : > { %p2246_p10 = pnand %p2244_p9, %p2234_p8 }
  0x14   : > { %p2247_p11 = pneg %p2246_p10 }
  0x16   : > { %p2254_p2 = pnand %p2253_p0, %p2247_p11 }
  0x18   : > { %2257 = shalt.err (!%p2254_p2)
}
  0x19   : > { %s2327_s8 = smov 384   ;;  %s2328_s9 = smov 24  }
  0x1a   : > { %2043 = dma.hbm_to_vmem [thread:$0]  (!%p2404_p7), %s2778_s1, 12288, %s184_s27, [#allocation5], %s2327_s8, %s2327_s8, %s2328_s9  }
  0x1b   : > { %p25_p3 = scmp.eq.s32.totalorder %s24_s6, 0  ;;  %p34_p6 = scmp.ne.s32.totalorder %s2320_s20, %s2316_s19 }
  0x1c   : > { %p35_p8 = scmp.eq.s32.totalorder %s2324_s21, 0  ;;  %p2049_p9 = scmp.lt.s32.totalorder %s2324_s21, 4 }
  0x1d   : > { %s2426_s12 = scalar_select %p25_p3, %s2320_s20, %s27_s30  }
  0x1e   : > { %p36_p10 = por %p35_p8, %p34_p6  ;;  %s200_s13 = sand.u32 1, %s2320_s20  }
  0x1f   : > { %s1787_s14 = sshll.u32 %s200_s13, 8  ;;  %s1950_s15 = sshll.u32 %s2324_s21, 12 }
  0x20   : > { %s2433_s18 = scalar_lea.hbm %s2777_s0, %s1950_s15  ;;  %s204_s26 = scalar_lea.vmem [#allocation2], %s1787_s14 }
  0x21   : > { %s212_s27 = sshll.u32 %s204_s26, 4  ;;  %p2437_p7 = pnand %p2049_p9, %p36_p10  ;;  %s2435_s27 = int_to_ptr.vmem [resolvable:$true] %s212_s27 }
  0x22   : > { %s2441_s30 = scalar_lea.sflag [#allocation3], %s200_s13  ;;  %s2258_s6 = scalar_lea.hbm %s2433_s18, 4096 }
  0x23   : > { %p2259_p11 = scmp.ne.s32.totalorder %s2433_s18, %s2258_s6  ;;  %p2260_p12 = pneg %p2437_p7 }
  0x24   : > { %s2263_s9 = scalar_lea.hbm %s2777_s0, 16384  ;;  %p2264_p2 = scmp.lt.s32.totalorder %s2433_s18, %s2777_s0 }
  0x25   : > { %p2261_p13 = pnand %p2260_p12, %p2259_p11  ;;  %p2265_p3 = scmp.lt.s32.totalorder %s2263_s9, %s2258_s6 }
  0x27   : > { %p2262_p0 = pneg %p2261_p13  ;;  %p2266_p6 = por %p2265_p3, %p2264_p2 }
  0x29   : > { %p2267_p8 = pnand %p2266_p6, %p2262_p0 }
  0x2b   : > { %2270 = shalt.err (!%p2267_p8)
}
  0x2c   : > { %s2271_s13 = scalar_lea.vmem %s2435_s27, 4096  ;;  %s2329_s14 = smov [#allocation2]  }
  0x2d   : > { %p2272_p9 = scmp.ne.s32.totalorder %s2435_s27, %s2271_s13  ;;  %s2276_s15 = sshll.u32 %s2329_s14, 4  ;;  %s2277_s15 = int_to_ptr.vmem [resolvable:$false] %s2276_s15 }
  0x2e   : > { %s2278_s16 = scalar_lea.vmem %s2277_s15, 8192  ;;  %p2279_p13 = scmp.lt.s32.totalorder %s2435_s27, %s2277_s15 }
  0x2f   : > { %p2274_p10 = pnand %p2272_p9, %p2260_p12  ;;  %p2280_p1 = scmp.lt.s32.totalorder %s2278_s16, %s2271_s13 }
  0x31   : > { %p2275_p11 = pneg %p2274_p10  ;;  %p2281_p4 = por %p2280_p1, %p2279_p13 }
  0x33   : > { %p2282_p5 = pnand %p2281_p4, %p2275_p11 }
  0x35   : > { %2285 = shalt.err (!%p2282_p5)
}
  0x36   : > { %s2330_s17 = smov 256   ;;  %s2331_s26 = smov 16  }
  0x37   : > { %2047 = dma.hbm_to_vmem [thread:$0]  (!%p2437_p7), %s2433_s18, 4096, %s2435_s27, %s2441_s30, %s2330_s17, %s2330_s17, %s2331_s26  }
  0x38   : > { %p2792_p12 = scmp.ne.s32.totalorder %s2789_s25, 0 }
  0x39   : > { %s226_s6 = sand.u32 (!%p2792_p12), 1, %s2316_s19   ;;  %p2793_p1 = scmp.ne.s32.totalorder (!%p2792_p12), %s2788_s24, 0 }
  0x3a   : > { %224 = sbr.rel (%p2792_p12) target bundleno = 425 (0x1a9), region = 32  ;;  %s1792_s7 = sshll.u32 (!%p2792_p12), %s226_s6, 8 }
  0x3b   : > { %s227_s8 = scalar_lea.sflag (!%p2792_p12), [#allocation3], %s226_s6  ;;  %s2465_s9 = scalar_lea.vmem (!%p2792_p12), [#allocation2], %s1792_s7 }
  0x3f   : > { %2303 = dma.done.wait (%p2793_p1), %s227_s8, 4096  }
  0x40   : > { %2305 = vsyncadd (%p2793_p1), %s227_s8, 4294963200  ;;  %p2794_p4 = scmp.ne.s32.totalorder %s2787_s23, 0 }
  0x42   : > { %2307 = dma.done.wait (%p2794_p4), [#allocation5], 12288  }
  0x43   : > { %2309 = vsyncadd (%p2794_p4), [#allocation5], 4294955008  ;;  %v2088_v0 = vld [vmem:[#allocation4 + $0x154] ss:$24 sps:$4 sm:$0xff]   ;;  %v2092_v2 = vld [vmem:[#allocation4 + $0x150] ss:$24 sps:$4 sm:$0xff]  }
  0x44   : > { %v2090_v1 = vld [vmem:[#allocation4 + $0x15c] ss:$24 sps:$4 sm:$0xff]   ;;  %548 = vmatprep.subr.bf16.mxu0 %v2088_v0  ;;  %v2093_v3 = vld [vmem:[#allocation4 + $0x158] ss:$24 sps:$4 sm:$0xff]   ;;  %v2096_v5 = vld [vmem:[#allocation4 + $0x12c] ss:$24 sps:$4 sm:$0xff]  }
  0x45   : > { %977 = vmatprep.subr.bf16.mxu1 %v2090_v1  ;;  %v2094_v4 = vld [vmem:[#allocation4 + $0x124] ss:$24 sps:$4 sm:$0xff]   ;;  %549 = vmatpush1.bf16.msra.mxu0 %v2092_v2  ;;  %v2098_v6 = vld [vmem:[#allocation4 + $0x120] ss:$24 sps:$4 sm:$0xff]   ;;  %v2100_v8 = vld [vmem:[#allocation4 + $0xf4] ss:$24 sps:$4 sm:$0xff]  }
  0x46   : > { %978 = vmatpush1.bf16.msra.mxu1 %v2093_v3  ;;  %550 = vmatprep.subr.bf16.mxu0 %v2094_v4  ;;  %v2099_v7 = vld [vmem:[#allocation4 + $0x128] ss:$24 sps:$4 sm:$0xff]   ;;  %v2102_v9 = vld [vmem:[#allocation4 + $0xfc] ss:$24 sps:$4 sm:$0xff]   ;;  %v2105_v11 = vld [vmem:[#allocation4 + $0xf8] ss:$24 sps:$4 sm:$0xff]  }
  0x47   : > { %979 = vmatprep.subr.bf16.mxu1 %v2096_v5  ;;  %v2104_v10 = vld [vmem:[#allocation4 + $0xf0] ss:$24 sps:$4 sm:$0xff]   ;;  %v2106_v12 = vld [vmem:[#allocation4 + $0xc4] ss:$24 sps:$4 sm:$0xff]   ;;  %v2110_v14 = vld [vmem:[#allocation4 + $0xc0] ss:$24 sps:$4 sm:$0xff]  }
  0x48   : > { %v2108_v13 = vld [vmem:[#allocation4 + $0xcc] ss:$24 sps:$4 sm:$0xff]   ;;  %v2111_v15 = vld [vmem:[#allocation4 + $0xc8] ss:$24 sps:$4 sm:$0xff]   ;;  %v2114_v17 = vld [vmem:[#allocation4 + $0x9c] ss:$24 sps:$4 sm:$0xff]  }
  0x49   : > { %551 = vmatpush1.bf16.msra.mxu0 %v2098_v6  ;;  %v2112_v16 = vld [vmem:[#allocation4 + $0x94] ss:$24 sps:$4 sm:$0xff]   ;;  %v2116_v18 = vld [vmem:[#allocation4 + $0x90] ss:$24 sps:$4 sm:$0xff]   ;;  %v2118_v20 = vld [vmem:[#allocation4 + $0x64] ss:$24 sps:$4 sm:$0xff]  }
  0x4a   : > { %980 = vmatpush1.bf16.msra.mxu1 %v2099_v7  ;;  %552 = vmatprep.subr.bf16.mxu0 %v2100_v8  ;;  %v2117_v19 = vld [vmem:[#allocation4 + $0x98] ss:$24 sps:$4 sm:$0xff]   ;;  %v2120_v21 = vld [vmem:[#allocation4 + $0x6c] ss:$24 sps:$4 sm:$0xff]   ;;  %v2123_v23 = vld [vmem:[#allocation4 + $0x68] ss:$24 sps:$4 sm:$0xff]  }
  0x4b   : > { %981 = vmatprep.subr.bf16.mxu1 %v2102_v9  ;;  %v2122_v22 = vld [vmem:[#allocation4 + $0x60] ss:$24 sps:$4 sm:$0xff]   ;;  %v2124_v24 = vld [vmem:[#allocation4 + $0x34] ss:$24 sps:$4 sm:$0xff]   ;;  %v2128_v26 = vld [vmem:[#allocation4 + $0x30] ss:$24 sps:$4 sm:$0xff]  }
  0x4c   : > { %v2126_v25 = vld [vmem:[#allocation4 + $0x3c] ss:$24 sps:$4 sm:$0xff]   ;;  %v2129_v27 = vld [vmem:[#allocation4 + $0x38] ss:$24 sps:$4 sm:$0xff]   ;;  %v2132_v29 = vld [vmem:[#allocation4 + $0xc] ss:$24 sps:$4 sm:$0xff]  }
  0x4d   : > { %553 = vmatpush1.bf16.msra.mxu0 %v2104_v10  ;;  %v2130_v28 = vld [vmem:[#allocation4 + $0x4] ss:$24 sps:$4 sm:$0xff]   ;;  %v2134_v30 = vld [vmem:[#allocation4] ss:$24 sps:$4 sm:$0xff]   ;;  %v2136_v32 = vld [vmem:[#allocation4 + $0x2d4] ss:$24 sps:$4 sm:$0xff]  }
  0x4e   : > { %982 = vmatpush1.bf16.msra.mxu1 %v2105_v11  ;;  %554 = vmatprep.subr.bf16.mxu0 %v2106_v12  ;;  %v2135_v31 = vld [vmem:[#allocation4 + $0x8] ss:$24 sps:$4 sm:$0xff]   ;;  %v2138_v33 = vld [vmem:[#allocation4 + $0x2dc] ss:$24 sps:$4 sm:$0xff]   ;;  %v2141_v35 = vld [vmem:[#allocation4 + $0x2d8] ss:$24 sps:$4 sm:$0xff]  }
  0x4f   : > { %983 = vmatprep.subr.bf16.mxu1 %v2108_v13  ;;  %v2140_v34 = vld [vmem:[#allocation4 + $0x2d0] ss:$24 sps:$4 sm:$0xff]   ;;  %v2142_v36 = vld [vmem:[#allocation4 + $0x2a4] ss:$24 sps:$4 sm:$0xff]   ;;  %v2146_v38 = vld [vmem:[#allocation4 + $0x2a0] ss:$24 sps:$4 sm:$0xff]  }
  0x50   : > { %v2144_v37 = vld [vmem:[#allocation4 + $0x2ac] ss:$24 sps:$4 sm:$0xff]   ;;  %v2147_v39 = vld [vmem:[#allocation4 + $0x2a8] ss:$24 sps:$4 sm:$0xff]   ;;  %v2150_v41 = vld [vmem:[#allocation4 + $0x27c] ss:$24 sps:$4 sm:$0xff]  }
  0x51   : > { %555 = vmatpush1.bf16.msra.mxu0 %v2110_v14  ;;  %v2148_v40 = vld [vmem:[#allocation4 + $0x274] ss:$24 sps:$4 sm:$0xff]   ;;  %v2152_v42 = vld [vmem:[#allocation4 + $0x270] ss:$24 sps:$4 sm:$0xff]   ;;  %v2154_v44 = vld [vmem:[#allocation4 + $0x244] ss:$24 sps:$4 sm:$0xff]  }
  0x52   : > { %984 = vmatpush1.bf16.msra.mxu1 %v2111_v15  ;;  %556 = vmatprep.subr.bf16.mxu0 %v2112_v16  ;;  %v2153_v43 = vld [vmem:[#allocation4 + $0x278] ss:$24 sps:$4 sm:$0xff]   ;;  %v2156_v45 = vld [vmem:[#allocation4 + $0x24c] ss:$24 sps:$4 sm:$0xff]   ;;  %v2159_v48 = vld [vmem:[#allocation4 + $0x248] ss:$24 sps:$4 sm:$0xff]  }
  0x53   : > { %985 = vmatprep.subr.bf16.mxu1 %v2114_v17  ;;  %v297_v46 = vld [vmem:[%s2465_s9 + $0x8] sm:$0xff]  ;;  %v2158_v47 = vld [vmem:[#allocation4 + $0x240] ss:$24 sps:$4 sm:$0xff]   ;;  %v2162_v52 = vld [vmem:[#allocation4 + $0x21c] ss:$24 sps:$4 sm:$0xff]   ;;  %s1794_s23 = sshll.u32 %s1782_s22, 4 }
  0x54   : > { %v299_v49 = vld [vmem:[%s2465_s9 + $0x18] sm:$0xff]  ;;  %v2160_v50 = vld [vmem:[#allocation4 + $0x214] ss:$24 sps:$4 sm:$0xff]   ;;  %v2164_v53 = vld [vmem:[#allocation4 + $0x210] ss:$24 sps:$4 sm:$0xff]   ;;  %p276_p5 = scmp.lt.s32.totalorder %s1794_s23, 63 }
  0x55   : > { %557 = vmatpush1.bf16.msra.mxu0 %v2116_v18  ;;  %v2477_v51 = vpack.c.bf16 %v299_v49, %v297_v46  ;;  %v2165_v54 = vld [vmem:[#allocation4 + $0x218] ss:$24 sps:$4 sm:$0xff]   ;;  %v2166_v55 = vld [vmem:[#allocation4 + $0x1e4] ss:$24 sps:$4 sm:$0xff]   ;;  %v2171_v58 = vld [vmem:[#allocation4 + $0x1e8] ss:$24 sps:$4 sm:$0xff]  }
  0x56   : > { %986 = vmatpush1.bf16.msra.mxu1 %v2117_v19  ;;  %558 = vmatprep.subr.bf16.mxu0 %v2118_v20  ;;  %v2168_v56 = vld [vmem:[#allocation4 + $0x1ec] ss:$24 sps:$4 sm:$0xff]   ;;  %v2170_v57 = vld [vmem:[#allocation4 + $0x1e0] ss:$24 sps:$4 sm:$0xff]   ;;  %v2174_v60 = vld [vmem:[#allocation4 + $0x1bc] ss:$24 sps:$4 sm:$0xff]  }
  0x57   : > { %987 = vmatprep.subr.bf16.mxu1 %v2120_v21  ;;  %580 = vmatprep.mubr.bf16.mxu0 %v2477_v51  ;;  %v2172_v59 = vld [vmem:[#allocation4 + $0x1b4] ss:$24 sps:$4 sm:$0xff]   ;;  %v2176_v61 = vld [vmem:[#allocation4 + $0x1b0] ss:$24 sps:$4 sm:$0xff]   ;;  %v2178_v63 = vld [vmem:[#allocation4 + $0x184] ss:$24 sps:$4 sm:$0xff]  }
  0x58   : > { %1009 = vmatprep.mubr.bf16.mxu1 %v2477_v51  ;;  %v2177_v62 = vld [vmem:[#allocation4 + $0x1b8] ss:$24 sps:$4 sm:$0xff]   ;;  %v2180_v0 = vld [vmem:[#allocation4 + $0x18c] ss:$24 sps:$4 sm:$0xff]   ;;  %v2183_v2 = vld [vmem:[#allocation4 + $0x188] ss:$24 sps:$4 sm:$0xff]  }
  0x59   : > { %559 = vmatpush1.bf16.msra.mxu0 %v2122_v22  ;;  %v2182_v1 = vld [vmem:[#allocation4 + $0x180] ss:$24 sps:$4 sm:$0xff]   ;;  %v298_v4 = vld [vmem:[%s2465_s9 + $0x10] sm:$0xff]  ;;  %v2186_v5 = vld [vmem:[#allocation4 + $0x164] ss:$24 sps:$4 sm:$0xff]   ;;  %s2800_s23 = smov (!%p276_p5, %s1794_s23), 63 }
  0x5a   : > { %988 = vmatpush1.bf16.msra.mxu1 %v2123_v23  ;;  %560 = vmatprep.subr.bf16.mxu0 %v2124_v24  ;;  %v296_v3 = vld [vmem:[%s2465_s9] sm:$0xff]  ;;  %v301_v7 = vld [vmem:[%s2465_s9 + $0x28] sm:$0xff]  ;;  %v303_v8 = vld [vmem:[%s2465_s9 + $0x38] sm:$0xff]  ;;  %s2591_s21 = sshll.u32 %s2800_s23, 3 }
  0x5b   : > { %989 = vmatprep.subr.bf16.mxu1 %v2126_v25  ;;  %v2483_v6 = vpack.c.bf16 %v298_v4, %v296_v3  ;;  %v2184_v9 = vld [vmem:[#allocation4 + $0x160] ss:$24 sps:$4 sm:$0xff]   ;;  %v2189_v10 = vld [vmem:[#allocation4 + $0x134] ss:$24 sps:$4 sm:$0xff]   ;;  %v2487_v11 = vpack.c.bf16 %v303_v8, %v301_v7  ;;  %v2187_v12 = vld [vmem:[#allocation4 + $0x130] ss:$24 sps:$4 sm:$0xff]   ;;  %s2601_s30 = scalar_lea.vmem %s2780_s3, %s2591_s21  ;;  %s2607_s13 = scalar_lea.vmem %s2781_s4, %s2591_s21 }
  0x5c   : > { %v300_v13 = vld [vmem:[%s2465_s9 + $0x20] sm:$0xff]  ;;  %v302_v14 = vld [vmem:[%s2465_s9 + $0x30] sm:$0xff]  ;;  %v305_v17 = vld [vmem:[%s2465_s9 + $0x48] sm:$0xff]  ;;  %s2718_s26 = scalar_lea.vmem %s2782_s5, %s2591_s21 }
  0x5d   : > { %561 = vmatpush1.bf16.msra.mxu0 %v2128_v26  ;;  %v2192_v15 = vld [vmem:[#allocation4 + $0x104] ss:$24 sps:$4 sm:$0xff]   ;;  %v2495_v16 = vpack.c.bf16 %v302_v14, %v300_v13  ;;  %v2190_v19 = vld [vmem:[#allocation4 + $0x100] ss:$24 sps:$4 sm:$0xff]   ;;  %v2195_v20 = vld [vmem:[#allocation4 + $0xd4] ss:$24 sps:$4 sm:$0xff]  }
  0x5e   : > { %990 = vmatpush1.bf16.msra.mxu1 %v2129_v27  ;;  %562 = vmatprep.subr.bf16.mxu0 %v2130_v28  ;;  %v307_v18 = vld [vmem:[%s2465_s9 + $0x58] sm:$0xff]  ;;  %v2193_v22 = vld [vmem:[#allocation4 + $0xd0] ss:$24 sps:$4 sm:$0xff]   ;;  %v304_v23 = vld [vmem:[%s2465_s9 + $0x40] sm:$0xff] }
  0x5f   : > { %991 = vmatprep.subr.bf16.mxu1 %v2132_v29  ;;  %v2499_v21 = vpack.c.bf16 %v307_v18, %v305_v17  ;;  %v306_v24 = vld [vmem:[%s2465_s9 + $0x50] sm:$0xff]  ;;  %v2198_v25 = vld [vmem:[#allocation4 + $0xa4] ss:$24 sps:$4 sm:$0xff]   ;;  %v309_v27 = vld [vmem:[%s2465_s9 + $0x68] sm:$0xff] }
  0x60   : > { %v2507_v26 = vpack.c.bf16 %v306_v24, %v304_v23  ;;  %v311_v28 = vld [vmem:[%s2465_s9 + $0x78] sm:$0xff]  ;;  %v325_v4 = vld [vmem:[%s2465_s9 + $0xe8] sm:$0xff]  ;;  %v326_v13 = vld [vmem:[%s2465_s9 + $0xf0] sm:$0xff] }
  0x61   : > { %563 = vmatpush1.bf16.msra.mxu0 %v2134_v30  ;;  %v2196_v29 = vld [vmem:[#allocation4 + $0xa0] ss:$24 sps:$4 sm:$0xff]   ;;  %v2201_v30 = vld [vmem:[#allocation4 + $0x74] ss:$24 sps:$4 sm:$0xff]   ;;  %v2228_v14 = vld [vmem:[#allocation4 + $0x1c4] ss:$24 sps:$4 sm:$0xff]  }
  0x62   : > { %992 = vmatpush1.bf16.msra.mxu1 %v2135_v31  ;;  %564 = vmatprep.subr.bf16.mxu0 %v2136_v32  ;;  %v2511_v31 = vpack.c.bf16 %v311_v28, %v309_v27  ;;  %v2199_v32 = vld [vmem:[#allocation4 + $0x70] ss:$24 sps:$4 sm:$0xff]   ;;  %v2208_v49 = vld [vmem:[#allocation4 + $0x2e0] ss:$24 sps:$4 sm:$0xff]   ;;  %v2225_v8 = vld [vmem:[#allocation4 + $0x1f4] ss:$24 sps:$4 sm:$0xff]  }
  0x63   : > { %993 = vmatprep.subr.bf16.mxu1 %v2138_v33  ;;  %v308_v33 = vld [vmem:[%s2465_s9 + $0x60] sm:$0xff]  ;;  %v2231_v18 = vld [vmem:[#allocation4 + $0x194] ss:$24 sps:$4 sm:$0xff]  }
  0x64   : > { %v2220_v7 = vld [vmem:[#allocation4 + $0x220] ss:$24 sps:$4 sm:$0xff]  }
  0x65   : > { %565 = vmatpush2.bf16.msra.mxu0 %v2140_v34  ;;  %v310_v34 = vld [vmem:[%s2465_s9 + $0x70] sm:$0xff]  ;;  %v2226_v17 = vld [vmem:[#allocation4 + $0x1c0] ss:$24 sps:$4 sm:$0xff]  }
  0x66   : > { %994 = vmatpush2.bf16.msra.mxu1 %v2141_v35  ;;  %566 = vmatprep.subr.bf16.mxu0 %v2142_v36  ;;  %v2204_v35 = vld [vmem:[#allocation4 + $0x44] ss:$24 sps:$4 sm:$0xff]   ;;  %v2519_v36 = vpack.c.bf16 %v310_v34, %v308_v33 }
  0x67   : > { %995 = vmatprep.subr.bf16.mxu1 %v2144_v37  ;;  %v313_v37 = vld [vmem:[%s2465_s9 + $0x88] sm:$0xff] }
  0x69   : > { %567 = vmatpush2.bf16.msra.mxu0 %v2146_v38  ;;  %v315_v38 = vld [vmem:[%s2465_s9 + $0x98] sm:$0xff] }
  0x6a   : > { %996 = vmatpush2.bf16.msra.mxu1 %v2147_v39  ;;  %568 = vmatprep.subr.bf16.mxu0 %v2148_v40  ;;  %v2202_v39 = vld [vmem:[#allocation4 + $0x40] ss:$24 sps:$4 sm:$0xff]   ;;  %v2207_v40 = vld [vmem:[#allocation4 + $0x14] ss:$24 sps:$4 sm:$0xff]  }
  0x6b   : > { %997 = vmatprep.subr.bf16.mxu1 %v2150_v41  ;;  %v2523_v41 = vpack.c.bf16 %v315_v38, %v313_v37 }
  0x6d   : > { %569 = vmatpush2.bf16.msra.mxu0 %v2152_v42  ;;  %v2205_v42 = vld [vmem:[#allocation4 + $0x10] ss:$24 sps:$4 sm:$0xff]  }
  0x6e   : > { %998 = vmatpush2.bf16.msra.mxu1 %v2153_v43  ;;  %570 = vmatprep.subr.bf16.mxu0 %v2154_v44  ;;  %v312_v43 = vld [vmem:[%s2465_s9 + $0x80] sm:$0xff]  ;;  %v314_v44 = vld [vmem:[%s2465_s9 + $0x90] sm:$0xff] }
  0x6f   : > { %999 = vmatprep.subr.bf16.mxu1 %v2156_v45  ;;  %v2210_v45 = vld [vmem:[#allocation4 + $0x2e4] ss:$24 sps:$4 sm:$0xff]   ;;  %v2531_v46 = vpack.c.bf16 %v314_v44, %v312_v43 }
  0x71   : > { %571 = vmatpush2.bf16.msra.mxu0 %v2158_v47  ;;  %v317_v47 = vld [vmem:[%s2465_s9 + $0xa8] sm:$0xff] }
  0x72   : > { %1000 = vmatpush2.bf16.msra.mxu1 %v2159_v48  ;;  %572 = vmatprep.subr.bf16.mxu0 %v2160_v50  ;;  %v319_v48 = vld [vmem:[%s2465_s9 + $0xb8] sm:$0xff]  ;;  %v2213_v50 = vld [vmem:[#allocation4 + $0x2b4] ss:$24 sps:$4 sm:$0xff]  }
  0x73   : > { %1001 = vmatprep.subr.bf16.mxu1 %v2162_v52  ;;  %v2535_v52 = vpack.c.bf16 %v319_v48, %v317_v47 }
  0x75   : > { %573 = vmatpush2.bf16.msra.mxu0 %v2164_v53  ;;  %v2211_v53 = vld [vmem:[#allocation4 + $0x2b0] ss:$24 sps:$4 sm:$0xff]  }
  0x76   : > { %1002 = vmatpush2.bf16.msra.mxu1 %v2165_v54  ;;  %574 = vmatprep.subr.bf16.mxu0 %v2166_v55  ;;  %v316_v54 = vld [vmem:[%s2465_s9 + $0xa0] sm:$0xff]  ;;  %v318_v55 = vld [vmem:[%s2465_s9 + $0xb0] sm:$0xff] }
  0x77   : > { %1003 = vmatprep.subr.bf16.mxu1 %v2168_v56  ;;  %v2216_v56 = vld [vmem:[#allocation4 + $0x284] ss:$24 sps:$4 sm:$0xff]  }
  0x79   : > { %575 = vmatpush2.bf16.msra.mxu0 %v2170_v57  ;;  %v2543_v57 = vpack.c.bf16 %v318_v55, %v316_v54 }
  0x7a   : > { %1004 = vmatpush2.bf16.msra.mxu1 %v2171_v58  ;;  %576 = vmatprep.subr.bf16.mxu0 %v2172_v59  ;;  %v321_v58 = vld [vmem:[%s2465_s9 + $0xc8] sm:$0xff]  ;;  %v323_v59 = vld [vmem:[%s2465_s9 + $0xd8] sm:$0xff] }
  0x7b   : > { %1005 = vmatprep.subr.bf16.mxu1 %v2174_v60  ;;  %v2214_v60 = vld [vmem:[#allocation4 + $0x280] ss:$24 sps:$4 sm:$0xff]  }
  0x7d   : > { %577 = vmatpush2.bf16.msra.mxu0 %v2176_v61  ;;  %v2219_v61 = vld [vmem:[#allocation4 + $0x254] ss:$24 sps:$4 sm:$0xff]  }
  0x7e   : > { %1006 = vmatpush2.bf16.msra.mxu1 %v2177_v62  ;;  %578 = vmatprep.subr.bf16.mxu0 %v2178_v63  ;;  %v341_v62 = vpack.c.bf16 %v323_v59, %v321_v58  ;;  %v2217_v63 = vld [vmem:[#allocation4 + $0x250] ss:$24 sps:$4 sm:$0xff]  }
  0x7f   : > { %1007 = vmatprep.subr.bf16.mxu1 %v2180_v0  ;;  %v320_v0 = vld [vmem:[%s2465_s9 + $0xc0] sm:$0xff] }
  0x81   : > { %579 = vmatpush2.bf16.msra.mxu0 %v2182_v1  ;;  %v322_v1 = vld [vmem:[%s2465_s9 + $0xd0] sm:$0xff] }
  0x82   : > { %1008 = vmatpush2.bf16.msra.mxu1 %v2183_v2  ;;  %1406 = vmatprep.subr.bf16.mxu0 %v2186_v5  ;;  %v2222_v2 = vld [vmem:[#allocation4 + $0x224] ss:$24 sps:$4 sm:$0xff]   ;;  %v340_v3 = vpack.c.bf16 %v322_v1, %v320_v0 }
  0x83   : > { %2002 = vmatprep.subr.bf16.mxu1 %v2186_v5  ;;  %v327_v5 = vld [vmem:[%s2465_s9 + $0xf8] sm:$0xff] }
  0x84   : > { %581 = vmatmul.mubr.bf16.vlgmr.msra.gmra.mxu0 %v2483_v6 }
  0x85   : > { %1010 = vmatmul.mubr.bf16.vlgmr.msra.gmra.mxu1 %v2483_v6  ;;  %1407 = vmatpush1.bf16.msra.mxu0 %v2184_v9 }
  0x86   : > { %2018 = vmatpush1.bf16.msra.mxu1 %v2184_v9  ;;  %1408 = vmatprep.subr.bf16.mxu0 %v2189_v10  ;;  %v343_v9 = vpack.c.bf16 %v327_v5, %v325_v4 }
  0x87   : > { %2003 = vmatprep.subr.bf16.mxu1 %v2189_v10  ;;  %590 = vmatprep.mubr.bf16.mxu0 %v2487_v11  ;;  %v2223_v10 = vld [vmem:[#allocation4 + $0x1f0] ss:$24 sps:$4 sm:$0xff]  }
  0x88   : > { %1019 = vmatprep.mubr.bf16.mxu1 %v2487_v11 }
  0x89   : > { %1409 = vmatpush1.bf16.msra.mxu0 %v2187_v12 }
  0x8a   : > { %2019 = vmatpush1.bf16.msra.mxu1 %v2187_v12  ;;  %1410 = vmatprep.subr.bf16.mxu0 %v2192_v15  ;;  %v324_v12 = vld [vmem:[%s2465_s9 + $0xe0] sm:$0xff] }
  0x8b   : > { %2004 = vmatprep.subr.bf16.mxu1 %v2192_v15  ;;  %v342_v15 = vpack.c.bf16 %v326_v13, %v324_v12 }
  0x8c   : > { %591 = vmatmul.mubr.bf16.gmra.mxu0 %v2495_v16 }
  0x8d   : > { %1020 = vmatmul.mubr.bf16.gmra.mxu1 %v2495_v16  ;;  %1411 = vmatpush1.bf16.msra.mxu0 %v2190_v19 }
  0x8e   : > { %2020 = vmatpush1.bf16.msra.mxu1 %v2190_v19  ;;  %1412 = vmatprep.subr.bf16.mxu0 %v2195_v20  ;;  %v2229_v19 = vld [vmem:[#allocation4 + $0x190] ss:$24 sps:$4 sm:$0xff]  }
  0x8f   : > { %2005 = vmatprep.subr.bf16.mxu1 %v2195_v20  ;;  %600 = vmatprep.mubr.bf16.mxu0 %v2499_v21  ;;  %v376_v20 = vld [vmem:[%s2779_s2] sm:$0x3] }
  0x90   : > { %1029 = vmatprep.mubr.bf16.mxu1 %v2499_v21 }
  0x91   : > { %1413 = vmatpush1.bf16.msra.mxu0 %v2193_v22 }
  0x92   : > { %2021 = vmatpush1.bf16.msra.mxu1 %v2193_v22  ;;  %1414 = vmatprep.subr.bf16.mxu0 %v2198_v25 }
  0x93   : > { %2006 = vmatprep.subr.bf16.mxu1 %v2198_v25 }
  0x94   : > { %601 = vmatmul.mubr.bf16.gmra.mxu0 %v2507_v26 }
  0x95   : > { %1030 = vmatmul.mubr.bf16.gmra.mxu1 %v2507_v26  ;;  %1415 = vmatpush1.bf16.msra.mxu0 %v2196_v29 }
  0x96   : > { %2022 = vmatpush1.bf16.msra.mxu1 %v2196_v29  ;;  %1416 = vmatprep.subr.bf16.mxu0 %v2201_v30 }
  0x97   : > { %2007 = vmatprep.subr.bf16.mxu1 %v2201_v30  ;;  %610 = vmatprep.mubr.bf16.mxu0 %v2511_v31 }
  0x98   : > { %1039 = vmatprep.mubr.bf16.mxu1 %v2511_v31 }
  0x99   : > { %1417 = vmatpush1.bf16.msra.mxu0 %v2199_v32 }
  0x9a   : > { %2023 = vmatpush1.bf16.msra.mxu1 %v2199_v32  ;;  %1418 = vmatprep.subr.bf16.mxu0 %v2204_v35 }
  0x9b   : > { %2008 = vmatprep.subr.bf16.mxu1 %v2204_v35 }
  0x9c   : > { %611 = vmatmul.mubr.bf16.gmra.mxu0 %v2519_v36 }
  0x9d   : > { %1040 = vmatmul.mubr.bf16.gmra.mxu1 %v2519_v36  ;;  %1419 = vmatpush1.bf16.msra.mxu0 %v2202_v39 }
  0x9e   : > { %2024 = vmatpush1.bf16.msra.mxu1 %v2202_v39  ;;  %1420 = vmatprep.subr.bf16.mxu0 %v2207_v40 }
  0x9f   : > { %2009 = vmatprep.subr.bf16.mxu1 %v2207_v40  ;;  %620 = vmatprep.mubr.bf16.mxu0 %v2523_v41 }
  0xa0   : > { %1049 = vmatprep.mubr.bf16.mxu1 %v2523_v41 }
  0xa1   : > { %1421 = vmatpush1.bf16.msra.mxu0 %v2205_v42 }
  0xa2   : > { %2025 = vmatpush1.bf16.msra.mxu1 %v2205_v42  ;;  %1422 = vmatprep.subr.bf16.mxu0 %v2210_v45 }
  0xa3   : > { %2010 = vmatprep.subr.bf16.mxu1 %v2210_v45 }
  0xa4   : > { %621 = vmatmul.mubr.bf16.gmra.mxu0 %v2531_v46 }
  0xa5   : > { %1050 = vmatmul.mubr.bf16.gmra.mxu1 %v2531_v46  ;;  %1423 = vmatpush2.bf16.msra.mxu0 %v2208_v49 }
  0xa6   : > { %2026 = vmatpush2.bf16.msra.mxu1 %v2208_v49  ;;  %1424 = vmatprep.subr.bf16.mxu0 %v2213_v50 }
  0xa7   : > { %2011 = vmatprep.subr.bf16.mxu1 %v2213_v50  ;;  %630 = vmatprep.mubr.bf16.mxu0 %v2535_v52 }
  0xa8   : > { %1059 = vmatprep.mubr.bf16.mxu1 %v2535_v52 }
  0xa9   : > { %1425 = vmatpush2.bf16.msra.mxu0 %v2211_v53 }
  0xaa   : > { %2027 = vmatpush2.bf16.msra.mxu1 %v2211_v53  ;;  %1426 = vmatprep.subr.bf16.mxu0 %v2216_v56 }
  0xab   : > { %2012 = vmatprep.subr.bf16.mxu1 %v2216_v56 }
  0xac   : > { %631 = vmatmul.mubr.bf16.gmra.mxu0 %v2543_v57 }
  0xad   : > { %1060 = vmatmul.mubr.bf16.gmra.mxu1 %v2543_v57  ;;  %1427 = vmatpush2.bf16.msra.mxu0 %v2214_v60 }
  0xae   : > { %2028 = vmatpush2.bf16.msra.mxu1 %v2214_v60  ;;  %1428 = vmatprep.subr.bf16.mxu0 %v2219_v61 }
  0xaf   : > { %2013 = vmatprep.subr.bf16.mxu1 %v2219_v61  ;;  %640 = vmatprep.mubr.bf16.mxu0 %v341_v62 }
  0xb0   : > { %1069 = vmatprep.mubr.bf16.mxu1 %v341_v62 }
  0xb1   : > { %1429 = vmatpush2.bf16.msra.mxu0 %v2217_v63 }
  0xb2   : > { %2029 = vmatpush2.bf16.msra.mxu1 %v2217_v63  ;;  %1430 = vmatprep.subr.bf16.mxu0 %v2222_v2 }
  0xb3   : > { %2014 = vmatprep.subr.bf16.mxu1 %v2222_v2 }
  0xb4   : > { %641 = vmatmul.mubr.bf16.gmra.mxu0 %v340_v3 }
  0xb5   : > { %1070 = vmatmul.mubr.bf16.gmra.mxu1 %v340_v3  ;;  %1431 = vmatpush2.bf16.msra.mxu0 %v2220_v7 }
  0xb6   : > { %2030 = vmatpush2.bf16.msra.mxu1 %v2220_v7  ;;  %1432 = vmatprep.subr.bf16.mxu0 %v2225_v8 }
  0xb7   : > { %2015 = vmatprep.subr.bf16.mxu1 %v2225_v8  ;;  %650 = vmatprep.mubr.bf16.mxu0 %v343_v9 }
  0xb8   : > { %1079 = vmatprep.mubr.bf16.mxu1 %v343_v9 }
  0xb9   : > { %1433 = vmatpush2.bf16.msra.mxu0 %v2223_v10 }
  0xba   : > { %2031 = vmatpush2.bf16.msra.mxu1 %v2223_v10  ;;  %1434 = vmatprep.subr.bf16.mxu0 %v2228_v14 }
  0xbb   : > { %2016 = vmatprep.subr.bf16.mxu1 %v2228_v14 }
  0xbc   : > { %651 = vmatmul.mubr.bf16.gmra.mxu0 %v342_v15 }
  0xbd   : > { %1080 = vmatmul.mubr.bf16.gmra.mxu1 %v342_v15  ;;  %1435 = vmatpush2.bf16.msra.mxu0 %v2226_v17 }
  0xbe   : > { %2032 = vmatpush2.bf16.msra.mxu1 %v2226_v17  ;;  %1436 = vmatprep.subr.bf16.mxu0 %v2231_v18 }
  0xbf   : > { %2017 = vmatprep.subr.bf16.mxu1 %v2231_v18  ;;  %1438 = vmatprep.mubr.bf16.mxu0 %v2477_v51  ;;  %v378_v51 = vlaneseq }
  0xc0   : > { %1478 = vmatprep.mubr.bf16.mxu1 %v2523_v41 }
  0xc1   : > { %1437 = vmatpush2.bf16.msra.mxu0 %v2229_v19 }
  0xc2   : > { %2033 = vmatpush2.bf16.msra.mxu1 %v2229_v19 }
  0xc4   : > { %1439 = vmatmul.mubr.bf16.vlgmr.msra.gmra.mxu0 %v2483_v6  ;;  %v379_v6 = vshrl.u32 %v378_v51, 7 }
  0xc5   : > { %1479 = vmatmul.mubr.bf16.vlgmr.msra.gmra.mxu1 %v2531_v46  ;;  %1448 = vmatprep.mubr.bf16.mxu0 %v2487_v11 }
  0xc6   : > { %1488 = vmatprep.mubr.bf16.mxu1 %v2535_v52  ;;  %v2569_v11 = vsub.s32 0, %v379_v6 }
  0xc8   : > { %v2580_v22 = vrot.slane %v376_v20, %v2569_v11 }
  0xcc   : > { %1449 = vmatmul.mubr.bf16.gmra.mxu0 %v2495_v16  ;;  %v2571_v16 = vsub.s32 1, %v379_v6 }
  0xcd   : > { %1489 = vmatmul.mubr.bf16.gmra.mxu1 %v2543_v57  ;;  %1458 = vmatprep.mubr.bf16.mxu0 %v2499_v21  ;;  %v805_v21 = vld [vmem:[%s2779_s2 + $0x2] sm:$0x3] }
  0xce   : > { %1498 = vmatprep.mubr.bf16.mxu1 %v341_v62  ;;  %v2583_v23 = vrot.slane %v805_v21, %v2569_v11  ;;  %v2586_v24 = vrot.slane %v376_v20, %v2571_v16  ;;  %v2589_v25 = vrot.slane %v805_v21, %v2571_v16 }
  0xd4   : > { %1459 = vmatmul.mubr.bf16.gmra.mxu0 %v2507_v26 }
  0xd5   : > { %1499 = vmatmul.mubr.bf16.gmra.mxu1 %v340_v3  ;;  %1468 = vmatprep.mubr.bf16.mxu0 %v2511_v31 }
  0xd6   : > { %1508 = vmatprep.mubr.bf16.mxu1 %v343_v9 }
  0xdc   : > { %1469 = vmatmul.mubr.bf16.gmra.mxu0 %v2519_v36 }
  0xdd   : > { %1509 = vmatmul.mubr.bf16.gmra.mxu1 %v342_v15 }
 0x144   : > { %v582_v26 = vpop.f32.mrf.mxu0 }
 0x145   : > { %v1011_v27 = vpop.f32.mrf.mxu1  ;;  %v583_v30 = vadd.f32 %v582_v26, %v2580_v22 }
 0x146   : > { %v584_v28 = vpop.f32.mrf.mxu0  ;;  %v1012_v31 = vadd.f32 %v1011_v27, %v2583_v23 }
 0x147   : > { %v1013_v29 = vpop.f32.mrf.mxu1  ;;  %v585_v32 = vadd.f32 %v584_v28, %v2586_v24 }
 0x148   : > { %v1014_v33 = vadd.f32 %v1013_v29, %v2589_v25  ;;  %v586_v34 = vpop.f32.mrf.mxu0 }
 0x149   : > { %v1015_v35 = vpop.f32.mrf.mxu1  ;;  %v1954_v36 = vpack.c.bf16 %v585_v32, %v583_v30  ;;  %v587_v40 = vadd.f32 %v586_v34, %v2580_v22 }
 0x14a   : > { %v1970_v37 = vpack.c.bf16 %v1014_v33, %v1012_v31  ;;  %v588_v38 = vpop.f32.mrf.mxu0  ;;  %v1016_v41 = vadd.f32 %v1015_v35, %v2583_v23 }
 0x14b   : > { %v1017_v39 = vpop.f32.mrf.mxu1  ;;  %757 = vst [vmem:[%s2601_s30] sm:$0xff] %v1954_v36  ;;  %v589_v42 = vadd.f32 %v588_v38, %v2586_v24 }
 0x14c   : > { %1186 = vst [vmem:[%s2607_s13] sm:$0xff] %v1970_v37  ;;  %v1018_v43 = vadd.f32 %v1017_v39, %v2589_v25  ;;  %v592_v44 = vpop.f32.mrf.mxu0 }
 0x14d   : > { %v1021_v45 = vpop.f32.mrf.mxu1  ;;  %v1955_v46 = vpack.c.bf16 %v589_v42, %v587_v40  ;;  %v593_v50 = vadd.f32 %v592_v44, %v2580_v22 }
 0x14e   : > { %v1971_v47 = vpack.c.bf16 %v1018_v43, %v1016_v41  ;;  %v594_v48 = vpop.f32.mrf.mxu0  ;;  %v1022_v52 = vadd.f32 %v1021_v45, %v2583_v23 }
 0x14f   : > { %v1023_v49 = vpop.f32.mrf.mxu1  ;;  %758 = vst [vmem:[%s2601_s30 + $0x8] sm:$0xff] %v1955_v46  ;;  %v595_v53 = vadd.f32 %v594_v48, %v2586_v24 }
 0x150   : > { %1187 = vst [vmem:[%s2607_s13 + $0x8] sm:$0xff] %v1971_v47  ;;  %v1024_v54 = vadd.f32 %v1023_v49, %v2589_v25  ;;  %v596_v55 = vpop.f32.mrf.mxu0 }
 0x151   : > { %v1025_v56 = vpop.f32.mrf.mxu1  ;;  %v1956_v57 = vpack.c.bf16 %v595_v53, %v593_v50  ;;  %v597_v61 = vadd.f32 %v596_v55, %v2580_v22 }
 0x152   : > { %v1972_v58 = vpack.c.bf16 %v1024_v54, %v1022_v52  ;;  %v598_v59 = vpop.f32.mrf.mxu0  ;;  %v1026_v62 = vadd.f32 %v1025_v56, %v2583_v23 }
 0x153   : > { %v1027_v60 = vpop.f32.mrf.mxu1  ;;  %759 = vst [vmem:[%s2601_s30 + $0x10] sm:$0xff] %v1956_v57  ;;  %v599_v63 = vadd.f32 %v598_v59, %v2586_v24 }
 0x154   : > { %1188 = vst [vmem:[%s2607_s13 + $0x10] sm:$0xff] %v1972_v58  ;;  %v1028_v0 = vadd.f32 %v1027_v60, %v2589_v25  ;;  %v602_v1 = vpop.f32.mrf.mxu0 }
 0x155   : > { %v1031_v2 = vpop.f32.mrf.mxu1  ;;  %v1957_v3 = vpack.c.bf16 %v599_v63, %v597_v61  ;;  %v603_v8 = vadd.f32 %v602_v1, %v2580_v22 }
 0x156   : > { %v1973_v4 = vpack.c.bf16 %v1028_v0, %v1026_v62  ;;  %v604_v5 = vpop.f32.mrf.mxu0  ;;  %v1032_v9 = vadd.f32 %v1031_v2, %v2583_v23 }
 0x157   : > { %v1033_v7 = vpop.f32.mrf.mxu1  ;;  %760 = vst [vmem:[%s2601_s30 + $0x18] sm:$0xff] %v1957_v3  ;;  %v605_v10 = vadd.f32 %v604_v5, %v2586_v24 }
 0x158   : > { %1189 = vst [vmem:[%s2607_s13 + $0x18] sm:$0xff] %v1973_v4  ;;  %v1034_v12 = vadd.f32 %v1033_v7, %v2589_v25  ;;  %v606_v13 = vpop.f32.mrf.mxu0 }
 0x159   : > { %v1035_v14 = vpop.f32.mrf.mxu1  ;;  %v1958_v15 = vpack.c.bf16 %v605_v10, %v603_v8  ;;  %v607_v51 = vadd.f32 %v606_v13, %v2580_v22 }
 0x15a   : > { %v1974_v17 = vpack.c.bf16 %v1034_v12, %v1032_v9  ;;  %v608_v18 = vpop.f32.mrf.mxu0  ;;  %v1036_v6 = vadd.f32 %v1035_v14, %v2583_v23 }
 0x15b   : > { %v1037_v19 = vpop.f32.mrf.mxu1  ;;  %761 = vst [vmem:[%s2601_s30 + $0x20] sm:$0xff] %v1958_v15  ;;  %v609_v20 = vadd.f32 %v608_v18, %v2586_v24 }
 0x15c   : > { %1190 = vst [vmem:[%s2607_s13 + $0x20] sm:$0xff] %v1974_v17  ;;  %v1038_v21 = vadd.f32 %v1037_v19, %v2589_v25  ;;  %v612_v26 = vpop.f32.mrf.mxu0 }
 0x15d   : > { %v1041_v27 = vpop.f32.mrf.mxu1  ;;  %v1959_v28 = vpack.c.bf16 %v609_v20, %v607_v51  ;;  %v613_v32 = vadd.f32 %v612_v26, %v2580_v22 }
 0x15e   : > { %v1975_v29 = vpack.c.bf16 %v1038_v21, %v1036_v6  ;;  %v614_v30 = vpop.f32.mrf.mxu0  ;;  %v1042_v33 = vadd.f32 %v1041_v27, %v2583_v23 }
 0x15f   : > { %v1043_v31 = vpop.f32.mrf.mxu1  ;;  %762 = vst [vmem:[%s2601_s30 + $0x28] sm:$0xff] %v1959_v28  ;;  %v615_v34 = vadd.f32 %v614_v30, %v2586_v24 }
 0x160   : > { %1191 = vst [vmem:[%s2607_s13 + $0x28] sm:$0xff] %v1975_v29  ;;  %v1044_v35 = vadd.f32 %v1043_v31, %v2589_v25  ;;  %v616_v36 = vpop.f32.mrf.mxu0 }
 0x161   : > { %v1045_v37 = vpop.f32.mrf.mxu1  ;;  %v1960_v38 = vpack.c.bf16 %v615_v34, %v613_v32  ;;  %v617_v42 = vadd.f32 %v616_v36, %v2580_v22 }
 0x162   : > { %v1976_v39 = vpack.c.bf16 %v1044_v35, %v1042_v33  ;;  %v618_v40 = vpop.f32.mrf.mxu0  ;;  %v1046_v43 = vadd.f32 %v1045_v37, %v2583_v23 }
 0x163   : > { %v1047_v41 = vpop.f32.mrf.mxu1  ;;  %763 = vst [vmem:[%s2601_s30 + $0x30] sm:$0xff] %v1960_v38  ;;  %v619_v44 = vadd.f32 %v618_v40, %v2586_v24 }
 0x164   : > { %1192 = vst [vmem:[%s2607_s13 + $0x30] sm:$0xff] %v1976_v39  ;;  %v1048_v45 = vadd.f32 %v1047_v41, %v2589_v25  ;;  %v622_v46 = vpop.f32.mrf.mxu0 }
 0x165   : > { %v1051_v47 = vpop.f32.mrf.mxu1  ;;  %v1961_v48 = vpack.c.bf16 %v619_v44, %v617_v42  ;;  %v623_v53 = vadd.f32 %v622_v46, %v2580_v22 }
 0x166   : > { %v1977_v49 = vpack.c.bf16 %v1048_v45, %v1046_v43  ;;  %v624_v50 = vpop.f32.mrf.mxu0  ;;  %v1052_v54 = vadd.f32 %v1051_v47, %v2583_v23 }
 0x167   : > { %v1053_v52 = vpop.f32.mrf.mxu1  ;;  %764 = vst [vmem:[%s2601_s30 + $0x38] sm:$0xff] %v1961_v48  ;;  %v625_v55 = vadd.f32 %v624_v50, %v2586_v24 }
 0x168   : > { %1193 = vst [vmem:[%s2607_s13 + $0x38] sm:$0xff] %v1977_v49  ;;  %v1054_v56 = vadd.f32 %v1053_v52, %v2589_v25  ;;  %v626_v57 = vpop.f32.mrf.mxu0 }
 0x169   : > { %v1055_v58 = vpop.f32.mrf.mxu1  ;;  %v1962_v59 = vpack.c.bf16 %v625_v55, %v623_v53  ;;  %v627_v63 = vadd.f32 %v626_v57, %v2580_v22 }
 0x16a   : > { %v1978_v60 = vpack.c.bf16 %v1054_v56, %v1052_v54  ;;  %v628_v61 = vpop.f32.mrf.mxu0  ;;  %v1056_v0 = vadd.f32 %v1055_v58, %v2583_v23 }
 0x16b   : > { %v1057_v62 = vpop.f32.mrf.mxu1  ;;  %765 = vst [vmem:[%s2601_s30 + $0x40] sm:$0xff] %v1962_v59  ;;  %v629_v1 = vadd.f32 %v628_v61, %v2586_v24  ;;  %v1234_v59 = vld [vmem:[%s2779_s2 + $0x4] sm:$0x3] }
 0x16c   : > { %1194 = vst [vmem:[%s2607_s13 + $0x40] sm:$0xff] %v1978_v60  ;;  %v1058_v2 = vadd.f32 %v1057_v62, %v2589_v25  ;;  %v632_v3 = vpop.f32.mrf.mxu0 }
 0x16d   : > { %v1061_v4 = vpop.f32.mrf.mxu1  ;;  %v1963_v5 = vpack.c.bf16 %v629_v1, %v627_v63  ;;  %v633_v10 = vadd.f32 %v632_v3, %v2580_v22  ;;  %v2700_v3 = vrot.slane %v1234_v59, %v2571_v16 }
 0x16e   : > { %v1979_v7 = vpack.c.bf16 %v1058_v2, %v1056_v0  ;;  %v634_v8 = vpop.f32.mrf.mxu0  ;;  %v1062_v12 = vadd.f32 %v1061_v4, %v2583_v23  ;;  %v2697_v2 = vrot.slane %v1234_v59, %v2569_v11 }
 0x16f   : > { %v1063_v9 = vpop.f32.mrf.mxu1  ;;  %766 = vst [vmem:[%s2601_s30 + $0x48] sm:$0xff] %v1963_v5  ;;  %v635_v13 = vadd.f32 %v634_v8, %v2586_v24 }
 0x170   : > { %1195 = vst [vmem:[%s2607_s13 + $0x48] sm:$0xff] %v1979_v7  ;;  %v1064_v14 = vadd.f32 %v1063_v9, %v2589_v25  ;;  %v636_v15 = vpop.f32.mrf.mxu0 }
 0x171   : > { %v1065_v17 = vpop.f32.mrf.mxu1  ;;  %v1964_v18 = vpack.c.bf16 %v635_v13, %v633_v10  ;;  %v637_v20 = vadd.f32 %v636_v15, %v2580_v22 }
 0x172   : > { %v1980_v19 = vpack.c.bf16 %v1064_v14, %v1062_v12  ;;  %v638_v51 = vpop.f32.mrf.mxu0  ;;  %v1066_v21 = vadd.f32 %v1065_v17, %v2583_v23 }
 0x173   : > { %v1067_v6 = vpop.f32.mrf.mxu1  ;;  %767 = vst [vmem:[%s2601_s30 + $0x50] sm:$0xff] %v1964_v18  ;;  %v639_v26 = vadd.f32 %v638_v51, %v2586_v24 }
 0x174   : > { %1196 = vst [vmem:[%s2607_s13 + $0x50] sm:$0xff] %v1980_v19  ;;  %v1068_v27 = vadd.f32 %v1067_v6, %v2589_v25  ;;  %v642_v28 = vpop.f32.mrf.mxu0 }
 0x175   : > { %v1071_v29 = vpop.f32.mrf.mxu1  ;;  %v1965_v30 = vpack.c.bf16 %v639_v26, %v637_v20  ;;  %v643_v34 = vadd.f32 %v642_v28, %v2580_v22 }
 0x176   : > { %v1981_v31 = vpack.c.bf16 %v1068_v27, %v1066_v21  ;;  %v644_v32 = vpop.f32.mrf.mxu0  ;;  %v1072_v35 = vadd.f32 %v1071_v29, %v2583_v23 }
 0x177   : > { %v1073_v33 = vpop.f32.mrf.mxu1  ;;  %768 = vst [vmem:[%s2601_s30 + $0x58] sm:$0xff] %v1965_v30  ;;  %v645_v36 = vadd.f32 %v644_v32, %v2586_v24 }
 0x178   : > { %1197 = vst [vmem:[%s2607_s13 + $0x58] sm:$0xff] %v1981_v31  ;;  %v1074_v37 = vadd.f32 %v1073_v33, %v2589_v25  ;;  %v646_v38 = vpop.f32.mrf.mxu0 }
 0x179   : > { %v1075_v39 = vpop.f32.mrf.mxu1  ;;  %v1966_v40 = vpack.c.bf16 %v645_v36, %v643_v34  ;;  %v647_v44 = vadd.f32 %v646_v38, %v2580_v22 }
 0x17a   : > { %v1982_v41 = vpack.c.bf16 %v1074_v37, %v1072_v35  ;;  %v648_v42 = vpop.f32.mrf.mxu0  ;;  %v1076_v45 = vadd.f32 %v1075_v39, %v2583_v23 }
 0x17b   : > { %v1077_v43 = vpop.f32.mrf.mxu1  ;;  %769 = vst [vmem:[%s2601_s30 + $0x60] sm:$0xff] %v1966_v40  ;;  %v649_v46 = vadd.f32 %v648_v42, %v2586_v24 }
 0x17c   : > { %1198 = vst [vmem:[%s2607_s13 + $0x60] sm:$0xff] %v1982_v41  ;;  %v1078_v47 = vadd.f32 %v1077_v43, %v2589_v25  ;;  %v652_v48 = vpop.f32.mrf.mxu0 }
 0x17d   : > { %v1081_v49 = vpop.f32.mrf.mxu1  ;;  %v1967_v50 = vpack.c.bf16 %v649_v46, %v647_v44  ;;  %v653_v55 = vadd.f32 %v652_v48, %v2580_v22 }
 0x17e   : > { %v1983_v52 = vpack.c.bf16 %v1078_v47, %v1076_v45  ;;  %v654_v53 = vpop.f32.mrf.mxu0  ;;  %v1082_v56 = vadd.f32 %v1081_v49, %v2583_v23 }
 0x17f   : > { %v1083_v54 = vpop.f32.mrf.mxu1  ;;  %770 = vst [vmem:[%s2601_s30 + $0x68] sm:$0xff] %v1967_v50  ;;  %v655_v57 = vadd.f32 %v654_v53, %v2586_v24 }
 0x180   : > { %1199 = vst [vmem:[%s2607_s13 + $0x68] sm:$0xff] %v1983_v52  ;;  %v1084_v58 = vadd.f32 %v1083_v54, %v2589_v25  ;;  %v656_v60 = vpop.f32.mrf.mxu0 }
 0x181   : > { %v1085_v61 = vpop.f32.mrf.mxu1  ;;  %v1968_v62 = vpack.c.bf16 %v655_v57, %v653_v55  ;;  %v657_v4 = vadd.f32 %v656_v60, %v2580_v22 }
 0x182   : > { %v1984_v63 = vpack.c.bf16 %v1084_v58, %v1082_v56  ;;  %v658_v0 = vpop.f32.mrf.mxu0  ;;  %v1086_v5 = vadd.f32 %v1085_v61, %v2583_v23 }
 0x183   : > { %v1087_v1 = vpop.f32.mrf.mxu1  ;;  %771 = vst [vmem:[%s2601_s30 + $0x70] sm:$0xff] %v1968_v62  ;;  %v659_v7 = vadd.f32 %v658_v0, %v2586_v24 }
 0x184   : > { %1200 = vst [vmem:[%s2607_s13 + $0x70] sm:$0xff] %v1984_v63  ;;  %v1088_v8 = vadd.f32 %v1087_v1, %v2589_v25  ;;  %v1440_v9 = vpop.f32.mrf.mxu0 }
 0x185   : > { %v1480_v10 = vpop.f32.mrf.mxu1  ;;  %v1969_v12 = vpack.c.bf16 %v659_v7, %v657_v4  ;;  %v1441_v16 = vadd.f32 %v1440_v9, %v2697_v2 }
 0x186   : > { %v1985_v13 = vpack.c.bf16 %v1088_v8, %v1086_v5  ;;  %v1442_v11 = vpop.f32.mrf.mxu0  ;;  %v1481_v15 = vadd.f32 %v1480_v10, %v2697_v2 }
 0x187   : > { %v1482_v14 = vpop.f32.mrf.mxu1  ;;  %772 = vst [vmem:[%s2601_s30 + $0x78] sm:$0xff] %v1969_v12  ;;  %v1443_v22 = vadd.f32 %v1442_v11, %v2700_v3 }
 0x188   : > { %1201 = vst [vmem:[%s2607_s13 + $0x78] sm:$0xff] %v1985_v13  ;;  %v1483_v23 = vadd.f32 %v1482_v14, %v2700_v3  ;;  %v1444_v24 = vpop.f32.mrf.mxu0 }
 0x189   : > { %v1484_v25 = vpop.f32.mrf.mxu1  ;;  %v1986_v17 = vpack.c.bf16 %v1443_v22, %v1441_v16  ;;  %v1445_v6 = vadd.f32 %v1444_v24, %v2697_v2 }
 0x18a   : > { %v1994_v18 = vpack.c.bf16 %v1483_v23, %v1481_v15  ;;  %v1446_v19 = vpop.f32.mrf.mxu0  ;;  %v1485_v20 = vadd.f32 %v1484_v25, %v2697_v2 }
 0x18b   : > { %v1486_v51 = vpop.f32.mrf.mxu1  ;;  %1615 = vst [vmem:[%s2718_s26] sm:$0xff] %v1986_v17  ;;  %v1447_v21 = vadd.f32 %v1446_v19, %v2700_v3 }
 0x18c   : > { %1623 = vst [vmem:[%s2718_s26 + $0x40] sm:$0xff] %v1994_v18  ;;  %v1487_v26 = vadd.f32 %v1486_v51, %v2700_v3  ;;  %v1450_v27 = vpop.f32.mrf.mxu0 }
 0x18d   : > { %v1490_v28 = vpop.f32.mrf.mxu1  ;;  %v1987_v29 = vpack.c.bf16 %v1447_v21, %v1445_v6  ;;  %v1451_v33 = vadd.f32 %v1450_v27, %v2697_v2 }
 0x18e   : > { %v1995_v30 = vpack.c.bf16 %v1487_v26, %v1485_v20  ;;  %v1452_v31 = vpop.f32.mrf.mxu0  ;;  %v1491_v34 = vadd.f32 %v1490_v28, %v2697_v2 }
 0x18f   : > { %v1492_v32 = vpop.f32.mrf.mxu1  ;;  %1616 = vst [vmem:[%s2718_s26 + $0x8] sm:$0xff] %v1987_v29  ;;  %v1453_v35 = vadd.f32 %v1452_v31, %v2700_v3 }
 0x190   : > { %1624 = vst [vmem:[%s2718_s26 + $0x48] sm:$0xff] %v1995_v30  ;;  %v1493_v36 = vadd.f32 %v1492_v32, %v2700_v3  ;;  %v1454_v37 = vpop.f32.mrf.mxu0 }
 0x191   : > { %v1494_v38 = vpop.f32.mrf.mxu1  ;;  %v1988_v39 = vpack.c.bf16 %v1453_v35, %v1451_v33  ;;  %v1455_v43 = vadd.f32 %v1454_v37, %v2697_v2 }
 0x192   : > { %v1996_v40 = vpack.c.bf16 %v1493_v36, %v1491_v34  ;;  %v1456_v41 = vpop.f32.mrf.mxu0  ;;  %v1495_v44 = vadd.f32 %v1494_v38, %v2697_v2 }
 0x193   : > { %v1496_v42 = vpop.f32.mrf.mxu1  ;;  %1617 = vst [vmem:[%s2718_s26 + $0x10] sm:$0xff] %v1988_v39  ;;  %v1457_v45 = vadd.f32 %v1456_v41, %v2700_v3 }
 0x194   : > { %1625 = vst [vmem:[%s2718_s26 + $0x50] sm:$0xff] %v1996_v40  ;;  %v1497_v46 = vadd.f32 %v1496_v42, %v2700_v3  ;;  %v1460_v47 = vpop.f32.mrf.mxu0 }
 0x195   : > { %v1500_v48 = vpop.f32.mrf.mxu1  ;;  %v1989_v49 = vpack.c.bf16 %v1457_v45, %v1455_v43  ;;  %v1461_v54 = vadd.f32 %v1460_v47, %v2697_v2 }
 0x196   : > { %v1997_v50 = vpack.c.bf16 %v1497_v46, %v1495_v44  ;;  %v1462_v52 = vpop.f32.mrf.mxu0  ;;  %v1501_v55 = vadd.f32 %v1500_v48, %v2697_v2 }
 0x197   : > { %v1502_v53 = vpop.f32.mrf.mxu1  ;;  %1618 = vst [vmem:[%s2718_s26 + $0x18] sm:$0xff] %v1989_v49  ;;  %v1463_v56 = vadd.f32 %v1462_v52, %v2700_v3 }
 0x198   : > { %1626 = vst [vmem:[%s2718_s26 + $0x58] sm:$0xff] %v1997_v50  ;;  %v1503_v57 = vadd.f32 %v1502_v53, %v2700_v3  ;;  %v1464_v58 = vpop.f32.mrf.mxu0 }
 0x199   : > { %v1504_v59 = vpop.f32.mrf.mxu1  ;;  %v1990_v60 = vpack.c.bf16 %v1463_v56, %v1461_v54  ;;  %v1465_v0 = vadd.f32 %v1464_v58, %v2697_v2 }
 0x19a   : > { %v1998_v61 = vpack.c.bf16 %v1503_v57, %v1501_v55  ;;  %v1466_v62 = vpop.f32.mrf.mxu0  ;;  %v1505_v1 = vadd.f32 %v1504_v59, %v2697_v2 }
 0x19b   : > { %v1506_v63 = vpop.f32.mrf.mxu1  ;;  %1619 = vst [vmem:[%s2718_s26 + $0x20] sm:$0xff] %v1990_v60  ;;  %v1467_v4 = vadd.f32 %v1466_v62, %v2700_v3 }
 0x19c   : > { %1627 = vst [vmem:[%s2718_s26 + $0x60] sm:$0xff] %v1998_v61  ;;  %v1507_v5 = vadd.f32 %v1506_v63, %v2700_v3  ;;  %v1470_v7 = vpop.f32.mrf.mxu0 }
 0x19d   : > { %v1510_v8 = vpop.f32.mrf.mxu1  ;;  %v1991_v9 = vpack.c.bf16 %v1467_v4, %v1465_v0  ;;  %v1471_v11 = vadd.f32 %v1470_v7, %v2697_v2 }
 0x19e   : > { %v1999_v10 = vpack.c.bf16 %v1507_v5, %v1505_v1  ;;  %v1472_v12 = vpop.f32.mrf.mxu0  ;;  %v1511_v14 = vadd.f32 %v1510_v8, %v2697_v2 }
 0x19f   : > { %v1512_v13 = vpop.f32.mrf.mxu1  ;;  %1620 = vst [vmem:[%s2718_s26 + $0x28] sm:$0xff] %v1991_v9  ;;  %v1473_v16 = vadd.f32 %v1472_v12, %v2700_v3 }
 0x1a0   : > { %1628 = vst [vmem:[%s2718_s26 + $0x68] sm:$0xff] %v1999_v10  ;;  %v1513_v15 = vadd.f32 %v1512_v13, %v2700_v3  ;;  %v1474_v22 = vpop.f32.mrf.mxu0 }
 0x1a1   : > { %v1514_v23 = vpop.f32.mrf.mxu1  ;;  %v1992_v24 = vpack.c.bf16 %v1473_v16, %v1471_v11  ;;  %v1475_v19 = vadd.f32 %v1474_v22, %v2697_v2 }
 0x1a2   : > { %v2000_v25 = vpack.c.bf16 %v1513_v15, %v1511_v14  ;;  %v1476_v17 = vpop.f32.mrf.mxu0  ;;  %v1515_v51 = vadd.f32 %v1514_v23, %v2697_v2 }
 0x1a3   : > { %v1516_v18 = vpop.f32.mrf.mxu1  ;;  %1621 = vst [vmem:[%s2718_s26 + $0x30] sm:$0xff] %v1992_v24  ;;  %v1477_v6 = vadd.f32 %v1476_v17, %v2700_v3 }
 0x1a4   : > { %1629 = vst [vmem:[%s2718_s26 + $0x70] sm:$0xff] %v2000_v25  ;;  %v1517_v20 = vadd.f32 %v1516_v18, %v2700_v3 }
 0x1a5   : > { %v1993_v21 = vpack.c.bf16 %v1477_v6, %v1475_v19 }
 0x1a6   : > { %v2001_v26 = vpack.c.bf16 %v1517_v20, %v1515_v51 }
 0x1a7   : > { %1622 = vst [vmem:[%s2718_s26 + $0x38] sm:$0xff] %v1993_v21 }
 0x1a8   : > { %1630 = vst [vmem:[%s2718_s26 + $0x78] sm:$0xff] %v2001_v26 }
 0x1a9 PF: > { %p17_p7 = scmp.ge.s32.totalorder %s2409_s29, 6   ;;  %s2795_s18 = smov %s2316_s19 }
 0x1aa   : > { %s2796_s19 = smov %s2320_s20  ;;  %s2797_s20 = smov %s2426_s12 }
 0x1ab   : > { %s2798_s21 = smov %s2409_s29  ;;  %19 = sbr.rel (!%p17_p7) target bundleno = 4 (0x4), region = 100 }
 0x1b0   :  { %1693 = vsyncpa [#allocation3], 1 }
 0x1b1   :  { %1695 = vsyncpa [#allocation3 + $0x1], 1 }
 0x1b2   :  { %1696 = vsyncpa [#allocation5], 1 }

// kernel: _mha_forward.3
= control target key start
LH: loop header
LB: loop body
LE: loop exit
PB: predicated region body
PF: predicated region fallthrough
CT: control target
= control target key end

     0   :  { %15 = vsyncpa [#allocation4], 0  ;;  %s7643_s0 = inlined_call_operand.vmem [shape: bf16[16,128,64], index: 0, kind: input, shape index: {}]   ;;  %s7644_s1 = inlined_call_operand.vmem [shape: bf16[16,128,64], index: 1, kind: input, shape index: {}]   ;;  %s7645_s2 = inlined_call_operand.vmem [shape: bf16[16,128,64], index: 2, kind: input, shape index: {}]   ;;  %s7646_s3 = inlined_call_operand.vmem [shape: f32[512,256], index: 3, kind: input, shape index: {}]   ;;  %s7647_s4 = inlined_call_operand.vmem [shape: bf16[256,256], index: 4, kind: input, shape index: {}]   ;;  %s7648_s5 = inlined_call_operand.vmem [shape: f32[1,256], index: 5, kind: input, shape index: {}]   ;;  %s7649_s6 = inlined_call_operand.vmem [shape: f32[1,256], index: 6, kind: input, shape index: {}]   ;;  %s7650_s7 = inlined_call_operand.vmem [shape: f32[1,256], index: 7, kind: input, shape index: {}]   ;;  %s7651_s8 = inlined_call_operand.hbm [shape: f32[512,256], index: 8, kind: output, shape index: {0}]   ;;  %s7652_s9 = inlined_call_operand.hbm [shape: f32[16,128,128], index: 9, kind: output, shape index: {1}]  }
   0x1   :  { %17 = vsyncpa [#allocation4 + $0x1], 0 }
   0x2   :  { %18 = vsyncpa [#allocation6], 0 }
   0x3   :  { %20 = vsyncpa [#allocation6 + $0x1], 0  ;;  %s5959_s30 = smov 0   ;;  %s5961_s10 = smov 0  }
   0x4   :  { %s5963_s11 = smov 0   ;;  %s5965_s12 = smov 0  }
   0x5 LB: > { %s5980_s13 = sadd.s32 4294967295, %s5900_s12   ;;  %s4493_s14 = sadd.s32 4294967294, %s5900_s12   ;;  %s5900_s12 = sphi %s5965_s12, %s7707_s12   ;;  %s5896_s11 = sphi %s5963_s11, %s7706_s11   ;;  %s5892_s10 = sphi %s5961_s10, %s7705_s10   ;;  %s5888_s30 = sphi %s5959_s30, %s7704_s30  }
   0x6   : > { %s5984_s15 = sadd.s32 1, %s5900_s12   ;;  %s221_s16 = sadd.s32 1, %s5896_s11 }
   0x7   : > { %s218_s17 = ssub.s32 %s5900_s12, %s5984_s15  ;;  %p231_p0 = scmp.ne.s32.totalorder %s5896_s11, %s5892_s10 }
   0x8   : > { %p219_p1 = scmp.eq.s32.totalorder %s218_s17, 0  ;;  %p232_p2 = scmp.eq.s32.totalorder %s5980_s13, 3 }
   0x9   : > { %p237_p3 = scmp.ne.s32.totalorder %s5892_s10, %s5888_s30  ;;  %p238_p4 = scmp.eq.s32.totalorder %s4493_s14, 3 }
   0xa   : > { %s5995_s18 = scalar_select %p219_p1, %s5896_s11, %s221_s16  }
   0xb   : > { %p5997_p5 = por %p232_p2, %p231_p0  ;;  %p6001_p6 = por %p238_p4, %p237_p3 }
   0xc   : > { %p4496_p7 = scmp.ge.s32.totalorder %s5900_s12, 1  ;;  %p334_p8 = scmp.lt.s32.totalorder %s5900_s12, 5 }
   0xe   : > { %p335_p9 = pnand %p4496_p7, %p334_p8 }
  0x10   : > { %338 = sbr.rel (%p335_p9) target bundleno = 3177 (0xc69), region = 52 }
  0x15   : > { %s4499_s21 = sshll.u32 %s5980_s13, 2  ;;  %vm537_vm0 = vcmask 523264   ;;  %s6155_s17 = sand.u32 1, %s5892_s10  }
  0x16   : > { %p395_p10 = scmp.lt.s32.totalorder %s4499_s21, 15  ;;  %s4508_s14 = sshll.u32 %s5980_s13, 4 }
  0x17   : > { %p416_p11 = scmp.lt.s32.totalorder %s4508_s14, 63  ;;  %s5903_s24 = smov [#allocation5]  }
  0x18   : > { %s7709_s21 = smov (!%p395_p10, %s4499_s21), 15  ;;  %s5814_s26 = sshll.u32 %s5903_s24, 4  ;;  %s5815_s26 = int_to_ptr.vmem [resolvable:$false] %s5814_s26 }
  0x19   : > { %s6008_s22 = sshll.u32 %s7709_s21, 6  ;;  %s4498_s21 = sshll.u32 %s6155_s17, 9 }
  0x1a   : > { %s6014_s25 = scalar_lea.vmem %s7644_s1, %s6008_s22  ;;  %s6025_s28 = scalar_lea.vmem %s7643_s0, %s6008_s22 }
  0x1b   : > { %v5378_v0 = vld [vmem:[%s6014_s25 + $0x38] sm:$0xff]   ;;  %v5379_v1 = vld [vmem:[%s6014_s25 + $0x30] sm:$0xff]   ;;  %v5380_v3 = vld [vmem:[%s6014_s25 + $0x28] sm:$0xff]   ;;  %s6087_s16 = scalar_lea.vmem %s7645_s2, %s6008_s22  ;;  %s6159_s22 = scalar_lea.vmem [#allocation5], %s4498_s21 }
  0x1c   : > { %5297 = vmatprep.subr.msk.bf16.mxu0 %vm537_vm0, %v5378_v0  ;;  %v584_v2 = vsel %vm537_vm0, %v5378_v0, 0  ;;  %v581_v4 = vsel %vm537_vm0, %v5379_v1, 0  ;;  %v5386_v5 = vld [vmem:[%s6025_s28] sm:$0xff]   ;;  %v5382_v7 = vld [vmem:[%s6014_s25 + $0x18] sm:$0xff]   ;;  %v5383_v8 = vld [vmem:[%s6014_s25 + $0x10] sm:$0xff]   ;;  %v578_v9 = vsel %vm537_vm0, %v5380_v3, 0 }
  0x1d   : > { %5042 = vmatpush3.bf16.xpose.msra.mxu0 %v584_v2  ;;  %v5381_v6 = vld [vmem:[%s6014_s25 + $0x20] sm:$0xff]   ;;  %5057 = vmatprep.mubr.msk.bf16.mxu0 %vm537_vm0, %v5386_v5  ;;  %v572_v11 = vsel %vm537_vm0, %v5382_v7, 0  ;;  %v569_v12 = vsel %vm537_vm0, %v5383_v8, 0  ;;  %v5384_v13 = vld [vmem:[%s6014_s25 + $0x8] sm:$0xff]   ;;  %v5388_v18 = vld [vmem:[%s6025_s28 + $0x10] sm:$0xff]   ;;  %s7711_s14 = smov (!%p416_p11, %s4508_s14), 63 }
  0x1e   : > { %5298 = vmatprep.subr.msk.bf16.mxu0 %vm537_vm0, %v5379_v1  ;;  %v575_v10 = vsel %vm537_vm0, %v5381_v6, 0  ;;  %v5385_v14 = vld [vmem:[%s6014_s25] sm:$0xff]   ;;  %v566_v15 = vsel %vm537_vm0, %v5384_v13, 0  ;;  %v5387_v17 = vld [vmem:[%s6025_s28 + $0x8] sm:$0xff]   ;;  %v5389_v19 = vld [vmem:[%s6025_s28 + $0x18] sm:$0xff]   ;;  %s4908_s21 = sshll.u32 %s7711_s14, 4 }
  0x1f   : > { %v563_v16 = vsel %vm537_vm0, %v5385_v14, 0  ;;  %v5390_v20 = vld [vmem:[%s6025_s28 + $0x20] sm:$0xff]   ;;  %v5391_v21 = vld [vmem:[%s6025_s28 + $0x28] sm:$0xff]   ;;  %v5392_v22 = vld [vmem:[%s6025_s28 + $0x30] sm:$0xff]   ;;  %s6995_s27 = scalar_lea.vmem %s7646_s3, %s4908_s21 }
  0x20   : > { %v5393_v23 = vld [vmem:[%s6025_s28 + $0x38] sm:$0xff]   ;;  %v5395_v41 = vld [vmem:[%s6087_s16 + $0x30] sm:$0xff]  }
  0x21   : > { %v5394_v40 = vld [vmem:[%s6087_s16 + $0x38] sm:$0xff]  }
  0x22   : > { %5073 = vmatprep.subr.bf16.mxu1 %v5394_v40 }
  0x23   : > { %5074 = vmatpush3.bf16.msra.mxu1 %v5394_v40  ;;  %v5399_v40 = vld [vmem:[%s6087_s16 + $0x10] sm:$0xff]  }
  0x24   : > { %5075 = vmatprep.subr.bf16.mxu1 %v5395_v41 }
  0x25   : > { %5044 = vmatpush3.bf16.xpose.msra.mxu0 %v581_v4 }
  0x26   : > { %5299 = vmatprep.subr.msk.bf16.mxu0 %vm537_vm0, %v5380_v3 }
  0x27   : > { %5076 = vmatpush3.bf16.msra.mxu1 %v5395_v41 }
  0x2d   : > { %5046 = vmatpush3.bf16.xpose.msra.mxu0 %v578_v9 }
  0x2e   : > { %5300 = vmatprep.subr.msk.bf16.mxu0 %vm537_vm0, %v5381_v6 }
  0x35   : > { %5048 = vmatpush3.bf16.xpose.msra.mxu0 %v575_v10 }
  0x36   : > { %5301 = vmatprep.subr.msk.bf16.mxu0 %vm537_vm0, %v5382_v7 }
  0x3d   : > { %5050 = vmatpush3.bf16.xpose.msra.mxu0 %v572_v11 }
  0x3e   : > { %5302 = vmatprep.subr.msk.bf16.mxu0 %vm537_vm0, %v5383_v8 }
  0x45   : > { %5052 = vmatpush3.bf16.xpose.msra.mxu0 %v569_v12 }
  0x46   : > { %5303 = vmatprep.subr.msk.bf16.mxu0 %vm537_vm0, %v5384_v13 }
  0x4d   : > { %5054 = vmatpush3.bf16.xpose.msra.mxu0 %v566_v15 }
  0x4e   : > { %5304 = vmatprep.subr.msk.bf16.mxu0 %vm537_vm0, %v5385_v14 }
  0x55   : > { %5056 = vmatpush3.bf16.xpose.msra.mxu0 %v563_v16 }
  0x5c   : > { %5058 = vmatmul.mubr.msk.bf16.vlgmr.msra.gmra.mxu0 %vm537_vm0, %v5387_v17 }
  0x5d   : > { %5061 = vmatprep.mubr.msk.bf16.mxu0 %vm537_vm0, %v5388_v18 }
  0x64   : > { %5062 = vmatmul.mubr.msk.bf16.gmra.mxu0 %vm537_vm0, %v5389_v19 }
  0x65   : > { %5065 = vmatprep.mubr.msk.bf16.mxu0 %vm537_vm0, %v5390_v20 }
  0x6c   : > { %5066 = vmatmul.mubr.msk.bf16.gmra.mxu0 %vm537_vm0, %v5391_v21 }
  0x6d   : > { %5069 = vmatprep.mubr.msk.bf16.mxu0 %vm537_vm0, %v5392_v22 }
  0x74   : > { %5070 = vmatmul.mubr.msk.bf16.gmra.mxu0 %vm537_vm0, %v5393_v23 }
 0x11c   : > { %v5059_v24 = vpop.f32.mrf.mxu0 }
 0x11d   : > { %687 = vmax.xlane.f32.xlu1 %v5059_v24 }
 0x11e   : > { %v620_v25 = vpop.f32.mrf.mxu0 }
 0x11f   : > { %683 = vmax.xlane.f32.xlu0 %v620_v25 }
 0x120   : > { %v5060_v26 = vpop.f32.mrf.mxu0 }
 0x121   : > { %689 = vmax.xlane.f32.xlu1 %v5060_v26 }
 0x122   : > { %v623_v27 = vpop.f32.mrf.mxu0 }
 0x123   : > { %685 = vmax.xlane.f32.xlu0 %v623_v27 }
 0x124   : > { %v5063_v28 = vpop.f32.mrf.mxu0 }
 0x126   : > { %v636_v29 = vpop.f32.mrf.mxu0 }
 0x127   : > { %691 = vmax.xlane.f32.xlu0 %v636_v29 }
 0x128   : > { %v5064_v30 = vpop.f32.mrf.mxu0 }
 0x12a   : > { %v639_v31 = vpop.f32.mrf.mxu0 }
 0x12b   : > { %695 = vmax.xlane.f32.xlu0 %v5063_v28  ;;  %693 = vmax.xlane.f32.xlu1 %v639_v31 }
 0x12c   : > { %v6062_v32 = vpop.f32.mrf.mxu0 }
 0x12e   : > { %v652_v33 = vpop.f32.mrf.mxu0 }
 0x12f   : > { %697 = vmax.xlane.f32.xlu1 %v5064_v30  ;;  %699 = vmax.xlane.f32.xlu0 %v652_v33 }
 0x130   : > { %v6064_v34 = vpop.f32.mrf.mxu0 }
 0x132   : > { %v6066_v35 = vpop.f32.mrf.mxu0 }
 0x133   : > { %703 = vmax.xlane.f32.xlu0 %v6062_v32  ;;  %701 = vmax.xlane.f32.xlu1 %v6066_v35 }
 0x134   : > { %v6070_v36 = vpop.f32.mrf.mxu0 }
 0x136   : > { %v6072_v37 = vpop.f32.mrf.mxu0 }
 0x137   : > { %705 = vmax.xlane.f32.xlu1 %v6064_v34  ;;  %707 = vmax.xlane.f32.xlu0 %v6072_v37 }
 0x138   : > { %v6076_v38 = vpop.f32.mrf.mxu0 }
 0x13a   : > { %v6078_v39 = vpop.f32.mrf.mxu0 }
 0x13b   : > { %711 = vmax.xlane.f32.xlu0 %v6070_v36  ;;  %709 = vmax.xlane.f32.xlu1 %v6078_v39 }
 0x13f   : > { %713 = vmax.xlane.f32.xlu1 %v6076_v38 }
 0x1a6   : > { %v688_v42 = vpop.xlane.xlu1 %687 }
 0x1a7   : > { %v717_v43 = vsub.f32 %v5059_v24, %v688_v42 }
 0x1a8   : > { %v684_v44 = vpop.xlane.xlu0 %683 }
 0x1a9   : > { %v715_v45 = vsub.f32 %v620_v25, %v684_v44  ;;  %v735_v48 = vmul.f32 1.442695, %v717_v43  ;;  %v5400_v44 = vld [vmem:[%s6087_s16 + $0x8] sm:$0xff]  }
 0x1aa   : > { %v690_v46 = vpop.xlane.xlu1 %689 }
 0x1ab   : > { %v731_v47 = vmul.f32 1.442695, %v715_v45  ;;  %v718_v49 = vsub.f32 %v5060_v26, %v690_v46  ;;  %v5396_v26 = vld [vmem:[%s6087_s16 + $0x28] sm:$0xff]  }
 0x1ac   : > { %v686_v50 = vpop.xlane.xlu0 %685  ;;  %5077 = vmatprep.subr.bf16.mxu1 %v5396_v26 }
 0x1ad   : > { %5522 = vpow2.f32 %v731_v47  ;;  %v716_v51 = vsub.f32 %v623_v27, %v686_v50  ;;  %v737_v53 = vmul.f32 1.442695, %v718_v49  ;;  %5078 = vmatpush3.bf16.msra.mxu1 %v5396_v26  ;;  %v5401_v47 = vld [vmem:[%s6087_s16] sm:$0xff]  }
 0x1ae   : > { %5524 = vpow2.f32 %v735_v48  ;;  %v5402_v48 = vld [vmem:[%s6014_s25 + $0x78] sm:$0xff]  }
 0x1af   : > { %v733_v52 = vmul.f32 1.442695, %v716_v51 }
 0x1b0   : > { %v692_v54 = vpop.xlane.xlu0 %691 }
 0x1b1   : > { %5526 = vpow2.f32 %v733_v52  ;;  %v719_v55 = vsub.f32 %v636_v29, %v692_v54 }
 0x1b2   : > { %5528 = vpow2.f32 %v737_v53 }
 0x1b3   : > { %v739_v56 = vmul.f32 1.442695, %v719_v55 }
 0x1b4   : > { %v696_v57 = vpop.xlane.xlu0 %695  ;;  %v694_v58 = vpop.xlane.xlu1 %693 }
 0x1b5   : > { %5530 = vpow2.f32 %v739_v56  ;;  %v721_v59 = vsub.f32 %v5063_v28, %v696_v57  ;;  %v720_v60 = vsub.f32 %v639_v31, %v694_v58 }
 0x1b7   : > { %v743_v61 = vmul.f32 1.442695, %v721_v59  ;;  %v741_v62 = vmul.f32 1.442695, %v720_v60 }
 0x1b8   : > { %v698_v63 = vpop.xlane.xlu1 %697  ;;  %v700_v0 = vpop.xlane.xlu0 %699 }
 0x1b9   : > { %5532 = vpow2.f32 %v743_v61  ;;  %v722_v1 = vsub.f32 %v5064_v30, %v698_v63  ;;  %v723_v2 = vsub.f32 %v652_v33, %v700_v0  ;;  %v5397_v33 = vld [vmem:[%s6087_s16 + $0x20] sm:$0xff]  }
 0x1ba   : > { %v6091_v3 = vpop.eup %5522  ;;  %5534 = vpow2.f32 %v741_v62  ;;  %5079 = vmatprep.subr.bf16.mxu1 %v5397_v33 }
 0x1bb   : > { %v745_v4 = vmul.f32 1.442695, %v722_v1  ;;  %v747_v5 = vmul.f32 1.442695, %v723_v2  ;;  %763 = vadd.xlane.f32.xlu0 %v6091_v3  ;;  %v6094_v8 = vpop.eup %5524  ;;  %5080 = vmatpush3.bf16.msra.mxu1 %v5397_v33 }
 0x1bc   : > { %v704_v6 = vpop.xlane.xlu0 %703  ;;  %v702_v7 = vpop.xlane.xlu1 %701 }
 0x1bd   : > { %5536 = vpow2.f32 %v745_v4  ;;  %v725_v9 = vsub.f32 %v6062_v32, %v704_v6  ;;  %v724_v10 = vsub.f32 %v6066_v35, %v702_v7 }
 0x1be   : > { %v6098_v11 = vpop.eup %5526  ;;  %5538 = vpow2.f32 %v747_v5 }
 0x1bf   : > { %v751_v12 = vmul.f32 1.442695, %v725_v9  ;;  %v749_v13 = vmul.f32 1.442695, %v724_v10  ;;  %767 = vadd.xlane.f32.xlu0 %v6094_v8  ;;  %765 = vadd.xlane.f32.xlu1 %v6098_v11  ;;  %v6102_v16 = vpop.eup %5528 }
 0x1c0   : > { %v706_v14 = vpop.xlane.xlu1 %705  ;;  %v708_v15 = vpop.xlane.xlu0 %707 }
 0x1c1   : > { %5540 = vpow2.f32 %v751_v12  ;;  %v726_v17 = vsub.f32 %v6064_v34, %v706_v14  ;;  %v727_v18 = vsub.f32 %v6072_v37, %v708_v15  ;;  %v5398_v37 = vld [vmem:[%s6087_s16 + $0x18] sm:$0xff]   ;;  %v5403_v12 = vld [vmem:[%s6014_s25 + $0x70] sm:$0xff]  }
 0x1c2   : > { %v6106_v19 = vpop.eup %5530  ;;  %5542 = vpow2.f32 %v749_v13  ;;  %5081 = vmatprep.subr.bf16.mxu1 %v5398_v37  ;;  %v1185_v26 = vsel %vm537_vm0, %v5403_v12, 0 }
 0x1c3   : > { %v753_v20 = vmul.f32 1.442695, %v726_v17  ;;  %v755_v21 = vmul.f32 1.442695, %v727_v18  ;;  %771 = vadd.xlane.f32.xlu0 %v6106_v19  ;;  %769 = vadd.xlane.f32.xlu1 %v6102_v16 }
 0x1c4   : > { %v712_v22 = vpop.xlane.xlu0 %711  ;;  %v710_v23 = vpop.xlane.xlu1 %709  ;;  %5082 = vmatpush3.bf16.msra.mxu1 %v5398_v37 }
 0x1c5   : > { %5544 = vpow2.f32 %v753_v20  ;;  %v729_v24 = vsub.f32 %v6070_v36, %v712_v22  ;;  %v728_v25 = vsub.f32 %v6078_v39, %v710_v23  ;;  %5083 = vmatprep.subr.bf16.mxu1 %v5399_v40 }
 0x1c6   : > { %v6113_v27 = vpop.eup %5532  ;;  %5546 = vpow2.f32 %v755_v21 }
 0x1c7   : > { %v6115_v28 = vpop.eup %5534  ;;  %v759_v29 = vmul.f32 1.442695, %v729_v24  ;;  %v757_v30 = vmul.f32 1.442695, %v728_v25  ;;  %775 = vadd.xlane.f32.xlu0 %v6113_v27 }
 0x1c8   : > { %773 = vadd.xlane.f32.xlu1 %v6115_v28  ;;  %v714_v31 = vpop.xlane.xlu1 %713  ;;  %5084 = vmatpush3.bf16.msra.mxu1 %v5399_v40 }
 0x1c9   : > { %5548 = vpow2.f32 %v759_v29  ;;  %v730_v32 = vsub.f32 %v6076_v38, %v714_v31  ;;  %5085 = vmatprep.subr.bf16.mxu1 %v5400_v44 }
 0x1ca   : > { %v6121_v34 = vpop.eup %5536  ;;  %5550 = vpow2.f32 %v757_v30 }
 0x1cb   : > { %v6123_v35 = vpop.eup %5538  ;;  %v761_v36 = vmul.f32 1.442695, %v730_v32 }
 0x1cc   : > { %779 = vadd.xlane.f32.xlu0 %v6123_v35  ;;  %777 = vadd.xlane.f32.xlu1 %v6121_v34 }
 0x1cd   : > { %5552 = vpow2.f32 %v761_v36  ;;  %5086 = vmatpush3.bf16.msra.mxu1 %v5400_v44 }
 0x1ce   : > { %v6128_v39 = vpop.eup %5540  ;;  %5087 = vmatprep.subr.bf16.mxu1 %v5401_v47 }
 0x1cf   : > { %v6130_v38 = vpop.eup %5542 }
 0x1d0   : > { %783 = vadd.xlane.f32.xlu0 %v6128_v39  ;;  %781 = vadd.xlane.f32.xlu1 %v6130_v38 }
 0x1d1   : > { %5088 = vmatpush3.bf16.msra.mxu1 %v5401_v47 }
 0x1d2   : > { %v6135_v41 = vpop.eup %5544  ;;  %5305 = vmatprep.subr.msk.bf16.mxu1 %vm537_vm0, %v5402_v48 }
 0x1d3   : > { %v6137_v42 = vpop.eup %5546 }
 0x1d4   : > { %787 = vadd.xlane.f32.xlu0 %v6137_v42  ;;  %785 = vadd.xlane.f32.xlu1 %v6135_v41 }
 0x1d6   : > { %v6141_v43 = vpop.eup %5548 }
 0x1d7   : > { %v6144_v45 = vpop.eup %5550 }
 0x1d8   : > { %791 = vadd.xlane.f32.xlu0 %v6141_v43  ;;  %789 = vadd.xlane.f32.xlu1 %v6144_v45 }
 0x1da   : > { %v6148_v46 = vpop.eup %5552 }
 0x1dc   : > { %793 = vadd.xlane.f32.xlu1 %v6148_v46 }
 0x244   : > { %v764_v49 = vpop.xlane.xlu0 %763 }
 0x245   : > { %5554 = vrcp.f32 %v764_v49 }
 0x248   : > { %v768_v50 = vpop.xlane.xlu0 %767  ;;  %v766_v51 = vpop.xlane.xlu1 %765 }
 0x249   : > { %5556 = vrcp.f32 %v768_v50  ;;  %v5410_v50 = vld [vmem:[%s6025_s28 + $0x40] sm:$0xff]  }
 0x24a   : > { %5558 = vrcp.f32 %v766_v51  ;;  %v5406_v51 = vld [vmem:[%s6014_s25 + $0x58] sm:$0xff]  }
 0x24c   : > { %v772_v52 = vpop.xlane.xlu0 %771  ;;  %v770_v53 = vpop.xlane.xlu1 %769 }
 0x24d   : > { %5560 = vrcp.f32 %v772_v52 }
 0x24e   : > { %5562 = vrcp.f32 %v770_v53  ;;  %v5408_v53 = vld [vmem:[%s6014_s25 + $0x48] sm:$0xff]  }
 0x250   : > { %v776_v54 = vpop.xlane.xlu0 %775 }
 0x251   : > { %5564 = vrcp.f32 %v776_v54  ;;  %v774_v55 = vpop.xlane.xlu1 %773  ;;  %v1170_v54 = vsel %vm537_vm0, %v5408_v53, 0 }
 0x252   : > { %v5555_v56 = vpop.eup %5554  ;;  %5566 = vrcp.f32 %v774_v55  ;;  %v5409_v55 = vld [vmem:[%s6014_s25 + $0x40] sm:$0xff]  }
 0x253   : > { %v811_v57 = vmul.f32 %v5555_v56, %v6091_v3  ;;  %v1167_v56 = vsel %vm537_vm0, %v5409_v55, 0 }
 0x255   : > { %v780_v58 = vpop.xlane.xlu0 %779  ;;  %v778_v59 = vpop.xlane.xlu1 %777  ;;  %827 = vst [vmem:[%s6159_s22] sm:$0xff] %v811_v57 }
 0x256   : > { %v5557_v60 = vpop.eup %5556  ;;  %5568 = vrcp.f32 %v780_v58  ;;  %v5412_v58 = vld [vmem:[%s6025_s28 + $0x50] sm:$0xff]  }
 0x257   : > { %v5559_v61 = vpop.eup %5558  ;;  %5570 = vrcp.f32 %v778_v59  ;;  %v813_v62 = vmul.f32 %v5557_v60, %v6094_v8  ;;  %v5413_v59 = vld [vmem:[%s6025_s28 + $0x58] sm:$0xff]   ;;  %v5414_v60 = vld [vmem:[%s6025_s28 + $0x60] sm:$0xff]  }
 0x258   : > { %v812_v63 = vmul.f32 %v5559_v61, %v6098_v11  ;;  %v1188_v11 = vsel %vm537_vm0, %v5402_v48, 0  ;;  %v5415_v61 = vld [vmem:[%s6025_s28 + $0x68] sm:$0xff]  }
 0x259   : > { %v784_v0 = vpop.xlane.xlu0 %783  ;;  %v782_v1 = vpop.xlane.xlu1 %781  ;;  %829 = vst [vmem:[%s6159_s22 + $0x10] sm:$0xff] %v813_v62 }
 0x25a   : > { %v5561_v2 = vpop.eup %5560  ;;  %5572 = vrcp.f32 %v784_v0  ;;  %828 = vst [vmem:[%s6159_s22 + $0x8] sm:$0xff] %v812_v63  ;;  %v843_v3 = vpack.c.bf16 %v812_v63, %v811_v57  ;;  %v5411_v57 = vld [vmem:[%s6025_s28 + $0x48] sm:$0xff]   ;;  %v5417_v63 = vld [vmem:[%s6025_s28 + $0x78] sm:$0xff]  }
 0x25b   : > { %v5563_v4 = vpop.eup %5562  ;;  %5574 = vrcp.f32 %v782_v1  ;;  %v815_v5 = vmul.f32 %v5561_v2, %v6106_v19 }
 0x25c   : > { %5089 = vmatprep.mubr.bf16.mxu1 %v843_v3  ;;  %v814_v6 = vmul.f32 %v5563_v4, %v6102_v16 }
 0x25d   : > { %v788_v7 = vpop.xlane.xlu0 %787  ;;  %v786_v8 = vpop.xlane.xlu1 %785  ;;  %831 = vst [vmem:[%s6159_s22 + $0x20] sm:$0xff] %v815_v5 }
 0x25e   : > { %v5565_v9 = vpop.eup %5564  ;;  %5576 = vrcp.f32 %v788_v7  ;;  %830 = vst [vmem:[%s6159_s22 + $0x18] sm:$0xff] %v814_v6  ;;  %v844_v10 = vpack.c.bf16 %v814_v6, %v813_v62  ;;  %v5416_v62 = vld [vmem:[%s6025_s28 + $0x70] sm:$0xff]  }
 0x25f   : > { %v5567_v13 = vpop.eup %5566  ;;  %5578 = vrcp.f32 %v786_v8  ;;  %v817_v14 = vmul.f32 %v5565_v9, %v6113_v27  ;;  %v5404_v27 = vld [vmem:[%s6014_s25 + $0x68] sm:$0xff]  }
 0x260   : > { %5090 = vmatmul.mubr.bf16.vlgmr.msra.gmra.mxu1 %v844_v10  ;;  %v816_v15 = vmul.f32 %v5567_v13, %v6115_v28 }
 0x261   : > { %5106 = vmatpush3.bf16.xpose.msra.mxu1 %v1188_v11  ;;  %v792_v16 = vpop.xlane.xlu0 %791  ;;  %v790_v17 = vpop.xlane.xlu1 %789  ;;  %833 = vst [vmem:[%s6159_s22 + $0x30] sm:$0xff] %v817_v14 }
 0x262   : > { %5580 = vrcp.f32 %v792_v16  ;;  %832 = vst [vmem:[%s6159_s22 + $0x28] sm:$0xff] %v816_v15  ;;  %v845_v18 = vpack.c.bf16 %v816_v15, %v815_v5  ;;  %5306 = vmatprep.subr.msk.bf16.mxu1 %vm537_vm0, %v5403_v12 }
 0x263   : > { %v5569_v19 = vpop.eup %5568  ;;  %5582 = vrcp.f32 %v790_v17 }
 0x264   : > { %v5571_v20 = vpop.eup %5570  ;;  %5093 = vmatprep.mubr.bf16.mxu1 %v845_v18  ;;  %v819_v21 = vmul.f32 %v5569_v19, %v6123_v35 }
 0x265   : > { %v794_v22 = vpop.xlane.xlu1 %793  ;;  %v818_v23 = vmul.f32 %v5571_v20, %v6121_v34 }
 0x266   : > { %5584 = vrcp.f32 %v794_v22  ;;  %835 = vst [vmem:[%s6159_s22 + $0x40] sm:$0xff] %v819_v21 }
 0x267   : > { %v5573_v24 = vpop.eup %5572  ;;  %834 = vst [vmem:[%s6159_s22 + $0x38] sm:$0xff] %v818_v23  ;;  %v846_v25 = vpack.c.bf16 %v818_v23, %v817_v14 }
 0x268   : > { %v5575_v28 = vpop.eup %5574  ;;  %v821_v29 = vmul.f32 %v5573_v24, %v6128_v39  ;;  %v1182_v39 = vsel %vm537_vm0, %v5404_v27, 0 }
 0x269   : > { %5094 = vmatmul.mubr.bf16.gmra.mxu1 %v846_v25  ;;  %v820_v30 = vmul.f32 %v5575_v28, %v6130_v38  ;;  %v5405_v38 = vld [vmem:[%s6014_s25 + $0x60] sm:$0xff]  }
 0x26a   : > { %5108 = vmatpush3.bf16.xpose.msra.mxu1 %v1185_v26  ;;  %837 = vst [vmem:[%s6159_s22 + $0x50] sm:$0xff] %v821_v29 }
 0x26b   : > { %v5577_v31 = vpop.eup %5576  ;;  %836 = vst [vmem:[%s6159_s22 + $0x48] sm:$0xff] %v820_v30  ;;  %v847_v32 = vpack.c.bf16 %v820_v30, %v819_v21  ;;  %5307 = vmatprep.subr.msk.bf16.mxu1 %vm537_vm0, %v5404_v27 }
 0x26c   : > { %v5579_v33 = vpop.eup %5578  ;;  %v823_v34 = vmul.f32 %v5577_v31, %v6137_v42 }
 0x26d   : > { %5097 = vmatprep.mubr.bf16.mxu1 %v847_v32  ;;  %v822_v35 = vmul.f32 %v5579_v33, %v6135_v41  ;;  %v5418_v32 = vld [vmem:[%s6087_s16 + $0x78] sm:$0xff]   ;;  %v5419_v33 = vld [vmem:[%s6087_s16 + $0x70] sm:$0xff]  }
 0x26e   : > { %839 = vst [vmem:[%s6159_s22 + $0x60] sm:$0xff] %v823_v34  ;;  %5137 = vmatprep.subr.bf16.mxu0 %v5418_v32 }
 0x26f   : > { %v5581_v36 = vpop.eup %5580  ;;  %838 = vst [vmem:[%s6159_s22 + $0x58] sm:$0xff] %v822_v35  ;;  %v848_v37 = vpack.c.bf16 %v822_v35, %v821_v29  ;;  %5138 = vmatpush3.bf16.msra.mxu0 %v5418_v32 }
 0x270   : > { %v5583_v40 = vpop.eup %5582  ;;  %v825_v44 = vmul.f32 %v5581_v36, %v6141_v43  ;;  %v1179_v43 = vsel %vm537_vm0, %v5405_v38, 0  ;;  %5139 = vmatprep.subr.bf16.mxu0 %v5419_v33 }
 0x271   : > { %5098 = vmatmul.mubr.bf16.gmra.mxu1 %v848_v37  ;;  %v824_v42 = vmul.f32 %v5583_v40, %v6144_v45  ;;  %v1176_v45 = vsel %vm537_vm0, %v5406_v51, 0 }
 0x272   : > { %5110 = vmatpush3.bf16.xpose.msra.mxu1 %v1182_v39  ;;  %841 = vst [vmem:[%s6159_s22 + $0x70] sm:$0xff] %v825_v44 }
 0x273   : > { %v5585_v47 = vpop.eup %5584  ;;  %840 = vst [vmem:[%s6159_s22 + $0x68] sm:$0xff] %v824_v42  ;;  %v849_v41 = vpack.c.bf16 %v824_v42, %v823_v34  ;;  %5308 = vmatprep.subr.msk.bf16.mxu1 %vm537_vm0, %v5405_v38  ;;  %5140 = vmatpush3.bf16.msra.mxu0 %v5419_v33  ;;  %v5423_v33 = vld [vmem:[%s6087_s16 + $0x50] sm:$0xff]  }
 0x274   : > { %v826_v48 = vmul.f32 %v5585_v47, %v6148_v46  ;;  %v5407_v46 = vld [vmem:[%s6014_s25 + $0x50] sm:$0xff]  }
 0x275   : > { %5101 = vmatprep.mubr.bf16.mxu1 %v849_v41  ;;  %v1173_v52 = vsel %vm537_vm0, %v5407_v46, 0 }
 0x276   : > { %842 = vst [vmem:[%s6159_s22 + $0x78] sm:$0xff] %v826_v48  ;;  %v850_v49 = vpack.c.bf16 %v826_v48, %v825_v44 }
 0x279   : > { %5102 = vmatmul.mubr.bf16.gmra.mxu1 %v850_v49 }
 0x27a   : > { %5112 = vmatpush3.bf16.xpose.msra.mxu1 %v1179_v43  ;;  %5121 = vmatprep.mubr.msk.bf16.mxu1 %vm537_vm0, %v5410_v50 }
 0x27b   : > { %5309 = vmatprep.subr.msk.bf16.mxu1 %vm537_vm0, %v5406_v51 }
 0x282   : > { %5114 = vmatpush3.bf16.xpose.msra.mxu1 %v1176_v45 }
 0x283   : > { %5310 = vmatprep.subr.msk.bf16.mxu1 %vm537_vm0, %v5407_v46 }
 0x28a   : > { %5116 = vmatpush3.bf16.xpose.msra.mxu1 %v1173_v52 }
 0x28b   : > { %5311 = vmatprep.subr.msk.bf16.mxu1 %vm537_vm0, %v5408_v53 }
 0x292   : > { %5118 = vmatpush3.bf16.xpose.msra.mxu1 %v1170_v54 }
 0x293   : > { %5312 = vmatprep.subr.msk.bf16.mxu1 %vm537_vm0, %v5409_v55 }
 0x29a   : > { %5120 = vmatpush3.bf16.xpose.msra.mxu1 %v1167_v56 }
 0x2a1   : > { %5122 = vmatmul.mubr.msk.bf16.vlgmr.msra.gmra.mxu1 %vm537_vm0, %v5411_v57 }
 0x2a2   : > { %5125 = vmatprep.mubr.msk.bf16.mxu1 %vm537_vm0, %v5412_v58 }
 0x2a9   : > { %5126 = vmatmul.mubr.msk.bf16.gmra.mxu1 %vm537_vm0, %v5413_v59 }
 0x2aa   : > { %5129 = vmatprep.mubr.msk.bf16.mxu1 %vm537_vm0, %v5414_v60 }
 0x2b1   : > { %5130 = vmatmul.mubr.msk.bf16.gmra.mxu1 %vm537_vm0, %v5415_v61 }
 0x2b2   : > { %5133 = vmatprep.mubr.msk.bf16.mxu1 %vm537_vm0, %v5416_v62 }
 0x2b9   : > { %5134 = vmatmul.mubr.msk.bf16.gmra.mxu1 %vm537_vm0, %v5417_v63 }
 0x320   : > { %v5091_v0 = vpop.f32.mrf.mxu1 }
 0x321   : > { %1014 = vst.msk [vmem:[#allocation2 + $0x10] sm:$0xff] %vm537_vm0, %v5091_v0 }
 0x322   : > { %v949_v1 = vpop.f32.mrf.mxu1 }
 0x323   : > { %1012 = vst.msk [vmem:[#allocation2] sm:$0xff] %vm537_vm0, %v949_v1 }
 0x324   : > { %v5092_v2 = vpop.f32.mrf.mxu1 }
 0x325   : > { %1015 = vst.msk [vmem:[#allocation2 + $0x18] sm:$0xff] %vm537_vm0, %v5092_v2 }
 0x326   : > { %v952_v3 = vpop.f32.mrf.mxu1 }
 0x327   : > { %1013 = vst.msk [vmem:[#allocation2 + $0x8] sm:$0xff] %vm537_vm0, %v952_v3 }
 0x329   : > { %v5095_v4 = vpop.f32.mrf.mxu1 }
 0x32a   : > { %1018 = vst.msk [vmem:[#allocation2 + $0x30] sm:$0xff] %vm537_vm0, %v5095_v4 }
 0x32b   : > { %v965_v5 = vpop.f32.mrf.mxu1 }
 0x32c   : > { %1016 = vst.msk [vmem:[#allocation2 + $0x20] sm:$0xff] %vm537_vm0, %v965_v5 }
 0x32d   : > { %v5096_v6 = vpop.f32.mrf.mxu1 }
 0x32e   : > { %1019 = vst.msk [vmem:[#allocation2 + $0x38] sm:$0xff] %vm537_vm0, %v5096_v6 }
 0x32f   : > { %v968_v7 = vpop.f32.mrf.mxu1 }
 0x330   : > { %1017 = vst.msk [vmem:[#allocation2 + $0x28] sm:$0xff] %vm537_vm0, %v968_v7 }
 0x331   : > { %v5099_v8 = vpop.f32.mrf.mxu1 }
 0x332   : > { %1022 = vst.msk [vmem:[#allocation2 + $0x50] sm:$0xff] %vm537_vm0, %v5099_v8 }
 0x333   : > { %v981_v9 = vpop.f32.mrf.mxu1 }
 0x334   : > { %1020 = vst.msk [vmem:[#allocation2 + $0x40] sm:$0xff] %vm537_vm0, %v981_v9 }
 0x335   : > { %v5100_v10 = vpop.f32.mrf.mxu1 }
 0x336   : > { %1023 = vst.msk [vmem:[#allocation2 + $0x58] sm:$0xff] %vm537_vm0, %v5100_v10 }
 0x337   : > { %v984_v11 = vpop.f32.mrf.mxu1 }
 0x338   : > { %1021 = vst.msk [vmem:[#allocation2 + $0x48] sm:$0xff] %vm537_vm0, %v984_v11 }
 0x339   : > { %v5103_v12 = vpop.f32.mrf.mxu1 }
 0x33a   : > { %1026 = vst.msk [vmem:[#allocation2 + $0x70] sm:$0xff] %vm537_vm0, %v5103_v12 }
 0x33b   : > { %v997_v13 = vpop.f32.mrf.mxu1 }
 0x33c   : > { %1024 = vst.msk [vmem:[#allocation2 + $0x60] sm:$0xff] %vm537_vm0, %v997_v13 }
 0x33d   : > { %v5104_v14 = vpop.f32.mrf.mxu1 }
 0x33e   : > { %1027 = vst.msk [vmem:[#allocation2 + $0x78] sm:$0xff] %vm537_vm0, %v5104_v14 }
 0x33f   : > { %v1000_v15 = vpop.f32.mrf.mxu1 }
 0x340   : > { %1025 = vst.msk [vmem:[#allocation2 + $0x68] sm:$0xff] %vm537_vm0, %v1000_v15 }
 0x361   : > { %v5123_v16 = vpop.f32.mrf.mxu1 }
 0x363   : > { %v1224_v17 = vpop.f32.mrf.mxu1 }
 0x364   : > { %1287 = vmax.xlane.f32.xlu0 %v1224_v17 }
 0x365   : > { %v5124_v18 = vpop.f32.mrf.mxu1 }
 0x367   : > { %v1227_v19 = vpop.f32.mrf.mxu1 }
 0x368   : > { %1291 = vmax.xlane.f32.xlu0 %v5123_v16  ;;  %1289 = vmax.xlane.f32.xlu1 %v1227_v19 }
 0x369   : > { %v5127_v20 = vpop.f32.mrf.mxu1 }
 0x36b   : > { %v1240_v21 = vpop.f32.mrf.mxu1 }
 0x36c   : > { %1293 = vmax.xlane.f32.xlu1 %v5124_v18  ;;  %1295 = vmax.xlane.f32.xlu0 %v1240_v21 }
 0x36d   : > { %v5128_v22 = vpop.f32.mrf.mxu1 }
 0x36f   : > { %v1243_v23 = vpop.f32.mrf.mxu1 }
 0x370   : > { %1299 = vmax.xlane.f32.xlu0 %v5127_v20  ;;  %1297 = vmax.xlane.f32.xlu1 %v1243_v23 }
 0x371   : > { %v6246_v24 = vpop.f32.mrf.mxu1 }
 0x373   : > { %v1256_v25 = vpop.f32.mrf.mxu1 }
 0x374   : > { %1301 = vmax.xlane.f32.xlu1 %v5128_v22  ;;  %1303 = vmax.xlane.f32.xlu0 %v1256_v25 }
 0x375   : > { %v6248_v26 = vpop.f32.mrf.mxu1 }
 0x377   : > { %v6250_v27 = vpop.f32.mrf.mxu1 }
 0x378   : > { %1307 = vmax.xlane.f32.xlu0 %v6246_v24  ;;  %1305 = vmax.xlane.f32.xlu1 %v6250_v27 }
 0x379   : > { %v6254_v28 = vpop.f32.mrf.mxu1 }
 0x37b   : > { %v6256_v29 = vpop.f32.mrf.mxu1 }
 0x37c   : > { %1309 = vmax.xlane.f32.xlu1 %v6248_v26  ;;  %1311 = vmax.xlane.f32.xlu0 %v6256_v29 }
 0x37d   : > { %v6260_v30 = vpop.f32.mrf.mxu1 }
 0x37f   : > { %v6262_v31 = vpop.f32.mrf.mxu1 }
 0x380   : > { %1315 = vmax.xlane.f32.xlu0 %v6254_v28  ;;  %1313 = vmax.xlane.f32.xlu1 %v6262_v31 }
 0x384   : > { %1317 = vmax.xlane.f32.xlu1 %v6260_v30 }
 0x3ed   : > { %v1288_v34 = vpop.xlane.xlu0 %1287 }
 0x3ee   : > { %v1319_v35 = vsub.f32 %v1224_v17, %v1288_v34 }
 0x3f0   : > { %v1335_v36 = vmul.f32 1.442695, %v1319_v35 }
 0x3f1   : > { %v1292_v37 = vpop.xlane.xlu0 %1291  ;;  %v1290_v39 = vpop.xlane.xlu1 %1289 }
 0x3f2   : > { %5586 = vpow2.f32 %v1335_v36  ;;  %v1321_v38 = vsub.f32 %v5123_v16, %v1292_v37  ;;  %v1320_v40 = vsub.f32 %v1227_v19, %v1290_v39  ;;  %v5424_v36 = vld [vmem:[%s6087_s16 + $0x48] sm:$0xff]  }
 0x3f4   : > { %v1339_v44 = vmul.f32 1.442695, %v1321_v38  ;;  %v1337_v42 = vmul.f32 1.442695, %v1320_v40  ;;  %v5425_v38 = vld [vmem:[%s6087_s16 + $0x40] sm:$0xff]   ;;  %v5426_v40 = vld [vmem:[%s6014_s25 + $0xb8] sm:$0xff]  }
 0x3f5   : > { %v1294_v47 = vpop.xlane.xlu1 %1293  ;;  %v1296_v41 = vpop.xlane.xlu0 %1295 }
 0x3f6   : > { %5588 = vpow2.f32 %v1339_v44  ;;  %v1322_v48 = vsub.f32 %v5124_v18, %v1294_v47  ;;  %v1323_v49 = vsub.f32 %v1240_v21, %v1296_v41  ;;  %v5420_v18 = vld [vmem:[%s6087_s16 + $0x68] sm:$0xff]  }
 0x3f7   : > { %5590 = vpow2.f32 %v1337_v42  ;;  %5141 = vmatprep.subr.bf16.mxu0 %v5420_v18 }
 0x3f8   : > { %v1341_v50 = vmul.f32 1.442695, %v1322_v48  ;;  %v1343_v43 = vmul.f32 1.442695, %v1323_v49  ;;  %5142 = vmatpush3.bf16.msra.mxu0 %v5420_v18 }
 0x3f9   : > { %v1300_v51 = vpop.xlane.xlu0 %1299  ;;  %v1298_v45 = vpop.xlane.xlu1 %1297 }
 0x3fa   : > { %5592 = vpow2.f32 %v1341_v50  ;;  %v1325_v46 = vsub.f32 %v5127_v20, %v1300_v51  ;;  %v1324_v52 = vsub.f32 %v1243_v23, %v1298_v45 }
 0x3fb   : > { %5594 = vpow2.f32 %v1343_v43 }
 0x3fc   : > { %v1347_v53 = vmul.f32 1.442695, %v1325_v46  ;;  %v1345_v54 = vmul.f32 1.442695, %v1324_v52 }
 0x3fd   : > { %v1302_v55 = vpop.xlane.xlu1 %1301  ;;  %v1304_v56 = vpop.xlane.xlu0 %1303 }
 0x3fe   : > { %5596 = vpow2.f32 %v1347_v53  ;;  %v1326_v57 = vsub.f32 %v5128_v22, %v1302_v55  ;;  %v1327_v58 = vsub.f32 %v1256_v25, %v1304_v56  ;;  %v5421_v25 = vld [vmem:[%s6087_s16 + $0x60] sm:$0xff]  }
 0x3ff   : > { %v6269_v59 = vpop.eup %5586  ;;  %5598 = vpow2.f32 %v1345_v54  ;;  %5143 = vmatprep.subr.bf16.mxu0 %v5421_v25 }
 0x400   : > { %v1349_v60 = vmul.f32 1.442695, %v1326_v57  ;;  %v1351_v61 = vmul.f32 1.442695, %v1327_v58  ;;  %1367 = vadd.xlane.f32.xlu0 %v6269_v59  ;;  %5144 = vmatpush3.bf16.msra.mxu0 %v5421_v25 }
 0x401   : > { %v1308_v62 = vpop.xlane.xlu0 %1307  ;;  %v1306_v63 = vpop.xlane.xlu1 %1305 }
 0x402   : > { %5600 = vpow2.f32 %v1349_v60  ;;  %v1329_v0 = vsub.f32 %v6246_v24, %v1308_v62  ;;  %v1328_v1 = vsub.f32 %v6250_v27, %v1306_v63 }
 0x403   : > { %v6274_v2 = vpop.eup %5588  ;;  %5602 = vpow2.f32 %v1351_v61 }
 0x404   : > { %v6276_v3 = vpop.eup %5590  ;;  %v1355_v4 = vmul.f32 1.442695, %v1329_v0  ;;  %v1353_v5 = vmul.f32 1.442695, %v1328_v1  ;;  %1371 = vadd.xlane.f32.xlu0 %v6274_v2 }
 0x405   : > { %1369 = vadd.xlane.f32.xlu1 %v6276_v3  ;;  %v1310_v6 = vpop.xlane.xlu1 %1309  ;;  %v1312_v7 = vpop.xlane.xlu0 %1311 }
 0x406   : > { %5604 = vpow2.f32 %v1355_v4  ;;  %v1330_v8 = vsub.f32 %v6248_v26, %v1310_v6  ;;  %v1331_v9 = vsub.f32 %v6256_v29, %v1312_v7  ;;  %v5427_v4 = vld [vmem:[%s6014_s25 + $0xb0] sm:$0xff]  }
 0x407   : > { %v6282_v10 = vpop.eup %5592  ;;  %5606 = vpow2.f32 %v1353_v5  ;;  %v1791_v18 = vsel %vm537_vm0, %v5427_v4, 0 }
 0x408   : > { %v6284_v11 = vpop.eup %5594  ;;  %v1357_v12 = vmul.f32 1.442695, %v1330_v8  ;;  %v1359_v13 = vmul.f32 1.442695, %v1331_v9 }
 0x409   : > { %1375 = vadd.xlane.f32.xlu0 %v6284_v11  ;;  %1373 = vadd.xlane.f32.xlu1 %v6282_v10  ;;  %v1316_v14 = vpop.xlane.xlu0 %1315  ;;  %v1314_v15 = vpop.xlane.xlu1 %1313 }
 0x40a   : > { %5608 = vpow2.f32 %v1357_v12  ;;  %v1333_v16 = vsub.f32 %v6254_v28, %v1316_v14  ;;  %v1332_v17 = vsub.f32 %v6262_v31, %v1314_v15 }
 0x40b   : > { %v6291_v19 = vpop.eup %5596  ;;  %5610 = vpow2.f32 %v1359_v13 }
 0x40c   : > { %v6293_v20 = vpop.eup %5598  ;;  %v1363_v21 = vmul.f32 1.442695, %v1333_v16  ;;  %v1361_v22 = vmul.f32 1.442695, %v1332_v17 }
 0x40d   : > { %1379 = vadd.xlane.f32.xlu0 %v6291_v19  ;;  %1377 = vadd.xlane.f32.xlu1 %v6293_v20  ;;  %v1318_v23 = vpop.xlane.xlu1 %1317 }
 0x40e   : > { %5612 = vpow2.f32 %v1363_v21  ;;  %v1334_v24 = vsub.f32 %v6260_v30, %v1318_v23  ;;  %v5422_v30 = vld [vmem:[%s6087_s16 + $0x58] sm:$0xff]  }
 0x40f   : > { %v6299_v26 = vpop.eup %5600  ;;  %5614 = vpow2.f32 %v1361_v22  ;;  %5145 = vmatprep.subr.bf16.mxu0 %v5422_v30 }
 0x410   : > { %v6301_v27 = vpop.eup %5602  ;;  %v1365_v28 = vmul.f32 1.442695, %v1334_v24  ;;  %5146 = vmatpush3.bf16.msra.mxu0 %v5422_v30 }
 0x411   : > { %1383 = vadd.xlane.f32.xlu0 %v6301_v27  ;;  %1381 = vadd.xlane.f32.xlu1 %v6299_v26 }
 0x412   : > { %5616 = vpow2.f32 %v1365_v28  ;;  %5147 = vmatprep.subr.bf16.mxu0 %v5423_v33 }
 0x413   : > { %v6305_v29 = vpop.eup %5604 }
 0x414   : > { %v6308_v31 = vpop.eup %5606  ;;  %5148 = vmatpush3.bf16.msra.mxu0 %v5423_v33 }
 0x415   : > { %1387 = vadd.xlane.f32.xlu0 %v6305_v29  ;;  %1385 = vadd.xlane.f32.xlu1 %v6308_v31 }
 0x416   : > { %5149 = vmatprep.subr.bf16.mxu0 %v5424_v36 }
 0x417   : > { %v6312_v32 = vpop.eup %5608 }
 0x418   : > { %v6315_v34 = vpop.eup %5610  ;;  %5150 = vmatpush3.bf16.msra.mxu0 %v5424_v36 }
 0x419   : > { %1391 = vadd.xlane.f32.xlu0 %v6315_v34  ;;  %1389 = vadd.xlane.f32.xlu1 %v6312_v32 }
 0x41a   : > { %5151 = vmatprep.subr.bf16.mxu0 %v5425_v38 }
 0x41b   : > { %v6319_v35 = vpop.eup %5612 }
 0x41c   : > { %v6322_v37 = vpop.eup %5614  ;;  %5152 = vmatpush3.bf16.msra.mxu0 %v5425_v38 }
 0x41d   : > { %1395 = vadd.xlane.f32.xlu0 %v6319_v35  ;;  %1393 = vadd.xlane.f32.xlu1 %v6322_v37 }
 0x41e   : > { %5313 = vmatprep.subr.msk.bf16.mxu0 %vm537_vm0, %v5426_v40 }
 0x41f   : > { %v6326_v39 = vpop.eup %5616 }
 0x421   : > { %1397 = vadd.xlane.f32.xlu1 %v6326_v39 }
 0x489   : > { %v1368_v44 = vpop.xlane.xlu0 %1367 }
 0x48a   : > { %5618 = vrcp.f32 %v1368_v44 }
 0x48d   : > { %v1372_v42 = vpop.xlane.xlu0 %1371 }
 0x48e   : > { %5620 = vrcp.f32 %v1372_v42  ;;  %v1370_v47 = vpop.xlane.xlu1 %1369  ;;  %v5434_v42 = vld [vmem:[%s6025_s28 + $0x80] sm:$0xff]  }
 0x48f   : > { %5622 = vrcp.f32 %v1370_v47  ;;  %v5430_v47 = vld [vmem:[%s6014_s25 + $0x98] sm:$0xff]  }
 0x492   : > { %v1376_v41 = vpop.xlane.xlu0 %1375  ;;  %v1374_v48 = vpop.xlane.xlu1 %1373 }
 0x493   : > { %5624 = vrcp.f32 %v1376_v41 }
 0x494   : > { %5626 = vrcp.f32 %v1374_v48  ;;  %v5432_v48 = vld [vmem:[%s6014_s25 + $0x88] sm:$0xff]  }
 0x496   : > { %v1380_v49 = vpop.xlane.xlu0 %1379  ;;  %v1378_v50 = vpop.xlane.xlu1 %1377 }
 0x497   : > { %v5619_v43 = vpop.eup %5618  ;;  %5628 = vrcp.f32 %v1380_v49  ;;  %v1776_v49 = vsel %vm537_vm0, %v5432_v48, 0 }
 0x498   : > { %5630 = vrcp.f32 %v1378_v50  ;;  %v1415_v51 = vmul.f32 %v5619_v43, %v6269_v59  ;;  %v5433_v50 = vld [vmem:[%s6014_s25 + $0x80] sm:$0xff]  }
 0x499   : > { %v1773_v43 = vsel %vm537_vm0, %v5433_v50, 0 }
 0x49a   : > { %v1384_v45 = vpop.xlane.xlu0 %1383  ;;  %v1382_v46 = vpop.xlane.xlu1 %1381  ;;  %4599 = vst [vmem:[%s6159_s22 + $0x80] sm:$0xff] %v1415_v51 }
 0x49b   : > { %v5621_v52 = vpop.eup %5620  ;;  %5632 = vrcp.f32 %v1384_v45  ;;  %v5436_v45 = vld [vmem:[%s6025_s28 + $0x90] sm:$0xff]  }
 0x49c   : > { %v5623_v53 = vpop.eup %5622  ;;  %5634 = vrcp.f32 %v1382_v46  ;;  %v1417_v54 = vmul.f32 %v5621_v52, %v6274_v2  ;;  %v5437_v46 = vld [vmem:[%s6025_s28 + $0x98] sm:$0xff]   ;;  %v5438_v52 = vld [vmem:[%s6025_s28 + $0xa0] sm:$0xff]  }
 0x49d   : > { %v1416_v55 = vmul.f32 %v5623_v53, %v6276_v3  ;;  %v1794_v3 = vsel %vm537_vm0, %v5426_v40, 0  ;;  %v5439_v53 = vld [vmem:[%s6025_s28 + $0xa8] sm:$0xff]  }
 0x49e   : > { %v1388_v56 = vpop.xlane.xlu0 %1387  ;;  %v1386_v57 = vpop.xlane.xlu1 %1385  ;;  %4601 = vst [vmem:[%s6159_s22 + $0x90] sm:$0xff] %v1417_v54 }
 0x49f   : > { %5636 = vrcp.f32 %v1388_v56  ;;  %4600 = vst [vmem:[%s6159_s22 + $0x88] sm:$0xff] %v1416_v55  ;;  %v1448_v58 = vpack.c.bf16 %v1416_v55, %v1415_v51  ;;  %v5435_v51 = vld [vmem:[%s6025_s28 + $0x88] sm:$0xff]   ;;  %v5441_v55 = vld [vmem:[%s6025_s28 + $0xb8] sm:$0xff]  }
 0x4a0   : > { %v5625_v59 = vpop.eup %5624  ;;  %5638 = vrcp.f32 %v1386_v57 }
 0x4a1   : > { %v5627_v60 = vpop.eup %5626  ;;  %5153 = vmatprep.mubr.bf16.mxu0 %v1448_v58  ;;  %v1419_v61 = vmul.f32 %v5625_v59, %v6284_v11 }
 0x4a2   : > { %v1392_v62 = vpop.xlane.xlu0 %1391  ;;  %v1390_v63 = vpop.xlane.xlu1 %1389  ;;  %v1418_v0 = vmul.f32 %v5627_v60, %v6282_v10 }
 0x4a3   : > { %5640 = vrcp.f32 %v1392_v62  ;;  %4603 = vst [vmem:[%s6159_s22 + $0xa0] sm:$0xff] %v1419_v61 }
 0x4a4   : > { %v5629_v1 = vpop.eup %5628  ;;  %5642 = vrcp.f32 %v1390_v63  ;;  %4602 = vst [vmem:[%s6159_s22 + $0x98] sm:$0xff] %v1418_v0  ;;  %v1449_v2 = vpack.c.bf16 %v1418_v0, %v1417_v54  ;;  %v5440_v54 = vld [vmem:[%s6025_s28 + $0xb0] sm:$0xff]  }
 0x4a5   : > { %v5631_v5 = vpop.eup %5630  ;;  %v1421_v6 = vmul.f32 %v5629_v1, %v6291_v19  ;;  %v5428_v19 = vld [vmem:[%s6014_s25 + $0xa8] sm:$0xff]  }
 0x4a6   : > { %5154 = vmatmul.mubr.bf16.vlgmr.msra.gmra.mxu0 %v1449_v2  ;;  %v1396_v7 = vpop.xlane.xlu0 %1395  ;;  %v1394_v8 = vpop.xlane.xlu1 %1393  ;;  %v1420_v9 = vmul.f32 %v5631_v5, %v6293_v20  ;;  %v1788_v30 = vsel %vm537_vm0, %v5428_v19, 0 }
 0x4a7   : > { %5170 = vmatpush3.bf16.xpose.msra.mxu0 %v1794_v3  ;;  %5644 = vrcp.f32 %v1396_v7  ;;  %4605 = vst [vmem:[%s6159_s22 + $0xb0] sm:$0xff] %v1421_v6 }
 0x4a8   : > { %v5633_v10 = vpop.eup %5632  ;;  %5646 = vrcp.f32 %v1394_v8  ;;  %4604 = vst [vmem:[%s6159_s22 + $0xa8] sm:$0xff] %v1420_v9  ;;  %v1450_v11 = vpack.c.bf16 %v1420_v9, %v1419_v61  ;;  %5314 = vmatprep.subr.msk.bf16.mxu0 %vm537_vm0, %v5427_v4 }
 0x4a9   : > { %v5635_v12 = vpop.eup %5634  ;;  %v1423_v13 = vmul.f32 %v5633_v10, %v6301_v27 }
 0x4aa   : > { %5157 = vmatprep.mubr.bf16.mxu0 %v1450_v11  ;;  %v1398_v14 = vpop.xlane.xlu1 %1397  ;;  %v1422_v15 = vmul.f32 %v5635_v12, %v6299_v26 }
 0x4ab   : > { %5648 = vrcp.f32 %v1398_v14  ;;  %4607 = vst [vmem:[%s6159_s22 + $0xc0] sm:$0xff] %v1423_v13 }
 0x4ac   : > { %v5637_v16 = vpop.eup %5636  ;;  %4606 = vst [vmem:[%s6159_s22 + $0xb8] sm:$0xff] %v1422_v15  ;;  %v1451_v17 = vpack.c.bf16 %v1422_v15, %v1421_v6 }
 0x4ad   : > { %v5639_v20 = vpop.eup %5638  ;;  %v1425_v21 = vmul.f32 %v5637_v16, %v6305_v29 }
 0x4ae   : > { %5158 = vmatmul.mubr.bf16.gmra.mxu0 %v1451_v17  ;;  %v1424_v22 = vmul.f32 %v5639_v20, %v6308_v31  ;;  %v5429_v31 = vld [vmem:[%s6014_s25 + $0xa0] sm:$0xff]  }
 0x4af   : > { %5172 = vmatpush3.bf16.xpose.msra.mxu0 %v1791_v18  ;;  %4609 = vst [vmem:[%s6159_s22 + $0xd0] sm:$0xff] %v1425_v21 }
 0x4b0   : > { %v5641_v23 = vpop.eup %5640  ;;  %4608 = vst [vmem:[%s6159_s22 + $0xc8] sm:$0xff] %v1424_v22  ;;  %v1452_v24 = vpack.c.bf16 %v1424_v22, %v1423_v13  ;;  %5315 = vmatprep.subr.msk.bf16.mxu0 %vm537_vm0, %v5428_v19 }
 0x4b1   : > { %v5643_v25 = vpop.eup %5642  ;;  %v1427_v26 = vmul.f32 %v5641_v23, %v6315_v34 }
 0x4b2   : > { %5161 = vmatprep.mubr.bf16.mxu0 %v1452_v24  ;;  %v1426_v27 = vmul.f32 %v5643_v25, %v6312_v32  ;;  %v5442_v24 = vld [vmem:[%s6087_s16 + $0xb8] sm:$0xff]   ;;  %v5443_v25 = vld [vmem:[%s6087_s16 + $0xb0] sm:$0xff]  }
 0x4b3   : > { %4611 = vst [vmem:[%s6159_s22 + $0xe0] sm:$0xff] %v1427_v26  ;;  %5201 = vmatprep.subr.bf16.mxu1 %v5442_v24 }
 0x4b4   : > { %v5645_v28 = vpop.eup %5644  ;;  %4610 = vst [vmem:[%s6159_s22 + $0xd8] sm:$0xff] %v1426_v27  ;;  %v1453_v29 = vpack.c.bf16 %v1426_v27, %v1425_v21  ;;  %5202 = vmatpush3.bf16.msra.mxu1 %v5442_v24 }
 0x4b5   : > { %v5647_v33 = vpop.eup %5646  ;;  %v1429_v36 = vmul.f32 %v5645_v28, %v6319_v35  ;;  %v1785_v35 = vsel %vm537_vm0, %v5429_v31, 0  ;;  %5203 = vmatprep.subr.bf16.mxu1 %v5443_v25 }
 0x4b6   : > { %5162 = vmatmul.mubr.bf16.gmra.mxu0 %v1453_v29  ;;  %v1428_v34 = vmul.f32 %v5647_v33, %v6322_v37  ;;  %v1782_v37 = vsel %vm537_vm0, %v5430_v47, 0 }
 0x4b7   : > { %5174 = vmatpush3.bf16.xpose.msra.mxu0 %v1788_v30  ;;  %4613 = vst [vmem:[%s6159_s22 + $0xf0] sm:$0xff] %v1429_v36 }
 0x4b8   : > { %v5649_v38 = vpop.eup %5648  ;;  %4612 = vst [vmem:[%s6159_s22 + $0xe8] sm:$0xff] %v1428_v34  ;;  %v1454_v32 = vpack.c.bf16 %v1428_v34, %v1427_v26  ;;  %5316 = vmatprep.subr.msk.bf16.mxu0 %vm537_vm0, %v5429_v31  ;;  %5204 = vmatpush3.bf16.msra.mxu1 %v5443_v25  ;;  %v5447_v25 = vld [vmem:[%s6087_s16 + $0x90] sm:$0xff]  }
 0x4b9   : > { %v1430_v40 = vmul.f32 %v5649_v38, %v6326_v39  ;;  %v5431_v39 = vld [vmem:[%s6014_s25 + $0x90] sm:$0xff]  }
 0x4ba   : > { %5165 = vmatprep.mubr.bf16.mxu0 %v1454_v32  ;;  %v1779_v41 = vsel %vm537_vm0, %v5431_v39, 0 }
 0x4bb   : > { %4614 = vst [vmem:[%s6159_s22 + $0xf8] sm:$0xff] %v1430_v40  ;;  %v1455_v44 = vpack.c.bf16 %v1430_v40, %v1429_v36 }
 0x4be   : > { %5166 = vmatmul.mubr.bf16.gmra.mxu0 %v1455_v44 }
 0x4bf   : > { %5176 = vmatpush3.bf16.xpose.msra.mxu0 %v1785_v35  ;;  %5185 = vmatprep.mubr.msk.bf16.mxu0 %vm537_vm0, %v5434_v42 }
 0x4c0   : > { %5317 = vmatprep.subr.msk.bf16.mxu0 %vm537_vm0, %v5430_v47 }
 0x4c7   : > { %5178 = vmatpush3.bf16.xpose.msra.mxu0 %v1782_v37 }
 0x4c8   : > { %5318 = vmatprep.subr.msk.bf16.mxu0 %vm537_vm0, %v5431_v39 }
 0x4cf   : > { %5180 = vmatpush3.bf16.xpose.msra.mxu0 %v1779_v41 }
 0x4d0   : > { %5319 = vmatprep.subr.msk.bf16.mxu0 %vm537_vm0, %v5432_v48 }
 0x4d7   : > { %5182 = vmatpush3.bf16.xpose.msra.mxu0 %v1776_v49 }
 0x4d8   : > { %5320 = vmatprep.subr.msk.bf16.mxu0 %vm537_vm0, %v5433_v50 }
 0x4df   : > { %5184 = vmatpush3.bf16.xpose.msra.mxu0 %v1773_v43 }
 0x4e6   : > { %5186 = vmatmul.mubr.msk.bf16.vlgmr.msra.gmra.mxu0 %vm537_vm0, %v5435_v51 }
 0x4e7   : > { %5189 = vmatprep.mubr.msk.bf16.mxu0 %vm537_vm0, %v5436_v45 }
 0x4ee   : > { %5190 = vmatmul.mubr.msk.bf16.gmra.mxu0 %vm537_vm0, %v5437_v46 }
 0x4ef   : > { %5193 = vmatprep.mubr.msk.bf16.mxu0 %vm537_vm0, %v5438_v52 }
 0x4f6   : > { %5194 = vmatmul.mubr.msk.bf16.gmra.mxu0 %vm537_vm0, %v5439_v53 }
 0x4f7   : > { %5197 = vmatprep.mubr.msk.bf16.mxu0 %vm537_vm0, %v5440_v54 }
 0x4fe   : > { %5198 = vmatmul.mubr.msk.bf16.gmra.mxu0 %vm537_vm0, %v5441_v55 }
 0x566   : > { %v5155_v56 = vpop.f32.mrf.mxu0 }
 0x567   : > { %1620 = vst.msk [vmem:[#allocation2 + $0x90] sm:$0xff] %vm537_vm0, %v5155_v56 }
 0x568   : > { %v1555_v57 = vpop.f32.mrf.mxu0 }
 0x569   : > { %1618 = vst.msk [vmem:[#allocation2 + $0x80] sm:$0xff] %vm537_vm0, %v1555_v57 }
 0x56a   : > { %v5156_v58 = vpop.f32.mrf.mxu0 }
 0x56b   : > { %1621 = vst.msk [vmem:[#allocation2 + $0x98] sm:$0xff] %vm537_vm0, %v5156_v58 }
 0x56c   : > { %v1558_v59 = vpop.f32.mrf.mxu0 }
 0x56d   : > { %1619 = vst.msk [vmem:[#allocation2 + $0x88] sm:$0xff] %vm537_vm0, %v1558_v59 }
 0x56e   : > { %v5159_v60 = vpop.f32.mrf.mxu0 }
 0x56f   : > { %1624 = vst.msk [vmem:[#allocation2 + $0xb0] sm:$0xff] %vm537_vm0, %v5159_v60 }
 0x570   : > { %v1571_v61 = vpop.f32.mrf.mxu0 }
 0x571   : > { %1622 = vst.msk [vmem:[#allocation2 + $0xa0] sm:$0xff] %vm537_vm0, %v1571_v61 }
 0x572   : > { %v5160_v62 = vpop.f32.mrf.mxu0 }
 0x573   : > { %1625 = vst.msk [vmem:[#allocation2 + $0xb8] sm:$0xff] %vm537_vm0, %v5160_v62 }
 0x574   : > { %v1574_v63 = vpop.f32.mrf.mxu0 }
 0x575   : > { %1623 = vst.msk [vmem:[#allocation2 + $0xa8] sm:$0xff] %vm537_vm0, %v1574_v63 }
 0x576   : > { %v5163_v0 = vpop.f32.mrf.mxu0 }
 0x577   : > { %1628 = vst.msk [vmem:[#allocation2 + $0xd0] sm:$0xff] %vm537_vm0, %v5163_v0 }
 0x578   : > { %v1587_v1 = vpop.f32.mrf.mxu0 }
 0x579   : > { %1626 = vst.msk [vmem:[#allocation2 + $0xc0] sm:$0xff] %vm537_vm0, %v1587_v1 }
 0x57a   : > { %v5164_v2 = vpop.f32.mrf.mxu0 }
 0x57b   : > { %1629 = vst.msk [vmem:[#allocation2 + $0xd8] sm:$0xff] %vm537_vm0, %v5164_v2 }
 0x57c   : > { %v1590_v3 = vpop.f32.mrf.mxu0 }
 0x57d   : > { %1627 = vst.msk [vmem:[#allocation2 + $0xc8] sm:$0xff] %vm537_vm0, %v1590_v3 }
 0x57e   : > { %v5167_v4 = vpop.f32.mrf.mxu0 }
 0x57f   : > { %1632 = vst.msk [vmem:[#allocation2 + $0xf0] sm:$0xff] %vm537_vm0, %v5167_v4 }
 0x580   : > { %v1603_v5 = vpop.f32.mrf.mxu0 }
 0x581   : > { %1630 = vst.msk [vmem:[#allocation2 + $0xe0] sm:$0xff] %vm537_vm0, %v1603_v5 }
 0x582   : > { %v5168_v6 = vpop.f32.mrf.mxu0 }
 0x583   : > { %1633 = vst.msk [vmem:[#allocation2 + $0xf8] sm:$0xff] %vm537_vm0, %v5168_v6 }
 0x584   : > { %v1606_v7 = vpop.f32.mrf.mxu0 }
 0x585   : > { %1631 = vst.msk [vmem:[#allocation2 + $0xe8] sm:$0xff] %vm537_vm0, %v1606_v7 }
 0x5a6   : > { %v5187_v8 = vpop.f32.mrf.mxu0 }
 0x5a8   : > { %v1830_v9 = vpop.f32.mrf.mxu0 }
 0x5a9   : > { %1893 = vmax.xlane.f32.xlu0 %v1830_v9 }
 0x5aa   : > { %v5188_v10 = vpop.f32.mrf.mxu0 }
 0x5ac   : > { %v1833_v11 = vpop.f32.mrf.mxu0 }
 0x5ad   : > { %1897 = vmax.xlane.f32.xlu0 %v5187_v8  ;;  %1895 = vmax.xlane.f32.xlu1 %v1833_v11 }
 0x5ae   : > { %v5191_v12 = vpop.f32.mrf.mxu0 }
 0x5b0   : > { %v1846_v13 = vpop.f32.mrf.mxu0 }
 0x5b1   : > { %1899 = vmax.xlane.f32.xlu1 %v5188_v10  ;;  %1901 = vmax.xlane.f32.xlu0 %v1846_v13 }
 0x5b2   : > { %v5192_v14 = vpop.f32.mrf.mxu0 }
 0x5b4   : > { %v1849_v15 = vpop.f32.mrf.mxu0 }
 0x5b5   : > { %1905 = vmax.xlane.f32.xlu0 %v5191_v12  ;;  %1903 = vmax.xlane.f32.xlu1 %v1849_v15 }
 0x5b6   : > { %v6418_v16 = vpop.f32.mrf.mxu0 }
 0x5b8   : > { %v1862_v17 = vpop.f32.mrf.mxu0 }
 0x5b9   : > { %1907 = vmax.xlane.f32.xlu1 %v5192_v14  ;;  %1909 = vmax.xlane.f32.xlu0 %v1862_v17 }
 0x5ba   : > { %v6420_v18 = vpop.f32.mrf.mxu0 }
 0x5bc   : > { %v6422_v19 = vpop.f32.mrf.mxu0 }
 0x5bd   : > { %1913 = vmax.xlane.f32.xlu0 %v6418_v16  ;;  %1911 = vmax.xlane.f32.xlu1 %v6422_v19 }
 0x5be   : > { %v6426_v20 = vpop.f32.mrf.mxu0 }
 0x5c0   : > { %v6428_v21 = vpop.f32.mrf.mxu0 }
 0x5c1   : > { %1915 = vmax.xlane.f32.xlu1 %v6420_v18  ;;  %1917 = vmax.xlane.f32.xlu0 %v6428_v21 }
 0x5c2   : > { %v6432_v22 = vpop.f32.mrf.mxu0 }
 0x5c4   : > { %v6434_v23 = vpop.f32.mrf.mxu0 }
 0x5c5   : > { %1921 = vmax.xlane.f32.xlu0 %v6426_v20  ;;  %1919 = vmax.xlane.f32.xlu1 %v6434_v23 }
 0x5c9   : > { %1923 = vmax.xlane.f32.xlu1 %v6432_v22 }
 0x632   : > { %v1894_v26 = vpop.xlane.xlu0 %1893 }
 0x633   : > { %v1925_v27 = vsub.f32 %v1830_v9, %v1894_v26 }
 0x635   : > { %v1941_v28 = vmul.f32 1.442695, %v1925_v27 }
 0x636   : > { %v1898_v29 = vpop.xlane.xlu0 %1897  ;;  %v1896_v30 = vpop.xlane.xlu1 %1895 }
 0x637   : > { %5650 = vpow2.f32 %v1941_v28  ;;  %v1927_v31 = vsub.f32 %v5187_v8, %v1898_v29  ;;  %v1926_v33 = vsub.f32 %v1833_v11, %v1896_v30  ;;  %v5448_v28 = vld [vmem:[%s6087_s16 + $0x88] sm:$0xff]  }
 0x639   : > { %v1945_v36 = vmul.f32 1.442695, %v1927_v31  ;;  %v1943_v34 = vmul.f32 1.442695, %v1926_v33  ;;  %v5449_v31 = vld [vmem:[%s6087_s16 + $0x80] sm:$0xff]   ;;  %v5450_v33 = vld [vmem:[%s6014_s25 + $0xf8] sm:$0xff]  }
 0x63a   : > { %v1900_v38 = vpop.xlane.xlu1 %1899  ;;  %v1902_v32 = vpop.xlane.xlu0 %1901 }
 0x63b   : > { %5652 = vpow2.f32 %v1945_v36  ;;  %v1928_v40 = vsub.f32 %v5188_v10, %v1900_v38  ;;  %v1929_v44 = vsub.f32 %v1846_v13, %v1902_v32  ;;  %v5444_v10 = vld [vmem:[%s6087_s16 + $0xa8] sm:$0xff]  }
 0x63c   : > { %5654 = vpow2.f32 %v1943_v34  ;;  %5205 = vmatprep.subr.bf16.mxu1 %v5444_v10 }
 0x63d   : > { %v1947_v42 = vmul.f32 1.442695, %v1928_v40  ;;  %v1949_v35 = vmul.f32 1.442695, %v1929_v44  ;;  %5206 = vmatpush3.bf16.msra.mxu1 %v5444_v10 }
 0x63e   : > { %v1906_v47 = vpop.xlane.xlu0 %1905  ;;  %v1904_v37 = vpop.xlane.xlu1 %1903 }
 0x63f   : > { %5656 = vpow2.f32 %v1947_v42  ;;  %v1931_v39 = vsub.f32 %v5191_v12, %v1906_v47  ;;  %v1930_v41 = vsub.f32 %v1849_v15, %v1904_v37 }
 0x640   : > { %5658 = vpow2.f32 %v1949_v35 }
 0x641   : > { %v1953_v48 = vmul.f32 1.442695, %v1931_v39  ;;  %v1951_v49 = vmul.f32 1.442695, %v1930_v41 }
 0x642   : > { %v1908_v50 = vpop.xlane.xlu1 %1907  ;;  %v1910_v43 = vpop.xlane.xlu0 %1909 }
 0x643   : > { %5660 = vpow2.f32 %v1953_v48  ;;  %v1932_v51 = vsub.f32 %v5192_v14, %v1908_v50  ;;  %v1933_v45 = vsub.f32 %v1862_v17, %v1910_v43  ;;  %v5445_v17 = vld [vmem:[%s6087_s16 + $0xa0] sm:$0xff]  }
 0x644   : > { %v6441_v46 = vpop.eup %5650  ;;  %5662 = vpow2.f32 %v1951_v49  ;;  %5207 = vmatprep.subr.bf16.mxu1 %v5445_v17 }
 0x645   : > { %v1955_v52 = vmul.f32 1.442695, %v1932_v51  ;;  %v1957_v53 = vmul.f32 1.442695, %v1933_v45  ;;  %1973 = vadd.xlane.f32.xlu0 %v6441_v46  ;;  %5208 = vmatpush3.bf16.msra.mxu1 %v5445_v17 }
 0x646   : > { %v1914_v54 = vpop.xlane.xlu0 %1913  ;;  %v1912_v55 = vpop.xlane.xlu1 %1911 }
 0x647   : > { %5664 = vpow2.f32 %v1955_v52  ;;  %v1935_v56 = vsub.f32 %v6418_v16, %v1914_v54  ;;  %v1934_v57 = vsub.f32 %v6422_v19, %v1912_v55 }
 0x648   : > { %v6446_v58 = vpop.eup %5652  ;;  %5666 = vpow2.f32 %v1957_v53 }
 0x649   : > { %v6448_v59 = vpop.eup %5654  ;;  %v1961_v60 = vmul.f32 1.442695, %v1935_v56  ;;  %v1959_v61 = vmul.f32 1.442695, %v1934_v57  ;;  %1977 = vadd.xlane.f32.xlu0 %v6446_v58 }
 0x64a   : > { %1975 = vadd.xlane.f32.xlu1 %v6448_v59  ;;  %v1916_v62 = vpop.xlane.xlu1 %1915  ;;  %v1918_v63 = vpop.xlane.xlu0 %1917 }
 0x64b   : > { %5668 = vpow2.f32 %v1961_v60  ;;  %v1936_v0 = vsub.f32 %v6420_v18, %v1916_v62  ;;  %v1937_v1 = vsub.f32 %v6428_v21, %v1918_v63  ;;  %v5451_v60 = vld [vmem:[%s6014_s25 + $0xf0] sm:$0xff]  }
 0x64c   : > { %v6454_v2 = vpop.eup %5656  ;;  %5670 = vpow2.f32 %v1959_v61  ;;  %v2397_v10 = vsel %vm537_vm0, %v5451_v60, 0 }
 0x64d   : > { %v6456_v3 = vpop.eup %5658  ;;  %v1963_v4 = vmul.f32 1.442695, %v1936_v0  ;;  %v1965_v5 = vmul.f32 1.442695, %v1937_v1 }
 0x64e   : > { %1981 = vadd.xlane.f32.xlu0 %v6456_v3  ;;  %1979 = vadd.xlane.f32.xlu1 %v6454_v2  ;;  %v1922_v6 = vpop.xlane.xlu0 %1921  ;;  %v1920_v7 = vpop.xlane.xlu1 %1919 }
 0x64f   : > { %5672 = vpow2.f32 %v1963_v4  ;;  %v1939_v8 = vsub.f32 %v6426_v20, %v1922_v6  ;;  %v1938_v9 = vsub.f32 %v6434_v23, %v1920_v7 }
 0x650   : > { %v6463_v11 = vpop.eup %5660  ;;  %5674 = vpow2.f32 %v1965_v5 }
 0x651   : > { %v6465_v12 = vpop.eup %5662  ;;  %v1969_v13 = vmul.f32 1.442695, %v1939_v8  ;;  %v1967_v14 = vmul.f32 1.442695, %v1938_v9 }
 0x652   : > { %1985 = vadd.xlane.f32.xlu0 %v6463_v11  ;;  %1983 = vadd.xlane.f32.xlu1 %v6465_v12  ;;  %v1924_v15 = vpop.xlane.xlu1 %1923 }
 0x653   : > { %5676 = vpow2.f32 %v1969_v13  ;;  %v1940_v16 = vsub.f32 %v6432_v22, %v1924_v15  ;;  %v5446_v22 = vld [vmem:[%s6087_s16 + $0x98] sm:$0xff]  }
 0x654   : > { %v6471_v18 = vpop.eup %5664  ;;  %5678 = vpow2.f32 %v1967_v14  ;;  %5209 = vmatprep.subr.bf16.mxu1 %v5446_v22 }
 0x655   : > { %v6473_v19 = vpop.eup %5666  ;;  %v1971_v20 = vmul.f32 1.442695, %v1940_v16  ;;  %5210 = vmatpush3.bf16.msra.mxu1 %v5446_v22 }
 0x656   : > { %1989 = vadd.xlane.f32.xlu0 %v6473_v19  ;;  %1987 = vadd.xlane.f32.xlu1 %v6471_v18 }
 0x657   : > { %5680 = vpow2.f32 %v1971_v20  ;;  %5211 = vmatprep.subr.bf16.mxu1 %v5447_v25 }
 0x658   : > { %v6477_v21 = vpop.eup %5668 }
 0x659   : > { %v6480_v23 = vpop.eup %5670  ;;  %5212 = vmatpush3.bf16.msra.mxu1 %v5447_v25 }
 0x65a   : > { %1993 = vadd.xlane.f32.xlu0 %v6477_v21  ;;  %1991 = vadd.xlane.f32.xlu1 %v6480_v23 }
 0x65b   : > { %5213 = vmatprep.subr.bf16.mxu1 %v5448_v28 }
 0x65c   : > { %v6484_v24 = vpop.eup %5672 }
 0x65d   : > { %v6487_v26 = vpop.eup %5674  ;;  %5214 = vmatpush3.bf16.msra.mxu1 %v5448_v28 }
 0x65e   : > { %1997 = vadd.xlane.f32.xlu0 %v6487_v26  ;;  %1995 = vadd.xlane.f32.xlu1 %v6484_v24 }
 0x65f   : > { %5215 = vmatprep.subr.bf16.mxu1 %v5449_v31 }
 0x660   : > { %v6491_v27 = vpop.eup %5676 }
 0x661   : > { %v6494_v29 = vpop.eup %5678  ;;  %5216 = vmatpush3.bf16.msra.mxu1 %v5449_v31 }
 0x662   : > { %2001 = vadd.xlane.f32.xlu0 %v6491_v27  ;;  %1999 = vadd.xlane.f32.xlu1 %v6494_v29 }
 0x663   : > { %5321 = vmatprep.subr.msk.bf16.mxu1 %vm537_vm0, %v5450_v33 }
 0x664   : > { %v6498_v30 = vpop.eup %5680 }
 0x666   : > { %2003 = vadd.xlane.f32.xlu1 %v6498_v30 }
 0x6ce   : > { %v1974_v36 = vpop.xlane.xlu0 %1973 }
 0x6cf   : > { %5682 = vrcp.f32 %v1974_v36 }
 0x6d2   : > { %v1978_v34 = vpop.xlane.xlu0 %1977 }
 0x6d3   : > { %5684 = vrcp.f32 %v1978_v34  ;;  %v1976_v38 = vpop.xlane.xlu1 %1975  ;;  %v5458_v34 = vld [vmem:[%s6025_s28 + $0xc0] sm:$0xff]  }
 0x6d4   : > { %5686 = vrcp.f32 %v1976_v38  ;;  %v5454_v38 = vld [vmem:[%s6014_s25 + $0xd8] sm:$0xff]  }
 0x6d7   : > { %v1982_v32 = vpop.xlane.xlu0 %1981  ;;  %v1980_v40 = vpop.xlane.xlu1 %1979 }
 0x6d8   : > { %5688 = vrcp.f32 %v1982_v32  ;;  %v5455_v32 = vld [vmem:[%s6014_s25 + $0xd0] sm:$0xff]  }
 0x6d9   : > { %5690 = vrcp.f32 %v1980_v40  ;;  %v5456_v40 = vld [vmem:[%s6014_s25 + $0xc8] sm:$0xff]  }
 0x6db   : > { %v1986_v44 = vpop.xlane.xlu0 %1985  ;;  %v1984_v42 = vpop.xlane.xlu1 %1983 }
 0x6dc   : > { %v5683_v35 = vpop.eup %5682  ;;  %5692 = vrcp.f32 %v1986_v44  ;;  %v2382_v44 = vsel %vm537_vm0, %v5456_v40, 0 }
 0x6dd   : > { %5694 = vrcp.f32 %v1984_v42  ;;  %v2021_v47 = vmul.f32 %v5683_v35, %v6441_v46  ;;  %v5457_v42 = vld [vmem:[%s6014_s25 + $0xc0] sm:$0xff]  }
 0x6de   : > { %v2379_v35 = vsel %vm537_vm0, %v5457_v42, 0 }
 0x6df   : > { %v1990_v37 = vpop.xlane.xlu0 %1989  ;;  %v1988_v39 = vpop.xlane.xlu1 %1987  ;;  %4695 = vst [vmem:[%s6159_s22 + $0x100] sm:$0xff] %v2021_v47 }
 0x6e0   : > { %v5685_v41 = vpop.eup %5684  ;;  %5696 = vrcp.f32 %v1990_v37  ;;  %v5459_v37 = vld [vmem:[%s6025_s28 + $0xc8] sm:$0xff]  }
 0x6e1   : > { %v5687_v48 = vpop.eup %5686  ;;  %5698 = vrcp.f32 %v1988_v39  ;;  %v2023_v49 = vmul.f32 %v5685_v41, %v6446_v58  ;;  %v5460_v39 = vld [vmem:[%s6025_s28 + $0xd0] sm:$0xff]  }
 0x6e2   : > { %v2022_v50 = vmul.f32 %v5687_v48, %v6448_v59  ;;  %v2400_v59 = vsel %vm537_vm0, %v5450_v33, 0  ;;  %v5464_v41 = vld [vmem:[%s7647_s4 + $0x70] ss:$8 sps:$4 sm:$0xff]   ;;  %v5469_v48 = vld [vmem:[%s7647_s4 + $0x64] ss:$8 sps:$4 sm:$0xff]  }
 0x6e3   : > { %v1994_v43 = vpop.xlane.xlu0 %1993  ;;  %v1992_v51 = vpop.xlane.xlu1 %1991  ;;  %4697 = vst [vmem:[%s6159_s22 + $0x110] sm:$0xff] %v2023_v49 }
 0x6e4   : > { %5700 = vrcp.f32 %v1994_v43  ;;  %4696 = vst [vmem:[%s6159_s22 + $0x108] sm:$0xff] %v2022_v50  ;;  %v2054_v45 = vpack.c.bf16 %v2022_v50, %v2021_v47  ;;  %v5466_v47 = vld [vmem:[%s7647_s4 + $0x74] ss:$8 sps:$4 sm:$0xff]  }
 0x6e5   : > { %v5689_v46 = vpop.eup %5688  ;;  %5702 = vrcp.f32 %v1992_v51  ;;  %v5474_v50 = vld [vmem:[%s7647_s4 + $0x54] ss:$8 sps:$4 sm:$0xff]   ;;  %v5462_v51 = vld [vmem:[%s6025_s28 + $0xe0] sm:$0xff]  }
 0x6e6   : > { %v5691_v52 = vpop.eup %5690  ;;  %5217 = vmatprep.mubr.bf16.mxu1 %v2054_v45  ;;  %v2025_v53 = vmul.f32 %v5689_v46, %v6456_v3  ;;  %v5461_v43 = vld [vmem:[%s6025_s28 + $0xd8] sm:$0xff]   ;;  %v5477_v46 = vld [vmem:[%s7647_s4 + $0x44] ss:$8 sps:$4 sm:$0xff]  }
 0x6e7   : > { %v1998_v54 = vpop.xlane.xlu0 %1997  ;;  %v1996_v55 = vpop.xlane.xlu1 %1995  ;;  %v2024_v56 = vmul.f32 %v5691_v52, %v6454_v2  ;;  %v5472_v45 = vld [vmem:[%s7647_s4 + $0x50] ss:$8 sps:$4 sm:$0xff]   ;;  %v5475_v52 = vld [vmem:[%s7647_s4 + $0x40] ss:$8 sps:$4 sm:$0xff]  }
 0x6e8   : > { %5704 = vrcp.f32 %v1998_v54  ;;  %4699 = vst [vmem:[%s6159_s22 + $0x120] sm:$0xff] %v2025_v53  ;;  %v5470_v54 = vld [vmem:[%s6025_s28 + $0xf0] sm:$0xff]  }
 0x6e9   : > { %v5693_v57 = vpop.eup %5692  ;;  %5706 = vrcp.f32 %v1996_v55  ;;  %4698 = vst [vmem:[%s6159_s22 + $0x118] sm:$0xff] %v2024_v56  ;;  %v2055_v58 = vpack.c.bf16 %v2024_v56, %v2023_v49  ;;  %v5467_v49 = vld [vmem:[%s7647_s4 + $0x60] ss:$8 sps:$4 sm:$0xff]   ;;  %v5471_v55 = vld [vmem:[%s6025_s28 + $0xf8] sm:$0xff]   ;;  %v5902_v56 = vmov 0  }
 0x6ea   : > { %v5695_v61 = vpop.eup %5694  ;;  %v2027_v62 = vmul.f32 %v5693_v57, %v6463_v11  ;;  %v5452_v11 = vld [vmem:[%s6014_s25 + $0xe8] sm:$0xff]  }
 0x6eb   : > { %5218 = vmatmul.mubr.bf16.vlgmr.msra.gmra.mxu1 %v2055_v58  ;;  %v2002_v63 = vpop.xlane.xlu0 %2001  ;;  %v2000_v0 = vpop.xlane.xlu1 %1999  ;;  %v2026_v1 = vmul.f32 %v5695_v61, %v6465_v12  ;;  %v2394_v22 = vsel %vm537_vm0, %v5452_v11, 0  ;;  %v3181_v57 = vld [vmem:[#allocation2 + $0x21] ss:$4 sm:$0xff] }
 0x6ec   : > { %5234 = vmatpush3.bf16.xpose.msra.mxu1 %v2400_v59  ;;  %5708 = vrcp.f32 %v2002_v63  ;;  %4701 = vst [vmem:[%s6159_s22 + $0x130] sm:$0xff] %v2027_v62  ;;  %v3179_v58 = vld [vmem:[#allocation2 + $0x1] ss:$4 sm:$0xff] }
 0x6ed   : > { %v5697_v2 = vpop.eup %5696  ;;  %5710 = vrcp.f32 %v2000_v0  ;;  %4700 = vst [vmem:[%s6159_s22 + $0x128] sm:$0xff] %v2026_v1  ;;  %v2056_v3 = vpack.c.bf16 %v2026_v1, %v2025_v53  ;;  %5322 = vmatprep.subr.msk.bf16.mxu1 %vm537_vm0, %v5451_v60  ;;  %v5463_v53 = vld [vmem:[%s6025_s28 + $0xe8] sm:$0xff]   ;;  %v3210_v59 = vpack.c.bf16 %v3181_v57, %v3179_v58 }
 0x6ee   : > { %v5699_v4 = vpop.eup %5698  ;;  %v2029_v5 = vmul.f32 %v5697_v2, %v6473_v19  ;;  %v3185_v60 = vld [vmem:[#allocation2 + $0x61] ss:$4 sm:$0xff] }
 0x6ef   : > { %5221 = vmatprep.mubr.bf16.mxu1 %v2056_v3  ;;  %v2004_v6 = vpop.xlane.xlu1 %2003  ;;  %v2028_v7 = vmul.f32 %v5699_v4, %v6471_v18  ;;  %v3183_v61 = vld [vmem:[#allocation2 + $0x41] ss:$4 sm:$0xff] }
 0x6f0   : > { %5712 = vrcp.f32 %v2004_v6  ;;  %4703 = vst [vmem:[%s6159_s22 + $0x140] sm:$0xff] %v2029_v5  ;;  %v3189_v63 = vld [vmem:[#allocation2 + $0xa1] ss:$4 sm:$0xff] }
 0x6f1   : > { %v5701_v8 = vpop.eup %5700  ;;  %4702 = vst [vmem:[%s6159_s22 + $0x138] sm:$0xff] %v2028_v7  ;;  %v2057_v9 = vpack.c.bf16 %v2028_v7, %v2027_v62  ;;  %v3211_v62 = vpack.c.bf16 %v3185_v60, %v3183_v61  ;;  %v3187_v0 = vld [vmem:[#allocation2 + $0x81] ss:$4 sm:$0xff] }
 0x6f2   : > { %v5703_v12 = vpop.eup %5702  ;;  %v2031_v13 = vmul.f32 %v5701_v8, %v6477_v21  ;;  %v3212_v1 = vpack.c.bf16 %v3189_v63, %v3187_v0  ;;  %v3193_v2 = vld [vmem:[#allocation2 + $0xe1] ss:$4 sm:$0xff] }
 0x6f3   : > { %5222 = vmatmul.mubr.bf16.gmra.mxu1 %v2057_v9  ;;  %v2030_v14 = vmul.f32 %v5703_v12, %v6480_v23  ;;  %v5453_v23 = vld [vmem:[%s6014_s25 + $0xe0] sm:$0xff]   ;;  %s4912_s25 = sshll.u32 %s5980_s13, 13 }
 0x6f4   : > { %5236 = vmatpush3.bf16.xpose.msra.mxu1 %v2397_v10  ;;  %4705 = vst [vmem:[%s6159_s22 + $0x150] sm:$0xff] %v2031_v13  ;;  %v3191_v3 = vld [vmem:[#allocation2 + $0xc1] ss:$4 sm:$0xff]  ;;  %s7418_s21 = scalar_lea.hbm %s7652_s9, %s4912_s25 }
 0x6f5   : > { %v5705_v15 = vpop.eup %5704  ;;  %4704 = vst [vmem:[%s6159_s22 + $0x148] sm:$0xff] %v2030_v14  ;;  %v2058_v16 = vpack.c.bf16 %v2030_v14, %v2029_v5  ;;  %5323 = vmatprep.subr.msk.bf16.mxu1 %vm537_vm0, %v5452_v11  ;;  %v3213_v4 = vpack.c.bf16 %v3193_v2, %v3191_v3 }
 0x6f6   : > { %v5707_v17 = vpop.eup %5706  ;;  %v2033_v18 = vmul.f32 %v5705_v15, %v6487_v26 }
 0x6f7   : > { %5225 = vmatprep.mubr.bf16.mxu1 %v2058_v16  ;;  %v2032_v19 = vmul.f32 %v5707_v17, %v6484_v24 }
 0x6f8   : > { %4707 = vst [vmem:[%s6159_s22 + $0x160] sm:$0xff] %v2033_v18 }
 0x6f9   : > { %v5709_v20 = vpop.eup %5708  ;;  %4706 = vst [vmem:[%s6159_s22 + $0x158] sm:$0xff] %v2032_v19  ;;  %v2059_v21 = vpack.c.bf16 %v2032_v19, %v2031_v13 }
 0x6fa   : > { %v5711_v25 = vpop.eup %5710  ;;  %v2035_v28 = vmul.f32 %v5709_v20, %v6491_v27  ;;  %v2391_v27 = vsel %vm537_vm0, %v5453_v23, 0 }
 0x6fb   : > { %5226 = vmatmul.mubr.bf16.gmra.mxu1 %v2059_v21  ;;  %v2034_v26 = vmul.f32 %v5711_v25, %v6494_v29  ;;  %v2388_v29 = vsel %vm537_vm0, %v5454_v38, 0 }
 0x6fc   : > { %5238 = vmatpush3.bf16.xpose.msra.mxu1 %v2394_v22  ;;  %4709 = vst [vmem:[%s6159_s22 + $0x170] sm:$0xff] %v2035_v28 }
 0x6fd   : > { %v5713_v31 = vpop.eup %5712  ;;  %4708 = vst [vmem:[%s6159_s22 + $0x168] sm:$0xff] %v2034_v26  ;;  %v2060_v24 = vpack.c.bf16 %v2034_v26, %v2033_v18  ;;  %5324 = vmatprep.subr.msk.bf16.mxu1 %vm537_vm0, %v5453_v23 }
 0x6fe   : > { %v2036_v33 = vmul.f32 %v5713_v31, %v6498_v30  ;;  %v2385_v30 = vsel %vm537_vm0, %v5455_v32, 0 }
 0x6ff   : > { %5229 = vmatprep.mubr.bf16.mxu1 %v2060_v24 }
 0x700   : > { %4710 = vst [vmem:[%s6159_s22 + $0x178] sm:$0xff] %v2036_v33  ;;  %v2061_v36 = vpack.c.bf16 %v2036_v33, %v2035_v28 }
 0x703   : > { %5230 = vmatmul.mubr.bf16.gmra.mxu1 %v2061_v36 }
 0x704   : > { %5240 = vmatpush3.bf16.xpose.msra.mxu1 %v2391_v27  ;;  %5249 = vmatprep.mubr.msk.bf16.mxu1 %vm537_vm0, %v5458_v34 }
 0x705   : > { %5325 = vmatprep.subr.msk.bf16.mxu1 %vm537_vm0, %v5454_v38 }
 0x70c   : > { %5242 = vmatpush3.bf16.xpose.msra.mxu1 %v2388_v29 }
 0x70d   : > { %5326 = vmatprep.subr.msk.bf16.mxu1 %vm537_vm0, %v5455_v32 }
 0x714   : > { %5244 = vmatpush3.bf16.xpose.msra.mxu1 %v2385_v30 }
 0x715   : > { %5327 = vmatprep.subr.msk.bf16.mxu1 %vm537_vm0, %v5456_v40 }
 0x71c   : > { %5246 = vmatpush3.bf16.xpose.msra.mxu1 %v2382_v44 }
 0x71d   : > { %5328 = vmatprep.subr.msk.bf16.mxu1 %vm537_vm0, %v5457_v42 }
 0x724   : > { %5248 = vmatpush3.bf16.xpose.msra.mxu1 %v2379_v35 }
 0x725   : > { %3298 = vmatprep.subr.bf16.mxu1 %v5466_v47 }
 0x72b   : > { %5250 = vmatmul.mubr.msk.bf16.vlgmr.msra.gmra.mxu1 %vm537_vm0, %v5459_v37 }
 0x72c   : > { %5253 = vmatprep.mubr.msk.bf16.mxu1 %vm537_vm0, %v5460_v39  ;;  %3299 = vmatpush1.bf16.msra.mxu1 %v5464_v41  ;;  %v5478_v39 = vld [vmem:[%s6087_s16 + $0xf8] sm:$0xff]   ;;  %v5479_v41 = vld [vmem:[%s6087_s16 + $0xf0] sm:$0xff]  }
 0x72d   : > { %3300 = vmatprep.subr.bf16.mxu1 %v5469_v48  ;;  %5265 = vmatprep.subr.bf16.mxu0 %v5478_v39 }
 0x72e   : > { %5266 = vmatpush3.bf16.msra.mxu0 %v5478_v39  ;;  %v5482_v39 = vld [vmem:[%s6087_s16 + $0xd8] sm:$0xff]  }
 0x72f   : > { %5267 = vmatprep.subr.bf16.mxu0 %v5479_v41 }
 0x730   : > { %3301 = vmatpush1.bf16.msra.mxu1 %v5467_v49 }
 0x731   : > { %3302 = vmatprep.subr.bf16.mxu1 %v5474_v50 }
 0x732   : > { %5268 = vmatpush3.bf16.msra.mxu0 %v5479_v41 }
 0x733   : > { %5254 = vmatmul.mubr.msk.bf16.gmra.mxu1 %vm537_vm0, %v5461_v43 }
 0x734   : > { %5257 = vmatprep.mubr.msk.bf16.mxu1 %vm537_vm0, %v5462_v51  ;;  %3303 = vmatpush1.bf16.msra.mxu1 %v5472_v45 }
 0x735   : > { %3304 = vmatprep.subr.bf16.mxu1 %v5477_v46 }
 0x738   : > { %3305 = vmatpush1.bf16.msra.mxu1 %v5475_v52 }
 0x73b   : > { %5258 = vmatmul.mubr.msk.bf16.gmra.mxu1 %vm537_vm0, %v5463_v53 }
 0x73c   : > { %5261 = vmatprep.mubr.msk.bf16.mxu1 %vm537_vm0, %v5470_v54 }
 0x743   : > { %5262 = vmatmul.mubr.msk.bf16.gmra.mxu1 %vm537_vm0, %v5471_v55 }
 0x744   : > { %3322 = vmatprep.mubr.bf16.mxu1 %v5902_v56 }
 0x74b   : > { %4855 = vmatmul.mubr.msk.bf16.vlgmr.msra.gmra.mxu1 %vm537_vm0, %v3210_v59 }
 0x74c   : > { %3332 = vmatprep.mubr.bf16.mxu1 %v5902_v56 }
 0x753   : > { %4856 = vmatmul.mubr.msk.bf16.gmra.mxu1 %vm537_vm0, %v3211_v62 }
 0x754   : > { %3342 = vmatprep.mubr.bf16.mxu1 %v5902_v56 }
 0x75b   : > { %4857 = vmatmul.mubr.msk.bf16.gmra.mxu1 %vm537_vm0, %v3212_v1 }
 0x75c   : > { %3352 = vmatprep.mubr.bf16.mxu1 %v5902_v56 }
 0x763   : > { %4858 = vmatmul.mubr.msk.bf16.gmra.mxu1 %vm537_vm0, %v3213_v4 }
 0x764   : > { %3362 = vmatprep.mubr.bf16.mxu1 %v5902_v56 }
 0x7ab   : > { %v5219_v5 = vpop.f32.mrf.mxu1 }
 0x7ac   : > { %2226 = vst.msk [vmem:[#allocation2 + $0x110] sm:$0xff] %vm537_vm0, %v5219_v5 }
 0x7ad   : > { %v2161_v6 = vpop.f32.mrf.mxu1 }
 0x7ae   : > { %2224 = vst.msk [vmem:[#allocation2 + $0x100] sm:$0xff] %vm537_vm0, %v2161_v6 }
 0x7af   : > { %v5220_v7 = vpop.f32.mrf.mxu1 }
 0x7b0   : > { %2227 = vst.msk [vmem:[#allocation2 + $0x118] sm:$0xff] %vm537_vm0, %v5220_v7 }
 0x7b1   : > { %v2164_v8 = vpop.f32.mrf.mxu1 }
 0x7b2   : > { %2225 = vst.msk [vmem:[#allocation2 + $0x108] sm:$0xff] %vm537_vm0, %v2164_v8 }
 0x7b3   : > { %v5223_v9 = vpop.f32.mrf.mxu1 }
 0x7b4   : > { %2230 = vst.msk [vmem:[#allocation2 + $0x130] sm:$0xff] %vm537_vm0, %v5223_v9 }
 0x7b5   : > { %v2177_v10 = vpop.f32.mrf.mxu1 }
 0x7b6   : > { %2228 = vst.msk [vmem:[#allocation2 + $0x120] sm:$0xff] %vm537_vm0, %v2177_v10 }
 0x7b7   : > { %v5224_v11 = vpop.f32.mrf.mxu1 }
 0x7b8   : > { %2231 = vst.msk [vmem:[#allocation2 + $0x138] sm:$0xff] %vm537_vm0, %v5224_v11 }
 0x7b9   : > { %v2180_v12 = vpop.f32.mrf.mxu1  ;;  %v3195_v17 = vld [vmem:[#allocation2 + $0x101] ss:$4 sm:$0xff] }
 0x7ba   : > { %2229 = vst.msk [vmem:[#allocation2 + $0x128] sm:$0xff] %vm537_vm0, %v2180_v12 }
 0x7bb   : > { %v5227_v13 = vpop.f32.mrf.mxu1 }
 0x7bc   : > { %2234 = vst.msk [vmem:[#allocation2 + $0x150] sm:$0xff] %vm537_vm0, %v5227_v13 }
 0x7bd   : > { %v2193_v14 = vpop.f32.mrf.mxu1 }
 0x7be   : > { %2232 = vst.msk [vmem:[#allocation2 + $0x140] sm:$0xff] %vm537_vm0, %v2193_v14 }
 0x7bf   : > { %v5228_v15 = vpop.f32.mrf.mxu1 }
 0x7c0   : > { %2235 = vst.msk [vmem:[#allocation2 + $0x158] sm:$0xff] %vm537_vm0, %v5228_v15 }
 0x7c1   : > { %v2196_v16 = vpop.f32.mrf.mxu1  ;;  %v3197_v18 = vld [vmem:[#allocation2 + $0x121] ss:$4 sm:$0xff] }
 0x7c2   : > { %2233 = vst.msk [vmem:[#allocation2 + $0x148] sm:$0xff] %vm537_vm0, %v2196_v16  ;;  %v3214_v19 = vpack.c.bf16 %v3197_v18, %v3195_v17 }
 0x7c3   : > { %v5231_v20 = vpop.f32.mrf.mxu1 }
 0x7c4   : > { %2238 = vst.msk [vmem:[#allocation2 + $0x170] sm:$0xff] %vm537_vm0, %v5231_v20  ;;  %4859 = vmatmul.mubr.msk.bf16.gmra.mxu1 %vm537_vm0, %v3214_v19 }
 0x7c5   : > { %v2209_v21 = vpop.f32.mrf.mxu1  ;;  %3372 = vmatprep.mubr.bf16.mxu1 %v5902_v56 }
 0x7c6   : > { %2236 = vst.msk [vmem:[#allocation2 + $0x160] sm:$0xff] %vm537_vm0, %v2209_v21 }
 0x7c7   : > { %v5232_v22 = vpop.f32.mrf.mxu1 }
 0x7c8   : > { %2239 = vst.msk [vmem:[#allocation2 + $0x178] sm:$0xff] %vm537_vm0, %v5232_v22 }
 0x7c9   : > { %v2212_v23 = vpop.f32.mrf.mxu1  ;;  %v3199_v25 = vld [vmem:[#allocation2 + $0x141] ss:$4 sm:$0xff] }
 0x7ca   : > { %2237 = vst.msk [vmem:[#allocation2 + $0x168] sm:$0xff] %vm537_vm0, %v2212_v23 }
 0x7d1   : > { %v3201_v28 = vld [vmem:[#allocation2 + $0x161] ss:$4 sm:$0xff] }
 0x7d2   : > { %v3215_v26 = vpack.c.bf16 %v3201_v28, %v3199_v25 }
 0x7d4   : > { %4860 = vmatmul.mubr.msk.bf16.gmra.mxu1 %vm537_vm0, %v3215_v26 }
 0x7d5   : > { %3382 = vmatprep.mubr.bf16.mxu1 %v5902_v56 }
 0x7eb   : > { %v5251_v31 = vpop.f32.mrf.mxu1 }
 0x7ed   : > { %v2436_v24 = vpop.f32.mrf.mxu1 }
 0x7ee   : > { %2499 = vmax.xlane.f32.xlu0 %v2436_v24 }
 0x7ef   : > { %v5252_v33 = vpop.f32.mrf.mxu1 }
 0x7f1   : > { %v2439_v36 = vpop.f32.mrf.mxu1 }
 0x7f2   : > { %2503 = vmax.xlane.f32.xlu0 %v5251_v31  ;;  %2501 = vmax.xlane.f32.xlu1 %v2439_v36 }
 0x7f3   : > { %v5255_v34 = vpop.f32.mrf.mxu1 }
 0x7f5   : > { %v2452_v27 = vpop.f32.mrf.mxu1 }
 0x7f6   : > { %2505 = vmax.xlane.f32.xlu1 %v5252_v33  ;;  %2507 = vmax.xlane.f32.xlu0 %v2452_v27 }
 0x7f7   : > { %v5256_v38 = vpop.f32.mrf.mxu1 }
 0x7f9   : > { %v2455_v29 = vpop.f32.mrf.mxu1 }
 0x7fa   : > { %2511 = vmax.xlane.f32.xlu0 %v5255_v34  ;;  %2509 = vmax.xlane.f32.xlu1 %v2455_v29 }
 0x7fb   : > { %v6627_v32 = vpop.f32.mrf.mxu1 }
 0x7fd   : > { %v2468_v30 = vpop.f32.mrf.mxu1 }
 0x7fe   : > { %2513 = vmax.xlane.f32.xlu1 %v5256_v38  ;;  %2515 = vmax.xlane.f32.xlu0 %v2468_v30 }
 0x7ff   : > { %v6629_v40 = vpop.f32.mrf.mxu1 }
 0x801   : > { %v6631_v44 = vpop.f32.mrf.mxu1 }
 0x802   : > { %2519 = vmax.xlane.f32.xlu0 %v6627_v32  ;;  %2517 = vmax.xlane.f32.xlu1 %v6631_v44 }
 0x803   : > { %v6635_v42 = vpop.f32.mrf.mxu1 }
 0x805   : > { %v6637_v35 = vpop.f32.mrf.mxu1 }
 0x806   : > { %2521 = vmax.xlane.f32.xlu1 %v6629_v40  ;;  %2523 = vmax.xlane.f32.xlu0 %v6637_v35 }
 0x807   : > { %v6641_v47 = vpop.f32.mrf.mxu1 }
 0x809   : > { %v6643_v37 = vpop.f32.mrf.mxu1 }
 0x80a   : > { %2527 = vmax.xlane.f32.xlu0 %v6635_v42  ;;  %2525 = vmax.xlane.f32.xlu1 %v6643_v37 }
 0x80e   : > { %2529 = vmax.xlane.f32.xlu1 %v6641_v47 }
 0x877   : > { %v2500_v48 = vpop.xlane.xlu0 %2499 }
 0x878   : > { %v2531_v49 = vsub.f32 %v2436_v24, %v2500_v48 }
 0x87a   : > { %v2547_v50 = vmul.f32 1.442695, %v2531_v49  ;;  %v5483_v49 = vld [vmem:[%s6087_s16 + $0xd0] sm:$0xff]  }
 0x87b   : > { %v2504_v43 = vpop.xlane.xlu0 %2503  ;;  %v2502_v51 = vpop.xlane.xlu1 %2501 }
 0x87c   : > { %5714 = vpow2.f32 %v2547_v50  ;;  %v2533_v45 = vsub.f32 %v5251_v31, %v2504_v43  ;;  %v2532_v46 = vsub.f32 %v2439_v36, %v2502_v51  ;;  %v5480_v36 = vld [vmem:[%s6087_s16 + $0xe8] sm:$0xff]  }
 0x87d   : > { %5269 = vmatprep.subr.bf16.mxu0 %v5480_v36  ;;  %v5484_v51 = vld [vmem:[%s6087_s16 + $0xc8] sm:$0xff]  }
 0x87e   : > { %v2551_v52 = vmul.f32 1.442695, %v2533_v45  ;;  %v2549_v53 = vmul.f32 1.442695, %v2532_v46  ;;  %5270 = vmatpush3.bf16.msra.mxu0 %v5480_v36  ;;  %v5485_v46 = vld [vmem:[%s6087_s16 + $0xc0] sm:$0xff]  }
 0x87f   : > { %v2506_v54 = vpop.xlane.xlu1 %2505  ;;  %v2508_v55 = vpop.xlane.xlu0 %2507 }
 0x880   : > { %5716 = vpow2.f32 %v2551_v52  ;;  %v2534_v57 = vsub.f32 %v5252_v33, %v2506_v54  ;;  %v2535_v58 = vsub.f32 %v2452_v27, %v2508_v55  ;;  %v5488_v52 = vld [vmem:[%s7647_s4 + $0x34] ss:$8 sps:$4 sm:$0xff]  }
 0x881   : > { %5718 = vpow2.f32 %v2549_v53  ;;  %v5501_v53 = vld [vmem:[%s7647_s4 + $0xf0] ss:$8 sps:$4 sm:$0xff]   ;;  %v5503_v54 = vld [vmem:[%s7647_s4 + $0xf4] ss:$8 sps:$4 sm:$0xff]  }
 0x882   : > { %v2553_v59 = vmul.f32 1.442695, %v2534_v57  ;;  %v2555_v60 = vmul.f32 1.442695, %v2535_v58  ;;  %3812 = vmatprep.subr.bf16.mxu1 %v5503_v54 }
 0x883   : > { %v2512_v61 = vpop.xlane.xlu0 %2511  ;;  %v2510_v62 = vpop.xlane.xlu1 %2509  ;;  %3813 = vmatpush1.bf16.msra.mxu1 %v5501_v53 }
 0x884   : > { %5720 = vpow2.f32 %v2553_v59  ;;  %v2537_v63 = vsub.f32 %v5255_v34, %v2512_v61  ;;  %v2536_v0 = vsub.f32 %v2455_v29, %v2510_v62 }
 0x885   : > { %5722 = vpow2.f32 %v2555_v60 }
 0x886   : > { %v2559_v1 = vmul.f32 1.442695, %v2537_v63  ;;  %v2557_v2 = vmul.f32 1.442695, %v2536_v0 }
 0x887   : > { %v2514_v3 = vpop.xlane.xlu1 %2513  ;;  %v2516_v4 = vpop.xlane.xlu0 %2515 }
 0x888   : > { %5724 = vpow2.f32 %v2559_v1  ;;  %v2538_v5 = vsub.f32 %v5256_v38, %v2514_v3  ;;  %v2539_v6 = vsub.f32 %v2468_v30, %v2516_v4 }
 0x889   : > { %v6650_v7 = vpop.eup %5714  ;;  %5726 = vpow2.f32 %v2557_v2 }
 0x88a   : > { %v2561_v8 = vmul.f32 1.442695, %v2538_v5  ;;  %v2563_v9 = vmul.f32 1.442695, %v2539_v6  ;;  %2579 = vadd.xlane.f32.xlu0 %v6650_v7 }
 0x88b   : > { %v2520_v10 = vpop.xlane.xlu0 %2519  ;;  %v2518_v11 = vpop.xlane.xlu1 %2517 }
 0x88c   : > { %5728 = vpow2.f32 %v2561_v8  ;;  %v2541_v12 = vsub.f32 %v6627_v32, %v2520_v10  ;;  %v2540_v13 = vsub.f32 %v6631_v44, %v2518_v11  ;;  %v5481_v44 = vld [vmem:[%s6087_s16 + $0xe0] sm:$0xff]   ;;  %s4363_s16 = sshll.u32 %s6159_s22, 4  ;;  %s7420_s16 = int_to_ptr.vmem [resolvable:$true] %s4363_s16 }
 0x88d   : > { %v6655_v14 = vpop.eup %5716  ;;  %5730 = vpow2.f32 %v2563_v9  ;;  %5271 = vmatprep.subr.bf16.mxu0 %v5481_v44  ;;  %s5810_s23 = scalar_lea.vmem %s7420_s16, 8192  ;;  %p5817_p1 = scmp.lt.s32.totalorder %s7420_s16, %s5815_s26 }
 0x88e   : > { %v6657_v15 = vpop.eup %5718  ;;  %v2567_v16 = vmul.f32 1.442695, %v2541_v12  ;;  %v2565_v17 = vmul.f32 1.442695, %v2540_v13  ;;  %2583 = vadd.xlane.f32.xlu0 %v6655_v14  ;;  %5272 = vmatpush3.bf16.msra.mxu0 %v5481_v44  ;;  %p5811_p12 = scmp.ne.s32.totalorder %s7420_s16, %s5810_s23 }
 0x88f   : > { %2581 = vadd.xlane.f32.xlu1 %v6657_v15  ;;  %v2522_v18 = vpop.xlane.xlu1 %2521  ;;  %v2524_v19 = vpop.xlane.xlu0 %2523  ;;  %5273 = vmatprep.subr.bf16.mxu0 %v5482_v39 }
 0x890   : > { %5732 = vpow2.f32 %v2567_v16  ;;  %v2542_v20 = vsub.f32 %v6629_v40, %v2522_v18  ;;  %v2543_v21 = vsub.f32 %v6637_v35, %v2524_v19  ;;  %v5491_v19 = vld [vmem:[%s7647_s4 + $0x24] ss:$8 sps:$4 sm:$0xff]   ;;  %p5812_p13 = pnand %p5811_p12, %p5997_p5 }
 0x891   : > { %v6663_v22 = vpop.eup %5720  ;;  %5734 = vpow2.f32 %v2565_v17 }
 0x892   : > { %v6665_v23 = vpop.eup %5722  ;;  %v2569_v25 = vmul.f32 1.442695, %v2542_v20  ;;  %v2571_v28 = vmul.f32 1.442695, %v2543_v21  ;;  %5274 = vmatpush3.bf16.msra.mxu0 %v5482_v39  ;;  %p5813_p0 = pneg %p5812_p13 }
 0x893   : > { %2587 = vadd.xlane.f32.xlu0 %v6665_v23  ;;  %2585 = vadd.xlane.f32.xlu1 %v6663_v22  ;;  %v2528_v26 = vpop.xlane.xlu0 %2527  ;;  %v2526_v31 = vpop.xlane.xlu1 %2525 }
 0x894   : > { %5736 = vpow2.f32 %v2569_v25  ;;  %v2545_v24 = vsub.f32 %v6635_v42, %v2528_v26  ;;  %v2544_v33 = vsub.f32 %v6643_v37, %v2526_v31  ;;  %5275 = vmatprep.subr.bf16.mxu0 %v5483_v49 }
 0x895   : > { %v6672_v34 = vpop.eup %5724  ;;  %5738 = vpow2.f32 %v2571_v28  ;;  %v5489_v28 = vld [vmem:[%s7647_s4 + $0x20] ss:$8 sps:$4 sm:$0xff]  }
 0x896   : > { %v6674_v27 = vpop.eup %5726  ;;  %v2575_v38 = vmul.f32 1.442695, %v2545_v24  ;;  %v2573_v29 = vmul.f32 1.442695, %v2544_v33  ;;  %5276 = vmatpush3.bf16.msra.mxu0 %v5483_v49  ;;  %v5494_v24 = vld [vmem:[%s7647_s4 + $0x14] ss:$8 sps:$4 sm:$0xff]  }
 0x897   : > { %2591 = vadd.xlane.f32.xlu0 %v6672_v34  ;;  %2589 = vadd.xlane.f32.xlu1 %v6674_v27  ;;  %v2530_v32 = vpop.xlane.xlu1 %2529 }
 0x898   : > { %5740 = vpow2.f32 %v2575_v38  ;;  %v2546_v30 = vsub.f32 %v6641_v47, %v2530_v32  ;;  %5277 = vmatprep.subr.bf16.mxu0 %v5484_v51  ;;  %v5492_v38 = vld [vmem:[%s7647_s4 + $0x10] ss:$8 sps:$4 sm:$0xff]  }
 0x899   : > { %v6679_v40 = vpop.eup %5728  ;;  %5742 = vpow2.f32 %v2573_v29 }
 0x89a   : > { %v6682_v42 = vpop.eup %5730  ;;  %v2577_v35 = vmul.f32 1.442695, %v2546_v30  ;;  %5278 = vmatpush3.bf16.msra.mxu0 %v5484_v51  ;;  %v5497_v30 = vld [vmem:[%s7647_s4 + $0x4] ss:$8 sps:$4 sm:$0xff]   ;;  %v5500_v51 = vld [vmem:[%s7647_s4 + $0xb4] ss:$8 sps:$4 sm:$0xff]  }
 0x89b   : > { %2595 = vadd.xlane.f32.xlu0 %v6682_v42  ;;  %2593 = vadd.xlane.f32.xlu1 %v6679_v40 }
 0x89c   : > { %5744 = vpow2.f32 %v2577_v35  ;;  %5279 = vmatprep.subr.bf16.mxu0 %v5485_v46  ;;  %v5495_v35 = vld [vmem:[%s7647_s4] ss:$8 sps:$4 sm:$0xff]  }
 0x89d   : > { %v6686_v37 = vpop.eup %5732 }
 0x89e   : > { %v6688_v47 = vpop.eup %5734  ;;  %5280 = vmatpush3.bf16.msra.mxu0 %v5485_v46 }
 0x89f   : > { %2599 = vadd.xlane.f32.xlu0 %v6686_v37  ;;  %2597 = vadd.xlane.f32.xlu1 %v6688_v47 }
 0x8a0   : > { %3041 = vmatprep.subr.bf16.mxu0 %v5488_v52 }
 0x8a1   : > { %v6693_v41 = vpop.eup %5736 }
 0x8a2   : > { %v6695_v48 = vpop.eup %5738 }
 0x8a3   : > { %2603 = vadd.xlane.f32.xlu0 %v6695_v48  ;;  %2601 = vadd.xlane.f32.xlu1 %v6693_v41 }
 0x8a5   : > { %v6700_v50 = vpop.eup %5740 }
 0x8a6   : > { %v6702_v43 = vpop.eup %5742 }
 0x8a7   : > { %2607 = vadd.xlane.f32.xlu0 %v6700_v50  ;;  %2605 = vadd.xlane.f32.xlu1 %v6702_v43 }
 0x8a9   : > { %v6707_v45 = vpop.eup %5744 }
 0x8ab   : > { %2609 = vadd.xlane.f32.xlu1 %v6707_v45 }
 0x913   : > { %v2580_v55 = vpop.xlane.xlu0 %2579 }
 0x914   : > { %5746 = vrcp.f32 %v2580_v55 }
 0x917   : > { %v2584_v57 = vpop.xlane.xlu0 %2583 }
 0x918   : > { %5748 = vrcp.f32 %v2584_v57  ;;  %v2582_v58 = vpop.xlane.xlu1 %2581 }
 0x919   : > { %5750 = vrcp.f32 %v2582_v58 }
 0x91c   : > { %v2588_v59 = vpop.xlane.xlu0 %2587  ;;  %v2586_v60 = vpop.xlane.xlu1 %2585 }
 0x91d   : > { %5752 = vrcp.f32 %v2588_v59 }
 0x91e   : > { %5754 = vrcp.f32 %v2586_v60  ;;  %v2924_v60 = vld [vmem:[#allocation2 + $0x20] ss:$4 sm:$0xff] }
 0x920   : > { %v2592_v61 = vpop.xlane.xlu0 %2591  ;;  %v2590_v62 = vpop.xlane.xlu1 %2589 }
 0x921   : > { %v5747_v63 = vpop.eup %5746  ;;  %5756 = vrcp.f32 %v2592_v61  ;;  %v2922_v61 = vld [vmem:[#allocation2] ss:$4 sm:$0xff] }
 0x922   : > { %5758 = vrcp.f32 %v2590_v62  ;;  %v2627_v0 = vmul.f32 %v5747_v63, %v6650_v7  ;;  %v2953_v62 = vpack.c.bf16 %v2924_v60, %v2922_v61 }
 0x924   : > { %v2596_v1 = vpop.xlane.xlu0 %2595  ;;  %v2594_v2 = vpop.xlane.xlu1 %2593  ;;  %4791 = vst [vmem:[%s6159_s22 + $0x180] sm:$0xff] %v2627_v0 }
 0x925   : > { %v5749_v3 = vpop.eup %5748  ;;  %5760 = vrcp.f32 %v2596_v1  ;;  %v2930_v1 = vld [vmem:[#allocation2 + $0x80] ss:$4 sm:$0xff] }
 0x926   : > { %v5751_v4 = vpop.eup %5750  ;;  %5762 = vrcp.f32 %v2594_v2  ;;  %v2629_v5 = vmul.f32 %v5749_v3, %v6655_v14  ;;  %v2936_v3 = vld [vmem:[#allocation2 + $0xe0] ss:$4 sm:$0xff] }
 0x927   : > { %v2628_v6 = vmul.f32 %v5751_v4, %v6657_v15  ;;  %v5486_v15 = vld [vmem:[%s7647_s4 + $0x30] ss:$8 sps:$4 sm:$0xff]  }
 0x928   : > { %v2600_v8 = vpop.xlane.xlu0 %2599  ;;  %v2598_v9 = vpop.xlane.xlu1 %2597  ;;  %4793 = vst [vmem:[%s6159_s22 + $0x190] sm:$0xff] %v2629_v5  ;;  %v2934_v4 = vld [vmem:[#allocation2 + $0xc0] ss:$4 sm:$0xff] }
 0x929   : > { %5764 = vrcp.f32 %v2600_v8  ;;  %4792 = vst [vmem:[%s6159_s22 + $0x188] sm:$0xff] %v2628_v6  ;;  %v2660_v10 = vpack.c.bf16 %v2628_v6, %v2627_v0  ;;  %v2932_v0 = vld [vmem:[#allocation2 + $0xa0] ss:$4 sm:$0xff] }
 0x92a   : > { %v5753_v7 = vpop.eup %5752  ;;  %5766 = vrcp.f32 %v2598_v9  ;;  %v2955_v2 = vpack.c.bf16 %v2932_v0, %v2930_v1  ;;  %v2940_v6 = vld [vmem:[#allocation2 + $0x120] ss:$4 sm:$0xff]  ;;  %v3446_v1 = vld [vmem:[#allocation2 + $0xa2] ss:$4 sm:$0xff] }
 0x92b   : > { %v5755_v11 = vpop.eup %5754  ;;  %5281 = vmatprep.mubr.bf16.mxu0 %v2660_v10  ;;  %v2631_v12 = vmul.f32 %v5753_v7, %v6665_v23  ;;  %v2938_v8 = vld [vmem:[#allocation2 + $0x100] ss:$4 sm:$0xff] }
 0x92c   : > { %v2604_v13 = vpop.xlane.xlu0 %2603  ;;  %v2602_v16 = vpop.xlane.xlu1 %2601  ;;  %v2630_v14 = vmul.f32 %v5755_v11, %v6663_v22  ;;  %v2957_v9 = vpack.c.bf16 %v2940_v6, %v2938_v8  ;;  %v5504_v10 = vld [vmem:[%s7647_s4 + $0xa0] ss:$8 sps:$4 sm:$0xff]   ;;  %v5506_v7 = vld [vmem:[%s7647_s4 + $0xa4] ss:$8 sps:$4 sm:$0xff]  }
 0x92d   : > { %5768 = vrcp.f32 %v2604_v13  ;;  %4795 = vst [vmem:[%s6159_s22 + $0x1a0] sm:$0xff] %v2631_v12  ;;  %v2944_v11 = vld [vmem:[#allocation2 + $0x160] ss:$4 sm:$0xff]  ;;  %v3450_v8 = vld [vmem:[#allocation2 + $0xe2] ss:$4 sm:$0xff] }
 0x92e   : > { %v5757_v17 = vpop.eup %5756  ;;  %5770 = vrcp.f32 %v2602_v16  ;;  %4794 = vst [vmem:[%s6159_s22 + $0x198] sm:$0xff] %v2630_v14  ;;  %v2661_v18 = vpack.c.bf16 %v2630_v14, %v2629_v5  ;;  %v2956_v5 = vpack.c.bf16 %v2936_v3, %v2934_v4  ;;  %v5509_v13 = vld [vmem:[%s7647_s4 + $0xe4] ss:$8 sps:$4 sm:$0xff]  }
 0x92f   : > { %v5759_v20 = vpop.eup %5758  ;;  %v2633_v21 = vmul.f32 %v5757_v17, %v6672_v34  ;;  %v2942_v16 = vld [vmem:[#allocation2 + $0x140] ss:$4 sm:$0xff]  ;;  %3814 = vmatprep.subr.bf16.mxu1 %v5509_v13  ;;  %v3444_v3 = vld [vmem:[#allocation2 + $0x82] ss:$4 sm:$0xff]  ;;  %v3701_v4 = vld [vmem:[#allocation2 + $0x83] ss:$4 sm:$0xff] }
 0x930   : > { %5282 = vmatmul.mubr.bf16.vlgmr.msra.gmra.mxu0 %v2661_v18  ;;  %v2608_v22 = vpop.xlane.xlu0 %2607  ;;  %v2606_v23 = vpop.xlane.xlu1 %2605  ;;  %v2632_v25 = vmul.f32 %v5759_v20, %v6674_v27  ;;  %v2958_v14 = vpack.c.bf16 %v2944_v11, %v2942_v16  ;;  %v5512_v17 = vld [vmem:[%s7647_s4 + $0x94] ss:$8 sps:$4 sm:$0xff]   ;;  %v5513_v18 = vld [vmem:[%s7647_s4 + $0xd0] ss:$8 sps:$4 sm:$0xff]   ;;  %v5516_v20 = vld [vmem:[%s7647_s4 + $0x80] ss:$8 sps:$4 sm:$0xff]  }
 0x931   : > { %5772 = vrcp.f32 %v2608_v22  ;;  %4797 = vst [vmem:[%s6159_s22 + $0x1b0] sm:$0xff] %v2633_v21  ;;  %3042 = vmatpush1.bf16.msra.mxu0 %v5486_v15  ;;  %v5510_v15 = vld [vmem:[%s7647_s4 + $0x90] ss:$8 sps:$4 sm:$0xff]   ;;  %v5519_v22 = vld [vmem:[%s7647_s4 + $0xc0] ss:$8 sps:$4 sm:$0xff]  }
 0x932   : > { %v5761_v26 = vpop.eup %5760  ;;  %5774 = vrcp.f32 %v2606_v23  ;;  %4796 = vst [vmem:[%s6159_s22 + $0x1a8] sm:$0xff] %v2632_v25  ;;  %v2662_v31 = vpack.c.bf16 %v2632_v25, %v2631_v12  ;;  %3043 = vmatprep.subr.bf16.mxu0 %v5491_v19  ;;  %v5507_v12 = vld [vmem:[%s7647_s4 + $0xe0] ss:$8 sps:$4 sm:$0xff]   ;;  %v5515_v19 = vld [vmem:[%s7647_s4 + $0xd4] ss:$8 sps:$4 sm:$0xff]  }
 0x933   : > { %v5763_v33 = vpop.eup %5762  ;;  %v2635_v36 = vmul.f32 %v5761_v26, %v6682_v42  ;;  %3815 = vmatpush1.bf16.msra.mxu1 %v5507_v12  ;;  %v5521_v23 = vld [vmem:[%s7647_s4 + $0xc4] ss:$8 sps:$4 sm:$0xff]  }
 0x934   : > { %5285 = vmatprep.mubr.bf16.mxu0 %v2662_v31  ;;  %v2610_v34 = vpop.xlane.xlu1 %2609  ;;  %v2634_v27 = vmul.f32 %v5763_v33, %v6679_v40  ;;  %3816 = vmatprep.subr.bf16.mxu1 %v5515_v19  ;;  %v3454_v13 = vld [vmem:[#allocation2 + $0x122] ss:$4 sm:$0xff]  ;;  %v3711_v16 = vld [vmem:[#allocation2 + $0x123] ss:$4 sm:$0xff] }
 0x935   : > { %5776 = vrcp.f32 %v2610_v34  ;;  %4799 = vst [vmem:[%s6159_s22 + $0x1c0] sm:$0xff] %v2635_v36  ;;  %3044 = vmatpush1.bf16.msra.mxu0 %v5489_v28  ;;  %v3458_v19 = vld [vmem:[#allocation2 + $0x162] ss:$4 sm:$0xff] }
 0x936   : > { %v5765_v29 = vpop.eup %5764  ;;  %4798 = vst [vmem:[%s6159_s22 + $0x1b8] sm:$0xff] %v2634_v27  ;;  %v2663_v32 = vpack.c.bf16 %v2634_v27, %v2633_v21  ;;  %3045 = vmatprep.subr.bf16.mxu0 %v5494_v24  ;;  %v5518_v21 = vld [vmem:[%s7647_s4 + $0x84] ss:$8 sps:$4 sm:$0xff]  }
 0x937   : > { %v5767_v44 = vpop.eup %5766  ;;  %v2637_v40 = vmul.f32 %v5765_v29, %v6686_v37  ;;  %3817 = vmatpush1.bf16.msra.mxu1 %v5513_v18 }
 0x938   : > { %5286 = vmatmul.mubr.bf16.gmra.mxu0 %v2663_v32  ;;  %v2636_v42 = vmul.f32 %v5767_v44, %v6688_v47  ;;  %3818 = vmatprep.subr.bf16.mxu1 %v5521_v23 }
 0x939   : > { %4801 = vst [vmem:[%s6159_s22 + $0x1d0] sm:$0xff] %v2637_v40  ;;  %3046 = vmatpush1.bf16.msra.mxu0 %v5492_v38 }
 0x93a   : > { %v5769_v39 = vpop.eup %5768  ;;  %4800 = vst [vmem:[%s6159_s22 + $0x1c8] sm:$0xff] %v2636_v42  ;;  %v2664_v49 = vpack.c.bf16 %v2636_v42, %v2635_v36  ;;  %3047 = vmatprep.subr.bf16.mxu0 %v5497_v30 }
 0x93b   : > { %v5771_v37 = vpop.eup %5770  ;;  %v2639_v47 = vmul.f32 %v5769_v39, %v6695_v48  ;;  %3819 = vmatpush1.bf16.msra.mxu1 %v5519_v22  ;;  %v3713_v22 = vld [vmem:[#allocation2 + $0x143] ss:$4 sm:$0xff] }
 0x93c   : > { %5289 = vmatprep.mubr.bf16.mxu0 %v2664_v49  ;;  %v2638_v46 = vmul.f32 %v5771_v37, %v6693_v41 }
 0x93d   : > { %4803 = vst [vmem:[%s6159_s22 + $0x1e0] sm:$0xff] %v2639_v47  ;;  %3048 = vmatpush1.bf16.msra.mxu0 %v5495_v35 }
 0x93e   : > { %v5773_v52 = vpop.eup %5772  ;;  %4802 = vst [vmem:[%s6159_s22 + $0x1d8] sm:$0xff] %v2638_v46  ;;  %v2665_v53 = vpack.c.bf16 %v2638_v46, %v2637_v40  ;;  %3555 = vmatprep.subr.bf16.mxu0 %v5500_v51 }
 0x93f   : > { %v5775_v54 = vpop.eup %5774  ;;  %v2641_v55 = vmul.f32 %v5773_v52, %v6700_v50  ;;  %v5498_v50 = vld [vmem:[%s7647_s4 + $0xb0] ss:$8 sps:$4 sm:$0xff]  }
 0x940   : > { %5290 = vmatmul.mubr.bf16.gmra.mxu0 %v2665_v53  ;;  %v2640_v57 = vmul.f32 %v5775_v54, %v6702_v43  ;;  %v2928_v43 = vld [vmem:[#allocation2 + $0x60] ss:$4 sm:$0xff] }
 0x941   : > { %4805 = vst [vmem:[%s6159_s22 + $0x1f0] sm:$0xff] %v2641_v55 }
 0x942   : > { %v5777_v58 = vpop.eup %5776  ;;  %4804 = vst [vmem:[%s6159_s22 + $0x1e8] sm:$0xff] %v2640_v57  ;;  %v2666_v48 = vpack.c.bf16 %v2640_v57, %v2639_v47 }
 0x943   : > { %v2642_v59 = vmul.f32 %v5777_v58, %v6707_v45  ;;  %v2926_v45 = vld [vmem:[#allocation2 + $0x40] ss:$4 sm:$0xff]  ;;  %v3438_v58 = vld [vmem:[#allocation2 + $0x22] ss:$4 sm:$0xff] }
 0x944   : > { %5293 = vmatprep.mubr.bf16.mxu0 %v2666_v48  ;;  %v2954_v63 = vpack.c.bf16 %v2928_v43, %v2926_v45  ;;  %v3695_v48 = vld [vmem:[#allocation2 + $0x23] ss:$4 sm:$0xff]  ;;  %v3440_v43 = vld [vmem:[#allocation2 + $0x42] ss:$4 sm:$0xff] }
 0x945   : > { %4806 = vst [vmem:[%s6159_s22 + $0x1f8] sm:$0xff] %v2642_v59  ;;  %v2667_v41 = vpack.c.bf16 %v2642_v59, %v2641_v55  ;;  %v3436_v59 = vld [vmem:[#allocation2 + $0x2] ss:$4 sm:$0xff]  ;;  %v3697_v45 = vld [vmem:[#allocation2 + $0x43] ss:$4 sm:$0xff]  ;;  %s5816_s22 = scalar_lea.vmem %s5815_s26, 16384 }
 0x946   : > { %v3467_v60 = vpack.c.bf16 %v3438_v58, %v3436_v59  ;;  %p5818_p2 = scmp.lt.s32.totalorder %s5816_s22, %s5810_s23 }
 0x948   : > { %5294 = vmatmul.mubr.bf16.gmra.mxu0 %v2667_v41  ;;  %v3693_v41 = vld [vmem:[#allocation2 + $0x3] ss:$4 sm:$0xff]  ;;  %p5819_p3 = por %p5818_p2, %p5817_p1 }
 0x949   : > { %3065 = vmatprep.mubr.bf16.mxu0 %v5902_v56  ;;  %v3724_v61 = vpack.c.bf16 %v3695_v48, %v3693_v41 }
 0x94a   : > { %p5820_p4 = pnand %p5819_p3, %p5813_p0 }
 0x950   : > { %4839 = vmatmul.mubr.msk.bf16.vlgmr.msra.gmra.mxu0 %vm537_vm0, %v2953_v62  ;;  %v3699_v62 = vld [vmem:[#allocation2 + $0x63] ss:$4 sm:$0xff] }
 0x951   : > { %3075 = vmatprep.mubr.bf16.mxu0 %v5902_v56  ;;  %3556 = vmatpush1.bf16.msra.mxu0 %v5498_v50  ;;  %v3442_v50 = vld [vmem:[#allocation2 + $0x62] ss:$4 sm:$0xff]  ;;  %v3725_v0 = vpack.c.bf16 %v3699_v62, %v3697_v45 }
 0x952   : > { %3557 = vmatprep.subr.bf16.mxu0 %v5506_v7  ;;  %v3705_v7 = vld [vmem:[#allocation2 + $0xc3] ss:$4 sm:$0xff] }
 0x955   : > { %3558 = vmatpush1.bf16.msra.mxu0 %v5504_v10  ;;  %v3448_v10 = vld [vmem:[#allocation2 + $0xc2] ss:$4 sm:$0xff] }
 0x956   : > { %3559 = vmatprep.subr.bf16.mxu0 %v5512_v17  ;;  %v3470_v11 = vpack.c.bf16 %v3450_v8, %v3448_v10 }
 0x958   : > { %4840 = vmatmul.mubr.msk.bf16.gmra.mxu0 %vm537_vm0, %v2954_v63  ;;  %v3468_v63 = vpack.c.bf16 %v3442_v50, %v3440_v43 }
 0x959   : > { %3085 = vmatprep.mubr.bf16.mxu0 %v5902_v56  ;;  %3560 = vmatpush1.bf16.msra.mxu0 %v5510_v15  ;;  %v3709_v15 = vld [vmem:[#allocation2 + $0x103] ss:$4 sm:$0xff] }
 0x95a   : > { %3561 = vmatprep.subr.bf16.mxu0 %v5518_v21  ;;  %v3728_v18 = vpack.c.bf16 %v3711_v16, %v3709_v15  ;;  %v3456_v21 = vld [vmem:[#allocation2 + $0x142] ss:$4 sm:$0xff] }
 0x95b   : > { %v3472_v23 = vpack.c.bf16 %v3458_v19, %v3456_v21  ;;  %v2880_v19 = vlaneseq }
 0x95d   : > { %3562 = vmatpush1.bf16.msra.mxu0 %v5516_v20  ;;  %v3715_v20 = vld [vmem:[#allocation2 + $0x163] ss:$4 sm:$0xff] }
 0x960   : > { %4841 = vmatmul.mubr.msk.bf16.gmra.mxu0 %vm537_vm0, %v2955_v2  ;;  %v3703_v2 = vld [vmem:[#allocation2 + $0xa3] ss:$4 sm:$0xff] }
 0x961   : > { %3095 = vmatprep.mubr.bf16.mxu0 %v5902_v56  ;;  %v3726_v6 = vpack.c.bf16 %v3703_v2, %v3701_v4 }
 0x968   : > { %4842 = vmatmul.mubr.msk.bf16.gmra.mxu0 %vm537_vm0, %v2956_v5  ;;  %v3469_v5 = vpack.c.bf16 %v3446_v1, %v3444_v3 }
 0x969   : > { %3105 = vmatprep.mubr.bf16.mxu0 %v5902_v56 }
 0x970   : > { %4843 = vmatmul.mubr.msk.bf16.gmra.mxu0 %vm537_vm0, %v2957_v9  ;;  %v3707_v9 = vld [vmem:[#allocation2 + $0xe3] ss:$4 sm:$0xff] }
 0x971   : > { %3115 = vmatprep.mubr.bf16.mxu0 %v5902_v56  ;;  %v3727_v12 = vpack.c.bf16 %v3707_v9, %v3705_v7 }
 0x978   : > { %4844 = vmatmul.mubr.msk.bf16.gmra.mxu0 %vm537_vm0, %v2958_v14  ;;  %v3452_v14 = vld [vmem:[#allocation2 + $0x102] ss:$4 sm:$0xff] }
 0x979   : > { %3125 = vmatprep.mubr.bf16.mxu0 %v5902_v56  ;;  %v3471_v17 = vpack.c.bf16 %v3454_v13, %v3452_v14 }
 0x9f0   : > { %v5283_v25 = vpop.f32.mrf.mxu0 }
 0x9f1   : > { %2832 = vst.msk [vmem:[#allocation2 + $0x190] sm:$0xff] %vm537_vm0, %v5283_v25  ;;  %v3729_v25 = vpack.c.bf16 %v3715_v20, %v3713_v22 }
 0x9f2   : > { %v2767_v28 = vpop.f32.mrf.mxu0 }
 0x9f3   : > { %2830 = vst.msk [vmem:[#allocation2 + $0x180] sm:$0xff] %vm537_vm0, %v2767_v28 }
 0x9f4   : > { %v5284_v26 = vpop.f32.mrf.mxu0 }
 0x9f5   : > { %2833 = vst.msk [vmem:[#allocation2 + $0x198] sm:$0xff] %vm537_vm0, %v5284_v26 }
 0x9f6   : > { %v2770_v31 = vpop.f32.mrf.mxu0 }
 0x9f7   : > { %2831 = vst.msk [vmem:[#allocation2 + $0x188] sm:$0xff] %vm537_vm0, %v2770_v31 }
 0x9f8   : > { %v5287_v24 = vpop.f32.mrf.mxu0 }
 0x9f9   : > { %2836 = vst.msk [vmem:[#allocation2 + $0x1b0] sm:$0xff] %vm537_vm0, %v5287_v24 }
 0x9fa   : > { %v2783_v33 = vpop.f32.mrf.mxu0 }
 0x9fb   : > { %2834 = vst.msk [vmem:[#allocation2 + $0x1a0] sm:$0xff] %vm537_vm0, %v2783_v33 }
 0x9fc   : > { %v5288_v36 = vpop.f32.mrf.mxu0 }
 0x9fd   : > { %2837 = vst.msk [vmem:[#allocation2 + $0x1b8] sm:$0xff] %vm537_vm0, %v5288_v36 }
 0x9fe   : > { %v2786_v34 = vpop.f32.mrf.mxu0  ;;  %v2946_v32 = vld [vmem:[#allocation2 + $0x180] ss:$4 sm:$0xff]  ;;  %v3203_v40 = vld [vmem:[#allocation2 + $0x181] ss:$4 sm:$0xff]  ;;  %v3460_v31 = vld [vmem:[#allocation2 + $0x182] ss:$4 sm:$0xff] }
 0x9ff   : > { %2835 = vst.msk [vmem:[#allocation2 + $0x1a8] sm:$0xff] %vm537_vm0, %v2786_v34  ;;  %v3717_v24 = vld [vmem:[#allocation2 + $0x183] ss:$4 sm:$0xff] }
 0xa00   : > { %v5291_v27 = vpop.f32.mrf.mxu0 }
 0xa01   : > { %2840 = vst.msk [vmem:[#allocation2 + $0x1d0] sm:$0xff] %vm537_vm0, %v5291_v27 }
 0xa02   : > { %v2799_v38 = vpop.f32.mrf.mxu0 }
 0xa03   : > { %2838 = vst.msk [vmem:[#allocation2 + $0x1c0] sm:$0xff] %vm537_vm0, %v2799_v38 }
 0xa04   : > { %v5292_v29 = vpop.f32.mrf.mxu0 }
 0xa05   : > { %2841 = vst.msk [vmem:[#allocation2 + $0x1d8] sm:$0xff] %vm537_vm0, %v5292_v29 }
 0xa06   : > { %v2802_v30 = vpop.f32.mrf.mxu0  ;;  %v2948_v44 = vld [vmem:[#allocation2 + $0x1a0] ss:$4 sm:$0xff]  ;;  %v3205_v42 = vld [vmem:[#allocation2 + $0x1a1] ss:$4 sm:$0xff]  ;;  %v3462_v28 = vld [vmem:[#allocation2 + $0x1a2] ss:$4 sm:$0xff] }
 0xa07   : > { %2839 = vst.msk [vmem:[#allocation2 + $0x1c8] sm:$0xff] %vm537_vm0, %v2802_v30  ;;  %v2959_v35 = vpack.c.bf16 %v2948_v44, %v2946_v32  ;;  %v3216_v39 = vpack.c.bf16 %v3205_v42, %v3203_v40  ;;  %v3719_v26 = vld [vmem:[#allocation2 + $0x1a3] ss:$4 sm:$0xff]  ;;  %v3473_v33 = vpack.c.bf16 %v3462_v28, %v3460_v31  ;;  %v6884_v40 = vpop.f32.mrf.mxu1 }
 0xa08   : > { %v5295_v49 = vpop.f32.mrf.mxu0  ;;  %v3730_v36 = vpack.c.bf16 %v3719_v26, %v3717_v24  ;;  %v2878_v24 = vld [vmem:[%s7648_s5] sm:$0x3] }
 0xa09   : > { %2844 = vst.msk [vmem:[#allocation2 + $0x1f0] sm:$0xff] %vm537_vm0, %v5295_v49  ;;  %4845 = vmatmul.mubr.msk.bf16.gmra.mxu0 %vm537_vm0, %v2959_v35  ;;  %4861 = vmatmul.mubr.msk.bf16.gmra.mxu1 %vm537_vm0, %v3216_v39  ;;  %v6888_v35 = vpop.f32.mrf.mxu1 }
 0xa0a   : > { %v2815_v51 = vpop.f32.mrf.mxu0  ;;  %3135 = vmatprep.mubr.bf16.mxu0 %v5902_v56  ;;  %3392 = vmatprep.mubr.bf16.mxu1 %v5902_v56 }
 0xa0b   : > { %2842 = vst.msk [vmem:[#allocation2 + $0x1e0] sm:$0xff] %vm537_vm0, %v2815_v51 }
 0xa0c   : > { %v5296_v37 = vpop.f32.mrf.mxu0 }
 0xa0d   : > { %2845 = vst.msk [vmem:[#allocation2 + $0x1f8] sm:$0xff] %vm537_vm0, %v5296_v37 }
 0xa0e   : > { %v2818_v47 = vpop.f32.mrf.mxu0  ;;  %v2950_v46 = vld [vmem:[#allocation2 + $0x1c0] ss:$4 sm:$0xff]  ;;  %v3207_v53 = vld [vmem:[#allocation2 + $0x1c1] ss:$4 sm:$0xff]  ;;  %v3464_v38 = vld [vmem:[#allocation2 + $0x1c2] ss:$4 sm:$0xff] }
 0xa0f   : > { %2843 = vst.msk [vmem:[#allocation2 + $0x1e8] sm:$0xff] %vm537_vm0, %v2818_v47  ;;  %v3721_v29 = vld [vmem:[#allocation2 + $0x1c3] ss:$4 sm:$0xff] }
 0xa10   : > { %v6882_v44 = vpop.f32.mrf.mxu0 }
 0xa12   : > { %v6886_v42 = vpop.f32.mrf.mxu0 }
 0xa14   : > { %v6890_v39 = vpop.f32.mrf.mxu0 }
 0xa16   : > { %v2952_v52 = vld [vmem:[#allocation2 + $0x1e0] ss:$4 sm:$0xff]  ;;  %v3209_v54 = vld [vmem:[#allocation2 + $0x1e1] ss:$4 sm:$0xff]  ;;  %v3466_v34 = vld [vmem:[#allocation2 + $0x1e2] ss:$4 sm:$0xff]  ;;  %v6894_v49 = vpop.f32.mrf.mxu0 }
 0xa17   : > { %v2960_v55 = vpack.c.bf16 %v2952_v52, %v2950_v46  ;;  %v3217_v57 = vpack.c.bf16 %v3209_v54, %v3207_v53  ;;  %v3723_v27 = vld [vmem:[#allocation2 + $0x1e3] ss:$4 sm:$0xff]  ;;  %v3474_v32 = vpack.c.bf16 %v3466_v34, %v3464_v38 }
 0xa18   : > { %v3731_v30 = vpack.c.bf16 %v3723_v27, %v3721_v29  ;;  %v6898_v37 = vpop.f32.mrf.mxu0  ;;  %v2846_v38 = vld [vmem:[%s6995_s27] sm:$0xff] }
 0xa19   : > { %4846 = vmatmul.mubr.msk.bf16.gmra.mxu0 %vm537_vm0, %v2960_v55  ;;  %4862 = vmatmul.mubr.msk.bf16.gmra.mxu1 %vm537_vm0, %v3217_v57 }
 0xa1a   : > { %3579 = vmatprep.mubr.bf16.mxu0 %v5902_v56  ;;  %3836 = vmatprep.mubr.bf16.mxu1 %v5902_v56  ;;  %v6902_v46 = vpop.f32.mrf.mxu0 }
 0xa1c   : > { %v6906_v53 = vpop.f32.mrf.mxu0 }
 0xa1e   : > { %v6910_v55 = vpop.f32.mrf.mxu0 }
 0xa20   : > { %v6914_v58 = vpop.f32.mrf.mxu0 }
 0xa21   : > { %4871 = vmatmul.mubr.msk.bf16.vlgmr.msra.gmra.mxu0 %vm537_vm0, %v3467_v60  ;;  %4887 = vmatmul.mubr.msk.bf16.vlgmr.msra.gmra.mxu1 %vm537_vm0, %v3724_v61 }
 0xa22   : > { %3589 = vmatprep.mubr.bf16.mxu0 %v5902_v56  ;;  %3846 = vmatprep.mubr.bf16.mxu1 %v5902_v56  ;;  %v6918_v59 = vpop.f32.mrf.mxu0 }
 0xa24   : > { %v6922_v60 = vpop.f32.mrf.mxu0 }
 0xa26   : > { %v6926_v50 = vpop.f32.mrf.mxu0 }
 0xa28   : > { %v6930_v43 = vpop.f32.mrf.mxu0 }
 0xa29   : > { %4872 = vmatmul.mubr.msk.bf16.gmra.mxu0 %vm537_vm0, %v3468_v63  ;;  %4888 = vmatmul.mubr.msk.bf16.gmra.mxu1 %vm537_vm0, %v3725_v0 }
 0xa2a   : > { %3599 = vmatprep.mubr.bf16.mxu0 %v5902_v56  ;;  %3856 = vmatprep.mubr.bf16.mxu1 %v5902_v56  ;;  %v6934_v63 = vpop.f32.mrf.mxu0 }
 0xa2c   : > { %v6938_v1 = vpop.f32.mrf.mxu0 }
 0xa2e   : > { %v6942_v3 = vpop.f32.mrf.mxu0 }
 0xa31   : > { %4873 = vmatmul.mubr.msk.bf16.gmra.mxu0 %vm537_vm0, %v3469_v5  ;;  %4889 = vmatmul.mubr.msk.bf16.gmra.mxu1 %vm537_vm0, %v3726_v6  ;;  %v6946_v5 = vpop.f32.mrf.mxu0 }
 0xa32   : > { %3609 = vmatprep.mubr.bf16.mxu0 %v5902_v56  ;;  %3866 = vmatprep.mubr.bf16.mxu1 %v5902_v56 }
 0xa33   : > { %v6950_v8 = vpop.f32.mrf.mxu0 }
 0xa35   : > { %v6954_v10 = vpop.f32.mrf.mxu0 }
 0xa39   : > { %4874 = vmatmul.mubr.msk.bf16.gmra.mxu0 %vm537_vm0, %v3470_v11  ;;  %4890 = vmatmul.mubr.msk.bf16.gmra.mxu1 %vm537_vm0, %v3727_v12  ;;  %v6958_v11 = vpop.f32.mrf.mxu0 }
 0xa3a   : > { %3619 = vmatprep.mubr.bf16.mxu0 %v5902_v56  ;;  %3876 = vmatprep.mubr.bf16.mxu1 %v5902_v56 }
 0xa3b   : > { %v6964_v16 = vpop.f32.mrf.mxu0 }
 0xa3d   : > { %v6968_v15 = vpop.f32.mrf.mxu0 }
 0xa41   : > { %4875 = vmatmul.mubr.msk.bf16.gmra.mxu0 %vm537_vm0, %v3471_v17  ;;  %4891 = vmatmul.mubr.msk.bf16.gmra.mxu1 %vm537_vm0, %v3728_v18  ;;  %v6973_v18 = vpop.f32.mrf.mxu0 }
 0xa42   : > { %3629 = vmatprep.mubr.bf16.mxu0 %v5902_v56  ;;  %3886 = vmatprep.mubr.bf16.mxu1 %v5902_v56 }
 0xa43   : > { %v6977_v21 = vpop.f32.mrf.mxu0 }
 0xa44   : > { %7662 = vst [vmem:[#allocation12_spill] sm:$0xff] %v6977_v21 }
 0xa49   : > { %4876 = vmatmul.mubr.msk.bf16.gmra.mxu0 %vm537_vm0, %v3472_v23  ;;  %4892 = vmatmul.mubr.msk.bf16.gmra.mxu1 %vm537_vm0, %v3729_v25  ;;  %v2881_v25 = vshrl.u32 %v2880_v19, 7 }
 0xa4a   : > { %3639 = vmatprep.mubr.bf16.mxu0 %v5902_v56  ;;  %3896 = vmatprep.mubr.bf16.mxu1 %v5902_v56 }
 0xa4b   : > { %v6987_v31 = vsub.s32 0, %v2881_v25 }
 0xa4d   : > { %7667 = vst [vmem:[#allocation17_spill] sm:$0xff] %v6987_v31  ;;  %v7004_v27 = vrot.slane %v2878_v24, %v6987_v31 }
 0xa51   : > { %4877 = vmatmul.mubr.msk.bf16.gmra.mxu0 %vm537_vm0, %v3473_v33  ;;  %4893 = vmatmul.mubr.msk.bf16.gmra.mxu1 %vm537_vm0, %v3730_v36  ;;  %v6997_v33 = vsub.s32 1, %v2881_v25  ;;  %v2890_v25 = vadd.f32 %v7004_v27, %v2846_v38  ;;  %v2850_v38 = vld [vmem:[%s6995_s27 + $0x20] sm:$0xff] }
 0xa52   : > { %3649 = vmatprep.mubr.bf16.mxu0 %v5902_v56  ;;  %3906 = vmatprep.mubr.bf16.mxu1 %v5902_v56  ;;  %v6892_v56 = vpop.f32.mrf.mxu1 }
 0xa53   : > { %7668 = vst [vmem:[#allocation18_spill] sm:$0xff] %v6997_v33  ;;  %v7008_v29 = vrot.slane %v2878_v24, %v6997_v33  ;;  %v3146_v33 = vadd.f32 %v6882_v44, %v2890_v25 }
 0xa54   : > { %v6896_v51 = vpop.f32.mrf.mxu1 }
 0xa56   : > { %v6900_v47 = vpop.f32.mrf.mxu1 }
 0xa58   : > { %v6904_v52 = vpop.f32.mrf.mxu1 }
 0xa59   : > { %4878 = vmatmul.mubr.msk.bf16.gmra.mxu0 %vm537_vm0, %v3474_v32  ;;  %4894 = vmatmul.mubr.msk.bf16.gmra.mxu1 %vm537_vm0, %v3731_v30  ;;  %v2847_v32 = vld [vmem:[%s6995_s27 + $0x8] sm:$0xff] }
 0xa5a   : > { %v6908_v54 = vpop.f32.mrf.mxu1  ;;  %v2891_v31 = vadd.f32 %v7008_v29, %v2847_v32 }
 0xa5c   : > { %v6912_v57 = vpop.f32.mrf.mxu1  ;;  %v3147_v32 = vadd.f32 %v6886_v42, %v2891_v31  ;;  %v2853_v42 = vld [vmem:[%s6995_s27 + $0x38] sm:$0xff] }
 0xa5e   : > { %v6916_v48 = vpop.f32.mrf.mxu1 }
 0xa60   : > { %v6920_v41 = vpop.f32.mrf.mxu1 }
 0xa62   : > { %v6924_v61 = vpop.f32.mrf.mxu1 }
 0xa64   : > { %v6928_v62 = vpop.f32.mrf.mxu1 }
 0xa66   : > { %v6932_v45 = vpop.f32.mrf.mxu1 }
 0xa68   : > { %v6936_v0 = vpop.f32.mrf.mxu1 }
 0xa6a   : > { %v6940_v2 = vpop.f32.mrf.mxu1 }
 0xa6c   : > { %v6944_v4 = vpop.f32.mrf.mxu1 }
 0xa6e   : > { %v6948_v6 = vpop.f32.mrf.mxu1 }
 0xa70   : > { %v6952_v9 = vpop.f32.mrf.mxu1 }
 0xa72   : > { %v6956_v7 = vpop.f32.mrf.mxu1 }
 0xa74   : > { %v6960_v12 = vpop.f32.mrf.mxu1 }
 0xa76   : > { %v6962_v13 = vpop.f32.mrf.mxu1 }
 0xa78   : > { %v6966_v14 = vpop.f32.mrf.mxu1 }
 0xa79   : > { %7659 = vst [vmem:[#allocation9_spill] sm:$0xff] %v6966_v14 }
 0xa7a   : > { %v6971_v17 = vpop.f32.mrf.mxu1 }
 0xa7b   : > { %7660 = vst [vmem:[#allocation10_spill] sm:$0xff] %v6971_v17 }
 0xa7c   : > { %v6975_v20 = vpop.f32.mrf.mxu1 }
 0xa7d   : > { %7661 = vst [vmem:[#allocation11_spill] sm:$0xff] %v6975_v20 }
 0xac9   : > { %v6979_v22 = vpop.f32.mrf.mxu0  ;;  %v6981_v23 = vpop.f32.mrf.mxu1 }
 0xaca   : > { %7663 = vst [vmem:[#allocation13_spill] sm:$0xff] %v6979_v22  ;;  %7664 = vst [vmem:[#allocation14_spill] sm:$0xff] %v6981_v23  ;;  %v2849_v23 = vld [vmem:[%s6995_s27 + $0x18] sm:$0xff] }
 0xacb   : > { %v6983_v28 = vpop.f32.mrf.mxu0  ;;  %v6985_v26 = vpop.f32.mrf.mxu1 }
 0xacc   : > { %7665 = vst [vmem:[#allocation15_spill] sm:$0xff] %v6983_v28  ;;  %7666 = vst [vmem:[#allocation16_spill] sm:$0xff] %v6985_v26  ;;  %v2848_v26 = vld [vmem:[%s6995_s27 + $0x10] sm:$0xff] }
 0xacd   : > { %v6999_v36 = vpop.f32.mrf.mxu0  ;;  %v7001_v34 = vpop.f32.mrf.mxu1 }
 0xace   : > { %7669 = vst [vmem:[#allocation19_spill] sm:$0xff] %v6999_v36  ;;  %7670 = vst [vmem:[#allocation20_spill] sm:$0xff] %v7001_v34 }
 0xacf   : > { %v7011_v30 = vpop.f32.mrf.mxu0  ;;  %v7013_v19 = vpop.f32.mrf.mxu1 }
 0xad0   : > { %7671 = vst [vmem:[#allocation21_spill] sm:$0xff] %v7011_v30  ;;  %7672 = vst [vmem:[#allocation22_spill] sm:$0xff] %v7013_v19  ;;  %v2892_v19 = vadd.f32 %v7004_v27, %v2848_v26  ;;  %v2893_v30 = vadd.f32 %v7008_v29, %v2849_v23  ;;  %v2894_v26 = vadd.f32 %v7004_v27, %v2850_v38  ;;  %v2854_v38 = vld [vmem:[%s6995_s27 + $0x40] sm:$0xff] }
 0xad1   : > { %v3403_v23 = vadd.f32 %v6884_v40, %v3146_v33  ;;  %v2897_v33 = vadd.f32 %v7008_v29, %v2853_v42  ;;  %v2857_v42 = vld [vmem:[%s6995_s27 + $0x58] sm:$0xff] }
 0xad2   : > { %v3148_v44 = vadd.f32 %v6890_v39, %v2892_v19  ;;  %v3149_v25 = vadd.f32 %v6894_v49, %v2893_v30  ;;  %v3150_v39 = vadd.f32 %v6898_v37, %v2894_v26  ;;  %v2898_v26 = vadd.f32 %v7004_v27, %v2854_v38 }
 0xad4   : > { %v3405_v49 = vadd.f32 %v6892_v56, %v3148_v44  ;;  %v3406_v21 = vadd.f32 %v6896_v51, %v3149_v25  ;;  %v2856_v44 = vld [vmem:[%s6995_s27 + $0x50] sm:$0xff] }
 0xad9   : > { %v7017_v36 = vpop.f32.mrf.mxu0  ;;  %v7019_v34 = vpop.f32.mrf.mxu1 }
 0xada   : > { %7673 = vst [vmem:[#allocation23_spill] sm:$0xff] %v7017_v36  ;;  %7674 = vst [vmem:[#allocation24_spill] sm:$0xff] %v7019_v34  ;;  %v2851_v34 = vld [vmem:[%s6995_s27 + $0x28] sm:$0xff] }
 0xadb   : > { %v7023_v20 = vpop.f32.mrf.mxu0  ;;  %v7025_v24 = vpop.f32.mrf.mxu1 }
 0xadc   : > { %7675 = vst [vmem:[#allocation25_spill] sm:$0xff] %v7023_v20  ;;  %7676 = vst [vmem:[#allocation26_spill] sm:$0xff] %v7025_v24  ;;  %v2852_v24 = vld [vmem:[%s6995_s27 + $0x30] sm:$0xff] }
 0xadd   : > { %v7031_v28 = vpop.f32.mrf.mxu0  ;;  %v7033_v36 = vpop.f32.mrf.mxu1  ;;  %v2896_v19 = vadd.f32 %v7004_v27, %v2852_v24 }
 0xade   : > { %7677 = vst [vmem:[#allocation27_spill] sm:$0xff] %v7031_v28  ;;  %7678 = vst [vmem:[#allocation28_spill] sm:$0xff] %v7033_v36  ;;  %v2895_v36 = vadd.f32 %v7008_v29, %v2851_v34 }
 0xadf   : > { %v7037_v22 = vpop.f32.mrf.mxu0  ;;  %v7039_v20 = vpop.f32.mrf.mxu1  ;;  %v3152_v56 = vadd.f32 %v6906_v53, %v2896_v19 }
 0xae0   : > { %7679 = vst [vmem:[#allocation29_spill] sm:$0xff] %v7037_v22  ;;  %7680 = vst [vmem:[#allocation30_spill] sm:$0xff] %v7039_v20  ;;  %v3404_v22 = vadd.f32 %v6888_v35, %v3147_v32  ;;  %v2855_v35 = vld [vmem:[%s6995_s27 + $0x48] sm:$0xff] }
 0xae1   : > { %v3581_v28 = vpop.f32.mrf.mxu0  ;;  %v3838_v17 = vpop.f32.mrf.mxu1 }
 0xae2   : > { %v3660_v31 = vadd.f32 %v3581_v28, %v3403_v23  ;;  %v3151_v28 = vadd.f32 %v6902_v46, %v2895_v36  ;;  %v3407_v46 = vadd.f32 %v6900_v47, %v3150_v39  ;;  %v2858_v39 = vld [vmem:[%s6995_s27 + $0x60] sm:$0xff] }
 0xae3   : > { %v3583_v20 = vpop.f32.mrf.mxu0  ;;  %v3840_v14 = vpop.f32.mrf.mxu1 }
 0xae4   : > { %v3661_v40 = vadd.f32 %v3583_v20, %v3404_v22  ;;  %v7057_v32 = vadd.f32 %v3838_v17, %v3660_v31  ;;  %v3153_v17 = vadd.f32 %v6910_v55, %v2897_v33  ;;  %v3408_v19 = vadd.f32 %v6904_v52, %v3151_v28 }
 0xae5   : > { %v3585_v30 = vpop.f32.mrf.mxu0  ;;  %v3842_v34 = vpop.f32.mrf.mxu1  ;;  %v3154_v55 = vadd.f32 %v6914_v58, %v2898_v26 }
 0xae6   : > { %v7059_v37 = vadd.f32 %v3840_v14, %v3661_v40  ;;  %v3662_v24 = vadd.f32 %v3585_v30, %v3405_v49  ;;  %v2899_v14 = vadd.f32 %v7008_v29, %v2855_v35  ;;  %v3409_v30 = vadd.f32 %v6908_v54, %v3152_v56 }
 0xae7   : > { %v3587_v20 = vpop.f32.mrf.mxu0  ;;  %v3844_v22 = vpop.f32.mrf.mxu1  ;;  %v3410_v52 = vadd.f32 %v6912_v57, %v3153_v17 }
 0xae8   : > { %v3949_v23 = vadd.f32 %v7059_v37, %v7057_v32  ;;  %v3663_v51 = vadd.f32 %v3587_v20, %v3406_v21  ;;  %v7070_v31 = vadd.f32 %v3842_v34, %v3662_v24  ;;  %v2900_v21 = vadd.f32 %v7004_v27, %v2856_v44  ;;  %v2859_v20 = vld [vmem:[%s6995_s27 + $0x68] sm:$0xff] }
 0xae9   : > { %v3591_v36 = vpop.f32.mrf.mxu0  ;;  %v3848_v25 = vpop.f32.mrf.mxu1  ;;  %v2901_v34 = vadd.f32 %v7008_v29, %v2857_v42  ;;  %v3155_v28 = vadd.f32 %v6918_v59, %v2899_v14  ;;  %v2902_v44 = vadd.f32 %v7004_v27, %v2858_v39  ;;  %v3411_v59 = vadd.f32 %v6916_v48, %v3154_v55  ;;  %v2861_v42 = vld [vmem:[%s6995_s27 + $0x78] sm:$0xff]  ;;  %v2862_v55 = vld [vmem:[%s6995_s27 + $0x80] sm:$0xff] }
 0xaea   : > { %v7072_v38 = vadd.f32 %v3844_v22, %v3663_v51  ;;  %v3664_v53 = vadd.f32 %v3591_v36, %v3407_v46  ;;  %3950 = vadd.xlane.f32.xlu0 %v3949_v23  ;;  %v3156_v56 = vadd.f32 %v6922_v60, %v2900_v21  ;;  %v2860_v51 = vld [vmem:[%s6995_s27 + $0x70] sm:$0xff]  ;;  %v2903_v14 = vadd.f32 %v7008_v29, %v2859_v20 }
 0xaeb   : > { %v3593_v40 = vpop.f32.mrf.mxu0  ;;  %v3850_v47 = vpop.f32.mrf.mxu1  ;;  %v3157_v17 = vadd.f32 %v6926_v50, %v2901_v34  ;;  %v3412_v21 = vadd.f32 %v6920_v41, %v3155_v28  ;;  %v3158_v50 = vadd.f32 %v6930_v43, %v2902_v44 }
 0xaec   : > { %v3952_v49 = vadd.f32 %v7072_v38, %v7070_v31  ;;  %v3665_v33 = vadd.f32 %v3593_v40, %v3408_v19  ;;  %v7085_v22 = vadd.f32 %v3848_v25, %v3664_v53  ;;  %v2904_v40 = vadd.f32 %v7004_v27, %v2860_v51 }
 0xaed   : > { %v3595_v35 = vpop.f32.mrf.mxu0  ;;  %v3852_v24 = vpop.f32.mrf.mxu1  ;;  %v3414_v41 = vadd.f32 %v6928_v62, %v3157_v17  ;;  %v2865_v17 = vld [vmem:[%s6995_s27 + $0x98] sm:$0xff] }
 0xaee   : > { %v7087_v58 = vadd.f32 %v3850_v47, %v3665_v33  ;;  %v3666_v26 = vadd.f32 %v3595_v35, %v3409_v30  ;;  %3953 = vadd.xlane.f32.xlu1 %v3952_v49  ;;  %v3413_v33 = vadd.f32 %v6924_v61, %v3156_v56  ;;  %v2905_v30 = vadd.f32 %v7008_v29, %v2861_v42 }
 0xaef   : > { %v3597_v23 = vpop.f32.mrf.mxu0  ;;  %v3854_v54 = vpop.f32.mrf.mxu1 }
 0xaf0   : > { %v3955_v57 = vadd.f32 %v7087_v58, %v7085_v22  ;;  %v3667_v46 = vadd.f32 %v3597_v23, %v3410_v52  ;;  %v7098_v53 = vadd.f32 %v3852_v24, %v3666_v26  ;;  %v3159_v24 = vadd.f32 %v6934_v63, %v2903_v14  ;;  %v2863_v52 = vld [vmem:[%s6995_s27 + $0x88] sm:$0xff] }
 0xaf1   : > { %v3601_v36 = vpop.f32.mrf.mxu0  ;;  %v3858_v25 = vpop.f32.mrf.mxu1  ;;  %v2906_v26 = vadd.f32 %v7004_v27, %v2862_v55  ;;  %v3160_v23 = vadd.f32 %v6938_v1, %v2904_v40  ;;  %v3415_v63 = vadd.f32 %v6932_v45, %v3158_v50  ;;  %v3161_v51 = vadd.f32 %v6942_v3, %v2905_v30 }
 0xaf2   : > { %v7100_v19 = vadd.f32 %v3854_v54, %v3667_v46  ;;  %v3668_v60 = vadd.f32 %v3601_v36, %v3411_v59  ;;  %3956 = vadd.xlane.f32.xlu0 %v3955_v57  ;;  %v2864_v54 = vld [vmem:[%s6995_s27 + $0x90] sm:$0xff]  ;;  %v2907_v57 = vadd.f32 %v7008_v29, %v2863_v52  ;;  %v2909_v50 = vadd.f32 %v7008_v29, %v2865_v17 }
 0xaf3   : > { %v3603_v47 = vpop.f32.mrf.mxu0  ;;  %v3860_v48 = vpop.f32.mrf.mxu1  ;;  %v2908_v42 = vadd.f32 %v7004_v27, %v2864_v54  ;;  %v3162_v3 = vadd.f32 %v6946_v5, %v2906_v26  ;;  %v2868_v52 = vld [vmem:[%s6995_s27 + $0xb0] sm:$0xff]  ;;  %v2869_v54 = vld [vmem:[%s6995_s27 + $0xb8] sm:$0xff] }
 0xaf4   : > { %v3958_v39 = vadd.f32 %v7100_v19, %v7098_v53  ;;  %v3669_v49 = vadd.f32 %v3603_v47, %v3412_v21  ;;  %v7113_v28 = vadd.f32 %v3858_v25, %v3668_v60  ;;  %v3416_v25 = vadd.f32 %v6936_v0, %v3159_v24  ;;  %v2866_v21 = vld [vmem:[%s6995_s27 + $0xa0] sm:$0xff] }
 0xaf5   : > { %v3605_v34 = vpop.f32.mrf.mxu0  ;;  %v3862_v35 = vpop.f32.mrf.mxu1  ;;  %v3418_v0 = vadd.f32 %v6944_v4, %v3161_v51  ;;  %v3164_v24 = vadd.f32 %v6954_v10, %v2908_v42  ;;  %v3165_v26 = vadd.f32 %v6958_v11, %v2909_v50  ;;  %v2912_v51 = vadd.f32 %v7004_v27, %v2868_v52 }
 0xaf6   : > { %v7115_v43 = vadd.f32 %v3860_v48, %v3669_v49  ;;  %v3670_v20 = vadd.f32 %v3605_v34, %v3413_v33  ;;  %3959 = vadd.xlane.f32.xlu1 %v3958_v39  ;;  %v3417_v48 = vadd.f32 %v6940_v2, %v3160_v23  ;;  %v3163_v49 = vadd.f32 %v6950_v8, %v2907_v57  ;;  %v2867_v33 = vld [vmem:[%s6995_s27 + $0xa8] sm:$0xff] }
 0xaf7   : > { %v3607_v44 = vpop.f32.mrf.mxu0  ;;  %v3864_v61 = vpop.f32.mrf.mxu1  ;;  %v3419_v8 = vadd.f32 %v6948_v6, %v3162_v3  ;;  %v3421_v17 = vadd.f32 %v6956_v7, %v3164_v24  ;;  %v2871_v3 = vld [vmem:[%s6995_s27 + $0xc8] sm:$0xff]  ;;  %v7682_v24 = vld [vmem:[#allocation9_spill] sm:$0xff] }
 0xaf8   : > { %v3961_v62 = vadd.f32 %v7115_v43, %v7113_v28  ;;  %v3671_v56 = vadd.f32 %v3607_v44, %v3414_v41  ;;  %v7126_v14 = vadd.f32 %v3862_v35, %v3670_v20  ;;  %v2910_v35 = vadd.f32 %v7004_v27, %v2866_v21 }
 0xaf9   : > { %v3611_v46 = vpop.f32.mrf.mxu0  ;;  %v3868_v59 = vpop.f32.mrf.mxu1  ;;  %v2911_v44 = vadd.f32 %v7008_v29, %v2867_v33  ;;  %v2872_v33 = vld [vmem:[%s6995_s27 + $0xd0] sm:$0xff] }
 0xafa   : > { %v7128_v36 = vadd.f32 %v3864_v61, %v3671_v56  ;;  %v3672_v1 = vadd.f32 %v3611_v46, %v3415_v63  ;;  %3962 = vadd.xlane.f32.xlu0 %v3961_v62  ;;  %v3420_v63 = vadd.f32 %v6952_v9, %v3163_v49  ;;  %v3166_v11 = vadd.f32 %v6964_v16, %v2910_v35 }
 0xafb   : > { %v3613_v60 = vpop.f32.mrf.mxu0  ;;  %v3870_v45 = vpop.f32.mrf.mxu1  ;;  %v3167_v9 = vadd.f32 %v6968_v15, %v2911_v44  ;;  %v2915_v49 = vadd.f32 %v7008_v29, %v2871_v3  ;;  %v7684_v44 = vld [vmem:[#allocation13_spill] sm:$0xff] }
 0xafc   : > { %v3964_v40 = vadd.f32 %v7128_v36, %v7126_v14  ;;  %v3673_v47 = vadd.f32 %v3613_v60, %v3416_v25  ;;  %v7141_v30 = vadd.f32 %v3868_v59, %v3672_v1  ;;  %v2913_v1 = vadd.f32 %v7008_v29, %v2869_v54  ;;  %v2870_v25 = vld [vmem:[%s6995_s27 + $0xc0] sm:$0xff] }
 0xafd   : > { %v3615_v55 = vpop.f32.mrf.mxu0  ;;  %v3872_v39 = vpop.f32.mrf.mxu1  ;;  %v2914_v50 = vadd.f32 %v7004_v27, %v2870_v25  ;;  %v3423_v15 = vadd.f32 %v6962_v13, %v3166_v11  ;;  %v3424_v52 = vadd.f32 %v7682_v24, %v3167_v9  ;;  %v2874_v54 = vld [vmem:[%s6995_s27 + $0xe0] sm:$0xff] }
 0xafe   : > { %v7143_v5 = vadd.f32 %v3870_v45, %v3673_v47  ;;  %v3674_v34 = vadd.f32 %v3615_v55, %v3417_v48  ;;  %3965 = vadd.xlane.f32.xlu1 %v3964_v40  ;;  %v3422_v45 = vadd.f32 %v6960_v12, %v3165_v26  ;;  %v3168_v47 = vadd.f32 %v6973_v18, %v2912_v51  ;;  %v7685_v51 = vld [vmem:[#allocation15_spill] sm:$0xff] }
 0xaff   : > { %v3617_v41 = vpop.f32.mrf.mxu0  ;;  %v3874_v2 = vpop.f32.mrf.mxu1 }
 0xb00   : > { %v3967_v4 = vadd.f32 %v7143_v5, %v7141_v30  ;;  %v3675_v20 = vadd.f32 %v3617_v41, %v3418_v0  ;;  %v7154_v62 = vadd.f32 %v3872_v39, %v3674_v34  ;;  %v7681_v39 = vld [vmem:[#allocation12_spill] sm:$0xff] }
 0xb01   : > { %v3621_v61 = vpop.f32.mrf.mxu0  ;;  %v3878_v23 = vpop.f32.mrf.mxu1  ;;  %v3169_v0 = vadd.f32 %v7681_v39, %v2913_v1  ;;  %v2875_v1 = vld [vmem:[%s6995_s27 + $0xe8] sm:$0xff] }
 0xb02   : > { %v7156_v56 = vadd.f32 %v3874_v2, %v3675_v20  ;;  %v3676_v10 = vadd.f32 %v3621_v61, %v3419_v8  ;;  %3968 = vadd.xlane.f32.xlu0 %v3967_v4  ;;  %v2873_v4 = vld [vmem:[%s6995_s27 + $0xd8] sm:$0xff]  ;;  %v7683_v8 = vld [vmem:[#allocation10_spill] sm:$0xff]  ;;  %v3170_v61 = vadd.f32 %v7684_v44, %v2914_v50  ;;  %v2876_v50 = vld [vmem:[%s6995_s27 + $0xf0] sm:$0xff] }
 0xb03   : > { %v3623_v6 = vpop.f32.mrf.mxu0  ;;  %v3880_v57 = vpop.f32.mrf.mxu1  ;;  %v3425_v26 = vadd.f32 %v7683_v8, %v3168_v47 }
 0xb04   : > { %v3970_v46 = vadd.f32 %v7156_v56, %v7154_v62  ;;  %v3677_v59 = vadd.f32 %v3623_v6, %v3420_v63  ;;  %v7169_v21 = vadd.f32 %v3878_v23, %v3676_v10  ;;  %v2916_v23 = vadd.f32 %v7004_v27, %v2872_v33 }
 0xb05   : > { %v3625_v42 = vpop.f32.mrf.mxu0  ;;  %v3882_v60 = vpop.f32.mrf.mxu1  ;;  %v3171_v6 = vadd.f32 %v7685_v51, %v2915_v49 }
 0xb06   : > { %v7171_v16 = vadd.f32 %v3880_v57, %v3677_v59  ;;  %v3678_v40 = vadd.f32 %v3625_v42, %v3421_v17  ;;  %3971 = vadd.xlane.f32.xlu1 %v3970_v46  ;;  %v7686_v46 = vld [vmem:[#allocation11_spill] sm:$0xff]  ;;  %v2917_v17 = vadd.f32 %v7008_v29, %v2873_v4 }
 0xb07   : > { %v3627_v7 = vpop.f32.mrf.mxu0  ;;  %v3884_v48 = vpop.f32.mrf.mxu1  ;;  %v3426_v59 = vadd.f32 %v7686_v46, %v3169_v0  ;;  %v2919_v0 = vadd.f32 %v7008_v29, %v2875_v1  ;;  %v7694_v46 = vld [vmem:[#allocation22_spill] sm:$0xff] }
 0xb08   : > { %v3973_v12 = vadd.f32 %v7171_v16, %v7169_v21  ;;  %v3679_v55 = vadd.f32 %v3627_v7, %v3422_v45  ;;  %v7181_v18 = vadd.f32 %v3882_v60, %v3678_v40  ;;  %v2918_v45 = vadd.f32 %v7004_v27, %v2874_v54  ;;  %v7687_v40 = vld [vmem:[#allocation14_spill] sm:$0xff]  ;;  %v7688_v7 = vld [vmem:[#allocation19_spill] sm:$0xff] }
 0xb09   : > { %v3631_v34 = vpop.f32.mrf.mxu0  ;;  %v3888_v35 = vpop.f32.mrf.mxu1  ;;  %v3427_v47 = vadd.f32 %v7687_v40, %v3170_v61  ;;  %v7692_v61 = vld [vmem:[#allocation23_spill] sm:$0xff] }
 0xb0a   : > { %v7183_v41 = vadd.f32 %v3884_v48, %v3679_v55  ;;  %v3680_v2 = vadd.f32 %v3631_v34, %v3423_v15  ;;  %3974 = vadd.xlane.f32.xlu0 %v3973_v12  ;;  %v3172_v48 = vadd.f32 %v7688_v7, %v2916_v23  ;;  %v7689_v15 = vld [vmem:[#allocation16_spill] sm:$0xff]  ;;  %v7690_v34 = vld [vmem:[#allocation21_spill] sm:$0xff]  ;;  %v3174_v23 = vadd.f32 %v7692_v61, %v2918_v45  ;;  %v7696_v40 = vld [vmem:[#allocation27_spill] sm:$0xff] }
 0xb0b   : > { %v3633_v20 = vpop.f32.mrf.mxu0  ;;  %v3890_v13 = vpop.f32.mrf.mxu1  ;;  %v3428_v39 = vadd.f32 %v7689_v15, %v3171_v6  ;;  %v7698_v15 = vld [vmem:[#allocation29_spill] sm:$0xff] }
 0xb0c   : > { %v3976_v10 = vadd.f32 %v7183_v41, %v7181_v18  ;;  %v3681_v63 = vadd.f32 %v3633_v20, %v3424_v52  ;;  %v7197_v25 = vadd.f32 %v3888_v35, %v3680_v2  ;;  %v3173_v35 = vadd.f32 %v7690_v34, %v2917_v17  ;;  %v2877_v2 = vld [vmem:[%s6995_s27 + $0xf8] sm:$0xff] }
 0xb0d   : > { %v3635_v57 = vpop.f32.mrf.mxu0  ;;  %v3892_v11 = vpop.f32.mrf.mxu1  ;;  %v2920_v20 = vadd.f32 %v7004_v27, %v2876_v50  ;;  %v2921_v6 = vadd.f32 %v7008_v29, %v2877_v2  ;;  %v7699_v2 = vld [vmem:[#allocation28_spill] sm:$0xff] }
 0xb0e   : > { %v7199_v42 = vadd.f32 %v3890_v13, %v3681_v63  ;;  %v3682_v60 = vadd.f32 %v3635_v57, %v3425_v26  ;;  %3977 = vadd.xlane.f32.xlu1 %v3976_v10  ;;  %v7691_v26 = vld [vmem:[#allocation20_spill] sm:$0xff]  ;;  %v7693_v63 = vld [vmem:[#allocation25_spill] sm:$0xff] }
 0xb0f   : > { %v3637_v9 = vpop.f32.mrf.mxu0  ;;  %v3894_v3 = vpop.f32.mrf.mxu1  ;;  %v3429_v44 = vadd.f32 %v7691_v26, %v3172_v48  ;;  %v3175_v51 = vadd.f32 %v7693_v63, %v2919_v0  ;;  %v7697_v48 = vld [vmem:[#allocation26_spill] sm:$0xff] }
 0xb10   : > { %v3979_v12 = vadd.f32 %v7199_v42, %v7197_v25  ;;  %v3683_v55 = vadd.f32 %v3637_v9, %v3426_v59  ;;  %v7211_v24 = vadd.f32 %v3892_v11, %v3682_v60  ;;  %v3430_v59 = vadd.f32 %v7694_v46, %v3173_v35  ;;  %v7695_v9 = vld [vmem:[#allocation24_spill] sm:$0xff] }
 0xb11   : > { %v3641_v49 = vpop.f32.mrf.mxu0  ;;  %v3898_v33 = vpop.f32.mrf.mxu1  ;;  %v3432_v50 = vadd.f32 %v7697_v48, %v3175_v51 }
 0xb12   : > { %v7213_v52 = vadd.f32 %v3894_v3, %v3683_v55  ;;  %v3684_v4 = vadd.f32 %v3641_v49, %v3427_v47  ;;  %3980 = vadd.xlane.f32.xlu0 %v3979_v12  ;;  %v3431_v3 = vadd.f32 %v7695_v9, %v3174_v23  ;;  %v3176_v47 = vadd.f32 %v7696_v40, %v2920_v20 }
 0xb13   : > { %v3643_v13 = vpop.f32.mrf.mxu0  ;;  %v3900_v8 = vpop.f32.mrf.mxu1 }
 0xb14   : > { %v3982_v54 = vadd.f32 %v7213_v52, %v7211_v24  ;;  %v3685_v10 = vadd.f32 %v3643_v13, %v3428_v39  ;;  %v7223_v17 = vadd.f32 %v3898_v33, %v3684_v4  ;;  %v3177_v39 = vadd.f32 %v7698_v15, %v2921_v6 }
 0xb15   : > { %v3645_v57 = vpop.f32.mrf.mxu0  ;;  %v3902_v11 = vpop.f32.mrf.mxu1  ;;  %v3433_v4 = vadd.f32 %v7699_v2, %v3176_v47 }
 0xb16   : > { %v7225_v27 = vadd.f32 %v3900_v8, %v3685_v10  ;;  %v3686_v1 = vadd.f32 %v3645_v57, %v3429_v44  ;;  %3983 = vadd.xlane.f32.xlu1 %v3982_v54  ;;  %v7700_v44 = vld [vmem:[#allocation30_spill] sm:$0xff] }
 0xb17   : > { %v3647_v60 = vpop.f32.mrf.mxu0  ;;  %v3904_v45 = vpop.f32.mrf.mxu1  ;;  %v3434_v61 = vadd.f32 %v7700_v44, %v3177_v39 }
 0xb18   : > { %v3985_v7 = vadd.f32 %v7225_v27, %v7223_v17  ;;  %v3687_v29 = vadd.f32 %v3647_v60, %v3430_v59  ;;  %v7233_v0 = vadd.f32 %v3902_v11, %v3686_v1 }
 0xb19   : > { %v3651_v12 = vpop.f32.mrf.mxu0  ;;  %v3908_v55 = vpop.f32.mrf.mxu1 }
 0xb1a   : > { %v7235_v49 = vadd.f32 %v3904_v45, %v3687_v29  ;;  %v3688_v33 = vadd.f32 %v3651_v12, %v3431_v3  ;;  %3986 = vadd.xlane.f32.xlu0 %v3985_v7 }
 0xb1b   : > { %v3653_v34 = vpop.f32.mrf.mxu0  ;;  %v3910_v35 = vpop.f32.mrf.mxu1 }
 0xb1c   : > { %v3988_v20 = vadd.f32 %v7235_v49, %v7233_v0  ;;  %v3689_v13 = vadd.f32 %v3653_v34, %v3432_v50  ;;  %v7241_v23 = vadd.f32 %v3908_v55, %v3688_v33 }
 0xb1d   : > { %v3655_v8 = vpop.f32.mrf.mxu0  ;;  %v3912_v26 = vpop.f32.mrf.mxu1 }
 0xb1e   : > { %v7243_v54 = vadd.f32 %v3910_v35, %v3689_v13  ;;  %v3690_v10 = vadd.f32 %v3655_v8, %v3433_v4  ;;  %3989 = vadd.xlane.f32.xlu1 %v3988_v20 }
 0xb1f   : > { %v3657_v63 = vpop.f32.mrf.mxu0  ;;  %v3914_v57 = vpop.f32.mrf.mxu1 }
 0xb20   : > { %v3991_v51 = vadd.f32 %v7243_v54, %v7241_v23  ;;  %v3691_v6 = vadd.f32 %v3657_v63, %v3434_v61  ;;  %v7247_v11 = vadd.f32 %v3912_v26, %v3690_v10 }
 0xb22   : > { %v7249_v46 = vadd.f32 %v3914_v57, %v3691_v6  ;;  %3992 = vadd.xlane.f32.xlu0 %v3991_v51 }
 0xb24   : > { %v3994_v59 = vadd.f32 %v7249_v46, %v7247_v11 }
 0xb26   : > { %3995 = vadd.xlane.f32.xlu1 %v3994_v59 }
 0xb73   : > { %v3951_v1 = vpop.xlane.xlu0 %3950 }
 0xb74   : > { %v3998_v60 = vmul.f32 0.00390625, %v3951_v1 }
 0xb76   : > { %v7254_v45 = vsub.f32 %v7057_v32, %v3998_v60  ;;  %v7257_v9 = vsub.f32 %v7059_v37, %v3998_v60 }
 0xb77   : > { %v3954_v3 = vpop.xlane.xlu1 %3953 }
 0xb78   : > { %v4046_v40 = vmul.f32 %v7254_v45, %v7254_v45  ;;  %v4047_v47 = vmul.f32 %v7257_v9, %v7257_v9  ;;  %v3999_v7 = vmul.f32 0.00390625, %v3954_v3 }
 0xb7a   : > { %v7264_v29 = vsub.f32 %v7070_v31, %v3999_v7  ;;  %v7267_v48 = vsub.f32 %v7072_v38, %v3999_v7  ;;  %v4078_v50 = vadd.f32 %v4047_v47, %v4046_v40 }
 0xb7b   : > { %v3957_v32 = vpop.xlane.xlu0 %3956 }
 0xb7c   : > { %v4048_v37 = vmul.f32 %v7264_v29, %v7264_v29  ;;  %v4049_v12 = vmul.f32 %v7267_v48, %v7267_v48  ;;  %v4000_v55 = vmul.f32 0.00390625, %v3957_v32  ;;  %4079 = vadd.xlane.f32.xlu0 %v4078_v50 }
 0xb7e   : > { %v7274_v15 = vsub.f32 %v7085_v22, %v4000_v55  ;;  %v7277_v39 = vsub.f32 %v7087_v58, %v4000_v55  ;;  %v4081_v31 = vadd.f32 %v4049_v12, %v4048_v37 }
 0xb7f   : > { %v3960_v33 = vpop.xlane.xlu1 %3959 }
 0xb80   : > { %v4050_v38 = vmul.f32 %v7274_v15, %v7274_v15  ;;  %v4051_v34 = vmul.f32 %v7277_v39, %v7277_v39  ;;  %v4001_v35 = vmul.f32 0.00390625, %v3960_v33  ;;  %4082 = vadd.xlane.f32.xlu1 %v4081_v31 }
 0xb82   : > { %v7284_v2 = vsub.f32 %v7098_v53, %v4001_v35  ;;  %v7287_v4 = vsub.f32 %v7100_v19, %v4001_v35  ;;  %v4084_v22 = vadd.f32 %v4051_v34, %v4050_v38 }
 0xb83   : > { %v3963_v20 = vpop.xlane.xlu0 %3962 }
 0xb84   : > { %v4052_v58 = vmul.f32 %v7284_v2, %v7284_v2  ;;  %v4053_v13 = vmul.f32 %v7287_v4, %v7287_v4  ;;  %v4002_v8 = vmul.f32 0.00390625, %v3963_v20  ;;  %4085 = vadd.xlane.f32.xlu0 %v4084_v22 }
 0xb86   : > { %v7294_v26 = vsub.f32 %v7113_v28, %v4002_v8  ;;  %v7297_v44 = vsub.f32 %v7115_v43, %v4002_v8  ;;  %v4087_v53 = vadd.f32 %v4053_v13, %v4052_v58 }
 0xb87   : > { %v3966_v61 = vpop.xlane.xlu1 %3965 }
 0xb88   : > { %v4054_v19 = vmul.f32 %v7294_v26, %v7294_v26  ;;  %v4055_v10 = vmul.f32 %v7297_v44, %v7297_v44  ;;  %v4003_v63 = vmul.f32 0.00390625, %v3966_v61  ;;  %4088 = vadd.xlane.f32.xlu1 %v4087_v53 }
 0xb8a   : > { %v7304_v51 = vsub.f32 %v7126_v14, %v4003_v63  ;;  %v7307_v6 = vsub.f32 %v7128_v36, %v4003_v63  ;;  %v4090_v28 = vadd.f32 %v4055_v10, %v4054_v19 }
 0xb8b   : > { %v3969_v57 = vpop.xlane.xlu0 %3968 }
 0xb8c   : > { %v4056_v43 = vmul.f32 %v7304_v51, %v7304_v51  ;;  %v4057_v59 = vmul.f32 %v7307_v6, %v7307_v6  ;;  %v4004_v1 = vmul.f32 0.00390625, %v3969_v57  ;;  %4091 = vadd.xlane.f32.xlu0 %v4090_v28 }
 0xb8e   : > { %v7314_v60 = vsub.f32 %v7141_v30, %v4004_v1  ;;  %v7317_v3 = vsub.f32 %v7143_v5, %v4004_v1  ;;  %v4093_v14 = vadd.f32 %v4057_v59, %v4056_v43 }
 0xb8f   : > { %v3972_v40 = vpop.xlane.xlu1 %3971 }
 0xb90   : > { %v4058_v36 = vmul.f32 %v7314_v60, %v7314_v60  ;;  %v4059_v47 = vmul.f32 %v7317_v3, %v7317_v3  ;;  %v4005_v7 = vmul.f32 0.00390625, %v3972_v40  ;;  %4094 = vadd.xlane.f32.xlu1 %v4093_v14 }
 0xb92   : > { %v7324_v50 = vsub.f32 %v7154_v62, %v4005_v7  ;;  %v7327_v32 = vsub.f32 %v7156_v56, %v4005_v7  ;;  %v4096_v30 = vadd.f32 %v4059_v47, %v4058_v36 }
 0xb93   : > { %v3975_v37 = vpop.xlane.xlu0 %3974 }
 0xb94   : > { %v4060_v5 = vmul.f32 %v7324_v50, %v7324_v50  ;;  %v4061_v12 = vmul.f32 %v7327_v32, %v7327_v32  ;;  %v4006_v55 = vmul.f32 0.00390625, %v3975_v37  ;;  %4097 = vadd.xlane.f32.xlu0 %v4096_v30 }
 0xb96   : > { %v7334_v31 = vsub.f32 %v7169_v21, %v4006_v55  ;;  %v7337_v33 = vsub.f32 %v7171_v16, %v4006_v55  ;;  %v4099_v62 = vadd.f32 %v4061_v12, %v4060_v5 }
 0xb97   : > { %v3978_v38 = vpop.xlane.xlu1 %3977 }
 0xb98   : > { %v4062_v56 = vmul.f32 %v7334_v31, %v7334_v31  ;;  %v4063_v34 = vmul.f32 %v7337_v33, %v7337_v33  ;;  %v4007_v35 = vmul.f32 0.00390625, %v3978_v38  ;;  %4100 = vadd.xlane.f32.xlu1 %v4099_v62 }
 0xb9a   : > { %v7344_v22 = vsub.f32 %v7181_v18, %v4007_v35  ;;  %v7347_v20 = vsub.f32 %v7183_v41, %v4007_v35  ;;  %v4102_v21 = vadd.f32 %v4063_v34, %v4062_v56 }
 0xb9b   : > { %v3981_v58 = vpop.xlane.xlu0 %3980 }
 0xb9c   : > { %v4064_v16 = vmul.f32 %v7344_v22, %v7344_v22  ;;  %v4065_v13 = vmul.f32 %v7347_v20, %v7347_v20  ;;  %v4008_v8 = vmul.f32 0.00390625, %v3981_v58  ;;  %4103 = vadd.xlane.f32.xlu0 %v4102_v21 }
 0xb9e   : > { %v7354_v53 = vsub.f32 %v7197_v25, %v4008_v8  ;;  %v7357_v61 = vsub.f32 %v7199_v42, %v4008_v8  ;;  %v4105_v18 = vadd.f32 %v4065_v13, %v4064_v16 }
 0xb9f   : > { %v3984_v19 = vpop.xlane.xlu1 %3983 }
 0xba0   : > { %v4066_v41 = vmul.f32 %v7354_v53, %v7354_v53  ;;  %v4067_v10 = vmul.f32 %v7357_v61, %v7357_v61  ;;  %v4009_v63 = vmul.f32 0.00390625, %v3984_v19  ;;  %4106 = vadd.xlane.f32.xlu1 %v4105_v18 }
 0xba2   : > { %v7364_v28 = vsub.f32 %v7211_v24, %v4009_v63  ;;  %v7367_v57 = vsub.f32 %v7213_v52, %v4009_v63  ;;  %v4108_v25 = vadd.f32 %v4067_v10, %v4066_v41 }
 0xba3   : > { %v3987_v43 = vpop.xlane.xlu0 %3986 }
 0xba4   : > { %v4068_v42 = vmul.f32 %v7364_v28, %v7364_v28  ;;  %v4069_v59 = vmul.f32 %v7367_v57, %v7367_v57  ;;  %v4010_v1 = vmul.f32 0.00390625, %v3987_v43  ;;  %4109 = vadd.xlane.f32.xlu0 %v4108_v25 }
 0xba6   : > { %v7374_v14 = vsub.f32 %v7223_v17, %v4010_v1  ;;  %v7377_v40 = vsub.f32 %v7225_v27, %v4010_v1  ;;  %v4111_v24 = vadd.f32 %v4069_v59, %v4068_v42 }
 0xba7   : > { %v3990_v36 = vpop.xlane.xlu1 %3989 }
 0xba8   : > { %v4070_v52 = vmul.f32 %v7374_v14, %v7374_v14  ;;  %v4071_v47 = vmul.f32 %v7377_v40, %v7377_v40  ;;  %v4011_v7 = vmul.f32 0.00390625, %v3990_v36  ;;  %4112 = vadd.xlane.f32.xlu1 %v4111_v24 }
 0xbaa   : > { %v7384_v30 = vsub.f32 %v7233_v0, %v4011_v7  ;;  %v7387_v37 = vsub.f32 %v7235_v49, %v4011_v7  ;;  %v4114_v17 = vadd.f32 %v4071_v47, %v4070_v52 }
 0xbab   : > { %v3993_v5 = vpop.xlane.xlu0 %3992 }
 0xbac   : > { %v4072_v27 = vmul.f32 %v7384_v30, %v7384_v30  ;;  %v4073_v12 = vmul.f32 %v7387_v37, %v7387_v37  ;;  %v4012_v55 = vmul.f32 0.00390625, %v3993_v5  ;;  %4115 = vadd.xlane.f32.xlu0 %v4114_v17 }
 0xbae   : > { %v7394_v62 = vsub.f32 %v7241_v23, %v4012_v55  ;;  %v7397_v0 = vsub.f32 %v7243_v54, %v4012_v55  ;;  %v4117_v49 = vadd.f32 %v4073_v12, %v4072_v27 }
 0xbaf   : > { %v3996_v38 = vpop.xlane.xlu1 %3995 }
 0xbb0   : > { %v4074_v56 = vmul.f32 %v7394_v62, %v7394_v62  ;;  %v4075_v34 = vmul.f32 %v7397_v0, %v7397_v0  ;;  %v4013_v35 = vmul.f32 0.00390625, %v3996_v38  ;;  %4118 = vadd.xlane.f32.xlu1 %v4117_v49 }
 0xbb2   : > { %v7404_v23 = vsub.f32 %v7247_v11, %v4013_v35  ;;  %v7407_v21 = vsub.f32 %v7249_v46, %v4013_v35  ;;  %v4120_v54 = vadd.f32 %v4075_v34, %v4074_v56 }
 0xbb4   : > { %v4076_v58 = vmul.f32 %v7404_v23, %v7404_v23  ;;  %v4077_v16 = vmul.f32 %v7407_v21, %v7407_v21  ;;  %4121 = vadd.xlane.f32.xlu0 %v4120_v54 }
 0xbb6   : > { %v4123_v13 = vadd.f32 %v4077_v16, %v4076_v58 }
 0xbb8   : > { %4124 = vadd.xlane.f32.xlu1 %v4123_v13 }
 0xbb9   : > { %5823 = shalt.err (!%p5820_p4)
}
 0xbba   : > { %s5824_s27 = scalar_lea.hbm %s7418_s21, 8192  ;;  %s5828_s14 = scalar_lea.hbm %s7652_s9, 32768 }
 0xbbb   : > { %p5825_p7 = scmp.ne.s32.totalorder %s7418_s21, %s5824_s27  ;;  %p5829_p10 = scmp.lt.s32.totalorder %s7418_s21, %s7652_s9 }
 0xbbc   : > { %p5830_p11 = scmp.lt.s32.totalorder %s5828_s14, %s5824_s27 }
 0xbbd   : > { %p5826_p8 = pnand %p5825_p7, %p5997_p5 }
 0xbbe   : > { %p5831_p12 = por %p5830_p11, %p5829_p10 }
 0xbbf   : > { %p5827_p9 = pneg %p5826_p8 }
 0xbc1   : > { %p5832_p13 = pnand %p5831_p12, %p5827_p9 }
 0xbc3   : > { %5835 = shalt.err (!%p5832_p13)
}
 0xbc4   : > { %s5904_s23 = smov 128   ;;  %s5905_s26 = smov 8   ;;  %v4206_v59 = vld [vmem:[%s7649_s6] sm:$0x3]  ;;  %v7703_v7 = vld [vmem:[#allocation18_spill] sm:$0xff] }
 0xbc5   : > { %s7701_s22 = scalar_lea.sflag [#allocation6], %s6155_s17  ;;  %v4250_v1 = vld [vmem:[%s7650_s7] sm:$0x3]  ;;  %v7455_v17 = vrot.slane %v4206_v59, %v7703_v7  ;;  %s4497_s25 = sshll.u32 %s6155_s17, 8 }
 0xbc6   : > { %5330 = dma.vmem_to_hbm [thread:$0]  (%p5997_p5), %s7420_s16, 8192, %s7418_s21, %s7701_s22, %s5904_s23, %s5904_s23, %s5905_s26   ;;  %v7702_v52 = vld [vmem:[#allocation17_spill] sm:$0xff]  ;;  %v7461_v55 = vrot.slane %v4250_v1, %v7703_v7 }
 0xbc7   : > { %v7452_v47 = vrot.slane %v4206_v59, %v7702_v52  ;;  %v7458_v12 = vrot.slane %v4250_v1, %v7702_v52  ;;  %s7472_s29 = scalar_lea.vmem [#allocation3], %s4497_s25  ;;  %s4910_s14 = sshll.u32 %s5980_s13, 12 }
 0xbc8   : > { %s4346_s24 = sshll.u32 %s7472_s29, 4  ;;  %s7595_s22 = scalar_lea.hbm %s7651_s8, %s4910_s14  ;;  %s7597_s24 = int_to_ptr.vmem [resolvable:$true] %s4346_s24 }
 0xbc9   : > { %s4327_s13 = scalar_lea.sflag [#allocation4], %s6155_s17  ;;  %s5836_s28 = scalar_lea.vmem %s7597_s24, 4096 }
 0xbca   : > { %p5837_p0 = scmp.ne.s32.totalorder %s7597_s24, %s5836_s28  ;;  %s5906_s27 = smov [#allocation3]  }
 0xbcb   : > { %s5840_s16 = sshll.u32 %s5906_s27, 4  ;;  %s5841_s16 = int_to_ptr.vmem [resolvable:$false] %s5840_s16 }
 0xbcc   : > { %p5838_p1 = pnand %p5837_p0, %p5997_p5  ;;  %s5842_s21 = scalar_lea.vmem %s5841_s16, 8192 }
 0xbcd   : > { %p5843_p3 = scmp.lt.s32.totalorder %s7597_s24, %s5841_s16  ;;  %p5844_p4 = scmp.lt.s32.totalorder %s5842_s21, %s5836_s28 }
 0xbce   : > { %p5839_p2 = pneg %p5838_p1 }
 0xbcf   : > { %p5845_p7 = por %p5844_p4, %p5843_p3 }
 0xbd1   : > { %p5846_p8 = pnand %p5845_p7, %p5839_p2 }
 0xc05   : > { %v4080_v11 = vpop.xlane.xlu0 %4079 }
 0xc06   : > { %v4126_v46 = vmul.f32 0.00390625, %v4080_v11 }
 0xc08   : > { %v4142_v8 = vadd.f32 1e-05, %v4126_v46 }
 0xc09   : > { %v4083_v18 = vpop.xlane.xlu1 %4082 }
 0xc0a   : > { %5778 = vrsqrt.f32 %v4142_v8  ;;  %v4127_v19 = vmul.f32 0.00390625, %v4083_v18 }
 0xc0c   : > { %v4143_v41 = vadd.f32 1e-05, %v4127_v19 }
 0xc0d   : > { %v4086_v10 = vpop.xlane.xlu0 %4085 }
 0xc0e   : > { %5780 = vrsqrt.f32 %v4143_v41  ;;  %v4128_v63 = vmul.f32 0.00390625, %v4086_v10 }
 0xc10   : > { %v4144_v25 = vadd.f32 1e-05, %v4128_v63 }
 0xc11   : > { %v4089_v43 = vpop.xlane.xlu1 %4088 }
 0xc12   : > { %5782 = vrsqrt.f32 %v4144_v25  ;;  %v4129_v42 = vmul.f32 0.00390625, %v4089_v43 }
 0xc14   : > { %v4145_v24 = vadd.f32 1e-05, %v4129_v42 }
 0xc15   : > { %v4092_v36 = vpop.xlane.xlu0 %4091 }
 0xc16   : > { %5784 = vrsqrt.f32 %v4145_v24  ;;  %v4130_v5 = vmul.f32 0.00390625, %v4092_v36 }
 0xc17   : > { %v5779_v27 = vpop.eup %5778 }
 0xc18   : > { %v4174_v49 = vmul.f32 %v5779_v27, %v7254_v45  ;;  %v4175_v38 = vmul.f32 %v5779_v27, %v7257_v9  ;;  %v4146_v56 = vadd.f32 1e-05, %v4130_v5 }
 0xc19   : > { %v4095_v34 = vpop.xlane.xlu1 %4094 }
 0xc1a   : > { %v4218_v35 = vmul.f32 %v7452_v47, %v4174_v49  ;;  %v4219_v54 = vmul.f32 %v7455_v17, %v4175_v38  ;;  %5786 = vrsqrt.f32 %v4146_v56  ;;  %v4131_v58 = vmul.f32 0.00390625, %v4095_v34 }
 0xc1b   : > { %v5781_v16 = vpop.eup %5780 }
 0xc1c   : > { %v4262_v13 = vadd.f32 %v7458_v12, %v4218_v35  ;;  %v4263_v11 = vadd.f32 %v7461_v55, %v4219_v54  ;;  %v4176_v46 = vmul.f32 %v5781_v16, %v7264_v29  ;;  %v4177_v8 = vmul.f32 %v5781_v16, %v7267_v48 }
 0xc1d   : > { %v4147_v45 = vadd.f32 1e-05, %v4131_v58  ;;  %v4098_v18 = vpop.xlane.xlu0 %4097 }
 0xc1e   : > { %4294 = vst [vmem:[%s7472_s29] sm:$0xff] %v4262_v13  ;;  %4295 = vst [vmem:[%s7472_s29 + $0x8] sm:$0xff] %v4263_v11  ;;  %v4220_v9 = vmul.f32 %v7452_v47, %v4176_v46  ;;  %v4221_v19 = vmul.f32 %v7455_v17, %v4177_v8  ;;  %v4132_v41 = vmul.f32 0.00390625, %v4098_v18 }
 0xc1f   : > { %v5783_v10 = vpop.eup %5782  ;;  %5788 = vrsqrt.f32 %v4147_v45 }
 0xc20   : > { %v4264_v29 = vadd.f32 %v7458_v12, %v4220_v9  ;;  %v4265_v48 = vadd.f32 %v7461_v55, %v4221_v19  ;;  %v4178_v63 = vmul.f32 %v5783_v10, %v7274_v15  ;;  %v4179_v25 = vmul.f32 %v5783_v10, %v7277_v39 }
 0xc21   : > { %v4148_v43 = vadd.f32 1e-05, %v4132_v41  ;;  %v4101_v42 = vpop.xlane.xlu1 %4100 }
 0xc22   : > { %4296 = vst [vmem:[%s7472_s29 + $0x10] sm:$0xff] %v4264_v29  ;;  %4297 = vst [vmem:[%s7472_s29 + $0x18] sm:$0xff] %v4265_v48  ;;  %v4222_v59 = vmul.f32 %v7452_v47, %v4178_v63  ;;  %v4223_v1 = vmul.f32 %v7455_v17, %v4179_v25  ;;  %v4133_v24 = vmul.f32 0.00390625, %v4101_v42 }
 0xc23   : > { %v5785_v36 = vpop.eup %5784  ;;  %5790 = vrsqrt.f32 %v4148_v43 }
 0xc24   : > { %v4266_v52 = vadd.f32 %v7458_v12, %v4222_v59  ;;  %v4267_v7 = vadd.f32 %v7461_v55, %v4223_v1  ;;  %v4180_v15 = vmul.f32 %v5785_v36, %v7284_v2  ;;  %v4181_v39 = vmul.f32 %v5785_v36, %v7287_v4 }
 0xc25   : > { %v4149_v5 = vadd.f32 1e-05, %v4133_v24  ;;  %v4104_v27 = vpop.xlane.xlu0 %4103 }
 0xc26   : > { %4298 = vst [vmem:[%s7472_s29 + $0x20] sm:$0xff] %v4266_v52  ;;  %4299 = vst [vmem:[%s7472_s29 + $0x28] sm:$0xff] %v4267_v7  ;;  %v4224_v49 = vmul.f32 %v7452_v47, %v4180_v15  ;;  %v4225_v38 = vmul.f32 %v7455_v17, %v4181_v39  ;;  %v4134_v56 = vmul.f32 0.00390625, %v4104_v27 }
 0xc27   : > { %v5787_v34 = vpop.eup %5786  ;;  %5792 = vrsqrt.f32 %v4149_v5 }
 0xc28   : > { %v4268_v35 = vadd.f32 %v7458_v12, %v4224_v49  ;;  %v4269_v54 = vadd.f32 %v7461_v55, %v4225_v38  ;;  %v4182_v2 = vmul.f32 %v5787_v34, %v7294_v26  ;;  %v4183_v4 = vmul.f32 %v5787_v34, %v7297_v44 }
 0xc29   : > { %v4150_v58 = vadd.f32 1e-05, %v4134_v56  ;;  %v4107_v16 = vpop.xlane.xlu1 %4106 }
 0xc2a   : > { %4300 = vst [vmem:[%s7472_s29 + $0x30] sm:$0xff] %v4268_v35  ;;  %4301 = vst [vmem:[%s7472_s29 + $0x38] sm:$0xff] %v4269_v54  ;;  %v4226_v13 = vmul.f32 %v7452_v47, %v4182_v2  ;;  %v4227_v11 = vmul.f32 %v7455_v17, %v4183_v4  ;;  %v4135_v46 = vmul.f32 0.00390625, %v4107_v16 }
 0xc2b   : > { %5794 = vrsqrt.f32 %v4150_v58 }
 0xc2c   : > { %v5789_v8 = vpop.eup %5788  ;;  %v4270_v45 = vadd.f32 %v7458_v12, %v4226_v13  ;;  %v4271_v18 = vadd.f32 %v7461_v55, %v4227_v11  ;;  %v4151_v26 = vadd.f32 1e-05, %v4135_v46 }
 0xc2d   : > { %v4184_v44 = vmul.f32 %v5789_v8, %v7304_v51  ;;  %v4185_v9 = vmul.f32 %v5789_v8, %v7307_v6  ;;  %v4110_v19 = vpop.xlane.xlu0 %4109 }
 0xc2e   : > { %4302 = vst [vmem:[%s7472_s29 + $0x40] sm:$0xff] %v4270_v45  ;;  %4303 = vst [vmem:[%s7472_s29 + $0x48] sm:$0xff] %v4271_v18  ;;  %5796 = vrsqrt.f32 %v4151_v26  ;;  %v4136_v41 = vmul.f32 0.00390625, %v4110_v19 }
 0xc2f   : > { %v4228_v10 = vmul.f32 %v7452_v47, %v4184_v44  ;;  %v4229_v29 = vmul.f32 %v7455_v17, %v4185_v9 }
 0xc30   : > { %v5791_v48 = vpop.eup %5790  ;;  %v4152_v63 = vadd.f32 1e-05, %v4136_v41 }
 0xc31   : > { %v4272_v25 = vadd.f32 %v7458_v12, %v4228_v10  ;;  %v4273_v43 = vadd.f32 %v7461_v55, %v4229_v29  ;;  %v4186_v51 = vmul.f32 %v5791_v48, %v7314_v60  ;;  %v4187_v6 = vmul.f32 %v5791_v48, %v7317_v3  ;;  %v4113_v42 = vpop.xlane.xlu1 %4112 }
 0xc32   : > { %5798 = vrsqrt.f32 %v4152_v63  ;;  %v4137_v59 = vmul.f32 0.00390625, %v4113_v42 }
 0xc33   : > { %4304 = vst [vmem:[%s7472_s29 + $0x50] sm:$0xff] %v4272_v25  ;;  %4305 = vst [vmem:[%s7472_s29 + $0x58] sm:$0xff] %v4273_v43  ;;  %v4230_v1 = vmul.f32 %v7452_v47, %v4186_v51  ;;  %v4231_v24 = vmul.f32 %v7455_v17, %v4187_v6 }
 0xc34   : > { %v5793_v36 = vpop.eup %5792  ;;  %v4153_v52 = vadd.f32 1e-05, %v4137_v59 }
 0xc35   : > { %v4274_v7 = vadd.f32 %v7458_v12, %v4230_v1  ;;  %v4275_v15 = vadd.f32 %v7461_v55, %v4231_v24  ;;  %v4188_v60 = vmul.f32 %v5793_v36, %v7324_v50  ;;  %v4189_v3 = vmul.f32 %v5793_v36, %v7327_v32  ;;  %v4116_v39 = vpop.xlane.xlu0 %4115 }
 0xc36   : > { %5800 = vrsqrt.f32 %v4153_v52  ;;  %v4138_v5 = vmul.f32 0.00390625, %v4116_v39 }
 0xc37   : > { %4306 = vst [vmem:[%s7472_s29 + $0x60] sm:$0xff] %v4274_v7  ;;  %4307 = vst [vmem:[%s7472_s29 + $0x68] sm:$0xff] %v4275_v15  ;;  %v4232_v27 = vmul.f32 %v7452_v47, %v4188_v60  ;;  %v4233_v49 = vmul.f32 %v7455_v17, %v4189_v3 }
 0xc38   : > { %v5795_v38 = vpop.eup %5794  ;;  %v4154_v56 = vadd.f32 1e-05, %v4138_v5 }
 0xc39   : > { %v4276_v34 = vadd.f32 %v7458_v12, %v4232_v27  ;;  %v4277_v35 = vadd.f32 %v7461_v55, %v4233_v49  ;;  %v4190_v50 = vmul.f32 %v5795_v38, %v7334_v31  ;;  %v4191_v32 = vmul.f32 %v5795_v38, %v7337_v33  ;;  %v4119_v54 = vpop.xlane.xlu1 %4118 }
 0xc3a   : > { %5802 = vrsqrt.f32 %v4154_v56  ;;  %v4139_v2 = vmul.f32 0.00390625, %v4119_v54 }
 0xc3b   : > { %v5797_v4 = vpop.eup %5796  ;;  %4308 = vst [vmem:[%s7472_s29 + $0x70] sm:$0xff] %v4276_v34  ;;  %4309 = vst [vmem:[%s7472_s29 + $0x78] sm:$0xff] %v4277_v35  ;;  %v4234_v58 = vmul.f32 %v7452_v47, %v4190_v50  ;;  %v4235_v16 = vmul.f32 %v7455_v17, %v4191_v32 }
 0xc3c   : > { %v4192_v13 = vmul.f32 %v5797_v4, %v7344_v22  ;;  %v4193_v11 = vmul.f32 %v5797_v4, %v7347_v20  ;;  %v4155_v46 = vadd.f32 1e-05, %v4139_v2 }
 0xc3d   : > { %v4278_v31 = vadd.f32 %v7458_v12, %v4234_v58  ;;  %v4279_v33 = vadd.f32 %v7461_v55, %v4235_v16  ;;  %v4122_v8 = vpop.xlane.xlu0 %4121 }
 0xc3e   : > { %v4236_v45 = vmul.f32 %v7452_v47, %v4192_v13  ;;  %v4237_v18 = vmul.f32 %v7455_v17, %v4193_v11  ;;  %5804 = vrsqrt.f32 %v4155_v46  ;;  %v4140_v26 = vmul.f32 0.00390625, %v4122_v8 }
 0xc3f   : > { %v5799_v44 = vpop.eup %5798  ;;  %4310 = vst [vmem:[%s7472_s29 + $0x80] sm:$0xff] %v4278_v31  ;;  %4311 = vst [vmem:[%s7472_s29 + $0x88] sm:$0xff] %v4279_v33 }
 0xc40   : > { %v4280_v22 = vadd.f32 %v7458_v12, %v4236_v45  ;;  %v4281_v20 = vadd.f32 %v7461_v55, %v4237_v18  ;;  %v4194_v9 = vmul.f32 %v5799_v44, %v7354_v53  ;;  %v4195_v19 = vmul.f32 %v5799_v44, %v7357_v61 }
 0xc41   : > { %v4156_v41 = vadd.f32 1e-05, %v4140_v26  ;;  %v4125_v10 = vpop.xlane.xlu1 %4124 }
 0xc42   : > { %4312 = vst [vmem:[%s7472_s29 + $0x90] sm:$0xff] %v4280_v22  ;;  %4313 = vst [vmem:[%s7472_s29 + $0x98] sm:$0xff] %v4281_v20  ;;  %v4238_v29 = vmul.f32 %v7452_v47, %v4194_v9  ;;  %v4239_v48 = vmul.f32 %v7455_v17, %v4195_v19  ;;  %v4141_v63 = vmul.f32 0.00390625, %v4125_v10 }
 0xc43   : > { %v5801_v25 = vpop.eup %5800  ;;  %5806 = vrsqrt.f32 %v4156_v41 }
 0xc44   : > { %v4282_v43 = vadd.f32 %v7458_v12, %v4238_v29  ;;  %v4283_v53 = vadd.f32 %v7461_v55, %v4239_v48  ;;  %v4196_v61 = vmul.f32 %v5801_v25, %v7364_v28  ;;  %v4197_v51 = vmul.f32 %v5801_v25, %v7367_v57 }
 0xc45   : > { %v4157_v6 = vadd.f32 1e-05, %v4141_v63 }
 0xc46   : > { %4314 = vst [vmem:[%s7472_s29 + $0xa0] sm:$0xff] %v4282_v43  ;;  %4315 = vst [vmem:[%s7472_s29 + $0xa8] sm:$0xff] %v4283_v53  ;;  %v4240_v42 = vmul.f32 %v7452_v47, %v4196_v61  ;;  %v4241_v59 = vmul.f32 %v7455_v17, %v4197_v51 }
 0xc47   : > { %v5803_v1 = vpop.eup %5802  ;;  %5808 = vrsqrt.f32 %v4157_v6 }
 0xc48   : > { %v4284_v24 = vadd.f32 %v7458_v12, %v4240_v42  ;;  %v4285_v36 = vadd.f32 %v7461_v55, %v4241_v59  ;;  %v4198_v52 = vmul.f32 %v5803_v1, %v7374_v14  ;;  %v4199_v28 = vmul.f32 %v5803_v1, %v7377_v40 }
 0xc4a   : > { %4316 = vst [vmem:[%s7472_s29 + $0xb0] sm:$0xff] %v4284_v24  ;;  %4317 = vst [vmem:[%s7472_s29 + $0xb8] sm:$0xff] %v4285_v36  ;;  %v4242_v57 = vmul.f32 %v7452_v47, %v4198_v52  ;;  %v4243_v7 = vmul.f32 %v7455_v17, %v4199_v28 }
 0xc4b   : > { %v5805_v15 = vpop.eup %5804 }
 0xc4c   : > { %v4286_v60 = vadd.f32 %v7458_v12, %v4242_v57  ;;  %v4287_v3 = vadd.f32 %v7461_v55, %v4243_v7  ;;  %v4200_v39 = vmul.f32 %v5805_v15, %v7384_v30  ;;  %v4201_v5 = vmul.f32 %v5805_v15, %v7387_v37 }
 0xc4e   : > { %4318 = vst [vmem:[%s7472_s29 + $0xc0] sm:$0xff] %v4286_v60  ;;  %4319 = vst [vmem:[%s7472_s29 + $0xc8] sm:$0xff] %v4287_v3  ;;  %v4244_v14 = vmul.f32 %v7452_v47, %v4200_v39  ;;  %v4245_v40 = vmul.f32 %v7455_v17, %v4201_v5 }
 0xc50   : > { %v5807_v27 = vpop.eup %5806  ;;  %v4288_v49 = vadd.f32 %v7458_v12, %v4244_v14  ;;  %v4289_v38 = vadd.f32 %v7461_v55, %v4245_v40 }
 0xc51   : > { %v4202_v56 = vmul.f32 %v5807_v27, %v7394_v62  ;;  %v4203_v30 = vmul.f32 %v5807_v27, %v7397_v0 }
 0xc52   : > { %4320 = vst [vmem:[%s7472_s29 + $0xd0] sm:$0xff] %v4288_v49  ;;  %4321 = vst [vmem:[%s7472_s29 + $0xd8] sm:$0xff] %v4289_v38 }
 0xc53   : > { %v4246_v37 = vmul.f32 %v7452_v47, %v4202_v56  ;;  %v4247_v34 = vmul.f32 %v7455_v17, %v4203_v30 }
 0xc54   : > { %v5809_v35 = vpop.eup %5808 }
 0xc55   : > { %v4290_v50 = vadd.f32 %v7458_v12, %v4246_v37  ;;  %v4291_v32 = vadd.f32 %v7461_v55, %v4247_v34  ;;  %v4204_v54 = vmul.f32 %v5809_v35, %v7404_v23  ;;  %v4205_v62 = vmul.f32 %v5809_v35, %v7407_v21 }
 0xc57   : > { %4322 = vst [vmem:[%s7472_s29 + $0xe0] sm:$0xff] %v4290_v50  ;;  %4323 = vst [vmem:[%s7472_s29 + $0xe8] sm:$0xff] %v4291_v32  ;;  %v4248_v0 = vmul.f32 %v7452_v47, %v4204_v54  ;;  %v4249_v2 = vmul.f32 %v7455_v17, %v4205_v62 }
 0xc59   : > { %v4292_v23 = vadd.f32 %v7458_v12, %v4248_v0  ;;  %v4293_v21 = vadd.f32 %v7461_v55, %v4249_v2 }
 0xc5b   : > { %4324 = vst [vmem:[%s7472_s29 + $0xf0] sm:$0xff] %v4292_v23  ;;  %4325 = vst [vmem:[%s7472_s29 + $0xf8] sm:$0xff] %v4293_v21 }
 0xc5c   : > { %5849 = shalt.err (!%p5846_p8)
}
 0xc5d   : > { %s5850_s25 = scalar_lea.hbm %s7595_s22, 4096  ;;  %s5854_s23 = scalar_lea.hbm %s7651_s8, 16384 }
 0xc5e   : > { %p5851_p9 = scmp.ne.s32.totalorder %s7595_s22, %s5850_s25  ;;  %p5855_p12 = scmp.lt.s32.totalorder %s7595_s22, %s7651_s8 }
 0xc5f   : > { %p5856_p13 = scmp.lt.s32.totalorder %s5854_s23, %s5850_s25 }
 0xc60   : > { %p5852_p10 = pnand %p5851_p9, %p5997_p5 }
 0xc61   : > { %p5857_p0 = por %p5856_p13, %p5855_p12 }
 0xc62   : > { %p5853_p11 = pneg %p5852_p10 }
 0xc64   : > { %p5858_p1 = pnand %p5857_p0, %p5853_p11 }
 0xc66   : > { %5861 = shalt.err (!%p5858_p1)
}
 0xc67   : > { %s5907_s28 = smov 256   ;;  %s5908_s16 = smov 16  }
 0xc68   : > { %5329 = dma.vmem_to_hbm [thread:$0]  (%p5997_p5), %s7597_s24, 4096, %s7595_s22, %s4327_s13, %s5907_s28, %s5907_s28, %s5908_s16  }
 0xc69 PF: > { %p5340_p2 = scmp.ge.s32.totalorder %s5900_s12, 2  ;;  %s4378_s21 = sand.u32 1, %s5888_s30  }
 0xc6a   : > { %s4379_s25 = scalar_lea.sflag [#allocation4], %s4378_s21 }
 0xc6b   : > { %p5334_p3 = pnand %p5340_p2, %p6001_p6 }
 0xc6d   : > { %p5335_p4 = pneg %p5334_p3 }
 0xc6f   : > { %5879 = dma.done.wait (%p5335_p4), %s4379_s25, 4096  }
 0xc70   : > { %5881 = vsyncadd (%p5335_p4), %s4379_s25, 4294963200  ;;  %s4388_s29 = scalar_lea.sflag [#allocation6], %s4378_s21 }
 0xc71   : > { %5883 = dma.done.wait (%p5335_p4), %s4388_s29, 8192  }
 0xc72   : > { %5885 = vsyncadd (%p5335_p4), %s4388_s29, 4294959104  ;;  %p23_p5 = scmp.ge.s32.totalorder %s5984_s15, 6   ;;  %s7704_s30 = smov %s5892_s10 }
 0xc73   : > { %s7705_s10 = smov %s5896_s11  ;;  %s7706_s11 = smov %s5995_s18 }
 0xc74   : > { %s7707_s12 = smov %s5984_s15  ;;  %25 = sbr.rel (!%p23_p5) target bundleno = 5 (0x5), region = 188 }
 0xc79   :  { %4393 = vsyncpa [#allocation4], 1 }
 0xc7a   :  { %4395 = vsyncpa [#allocation4 + $0x1], 1 }
 0xc7b   :  { %4396 = vsyncpa [#allocation6], 1 }
 0xc7c   :  { %4398 = vsyncpa [#allocation6 + $0x1], 1 }

</bundles_post_ra>
